<compile_context>
chip_gen: v5e
topology: v5e:2x2
jax: 0.10.0
libtpu: 0.0.40
codegen_flags: <defaults>
</compile_context>

<pallas_src>
import functools

import jax
import jax.numpy as jnp
from jax.experimental import pallas as pl
from jax.experimental.pallas import tpu as pltpu


def _round_up(x, m):
    return (x + m - 1) // m * m


# --------------- Pallas kernel 1: lane-dense GEMM (+ bias) ----------------
def _gemm_bias_kernel(w_ref, x_ref, b_ref, o_ref, acc_ref):
    @pl.when(pl.program_id(1) == 0)
    def _():
        acc_ref[...] = jnp.zeros_like(acc_ref)

    acc_ref[...] += jnp.dot(w_ref[...], x_ref[...],
                            preferred_element_type=jnp.float32)

    @pl.when(pl.program_id(1) == pl.num_programs(1) - 1)
    def _():
        o_ref[...] = (acc_ref[...] + b_ref[...]).astype(o_ref.dtype)


def matmul_bias_cm(w_mat, x_mat, bias):
    """out[C, M] = w_mat[C, K] @ x_mat[K, M] + bias.  M (large) -> lanes,
    C (small, 2..16 here) -> sublanes; bf16 operands, f32 accumulation."""
    C, K = w_mat.shape
    K2, M = x_mat.shape
    assert K == K2
    Cp = _round_up(C, 16)
    tm = min(512, _round_up(M, 128))
    Mp = _round_up(M, tm)
    tk = min(512, _round_up(K, 128))
    Kp = _round_up(K, tk)
    w_p = jnp.pad(w_mat.astype(jnp.bfloat16), ((0, Cp - C), (0, Kp - K)))
    x_p = jnp.pad(x_mat.astype(jnp.bfloat16), ((0, Kp - K), (0, Mp - M)))
    b_p = jnp.pad(bias.astype(jnp.float32), (0, Cp - C)).reshape(Cp, 1)
    out = pl.pallas_call(
        _gemm_bias_kernel,
        out_shape=jax.ShapeDtypeStruct((Cp, Mp), jnp.float32),
        grid_spec=pltpu.PrefetchScalarGridSpec(
            num_scalar_prefetch=0,
            grid=(Mp // tm, Kp // tk),
            in_specs=[
                pl.BlockSpec((Cp, tk), lambda i, k: (0, k)),
                pl.BlockSpec((tk, tm), lambda i, k: (k, i)),
                pl.BlockSpec((Cp, 1), lambda i, k: (0, 0)),
            ],
            out_specs=pl.BlockSpec((Cp, tm), lambda i, k: (0, i)),
            scratch_shapes=[pltpu.VMEM((Cp, tm), jnp.float32)],
        ),
        compiler_params=pltpu.CompilerParams(
            dimension_semantics=("parallel", "arbitrary")),
    )(w_p, x_p, b_p)
    return out[:C, :M]


# ------ Pallas kernel 2: tiled BN affine (+ residual add, + ReLU) ---------
def _bn_act_kernel(x_ref, s_ref, t_ref, o_ref, *, relu):
    y = x_ref[...] * s_ref[...] + t_ref[...]
    if relu:
        y = jnp.maximum(y, 0.0)
    o_ref[...] = y.astype(o_ref.dtype)


def _bn_act_res_kernel(x_ref, s_ref, t_ref, r_ref, o_ref, *, relu):
    y = x_ref[...] * s_ref[...] + t_ref[...] + r_ref[...]
    if relu:
        y = jnp.maximum(y, 0.0)
    o_ref[...] = y.astype(o_ref.dtype)


def batchnorm3d(x, gamma, beta, residual=None, relu=False, eps=1e-5):
    """Training-mode BatchNorm3d (batch statistics, biased variance, eps=1e-5,
    affine) with optional fused residual add + ReLU.  Per-channel stats are an
    XLA reduction; the memory-bound elementwise pass is a tiled Pallas kernel
    on a channels-first (C, M) view (M lane-dense, gridded over M)."""
    N, C, D, H, W = x.shape
    xf = x.astype(jnp.float32)
    mean = jnp.mean(xf, axis=(0, 2, 3, 4))
    var = jnp.var(xf, axis=(0, 2, 3, 4))          # biased, like torch training
    scale = gamma.astype(jnp.float32) * jax.lax.rsqrt(var + eps)
    shift = beta.astype(jnp.float32) - mean * scale

    M = N * D * H * W
    Cp = _round_up(C, 8)
    tm = min(512, _round_up(M, 128))
    Mp = _round_up(M, tm)

    xm = jnp.pad(xf.transpose(1, 0, 2, 3, 4).reshape(C, M),
                 ((0, Cp - C), (0, Mp - M)))
    s_p = jnp.pad(scale, (0, Cp - C)).reshape(Cp, 1)
    t_p = jnp.pad(shift, (0, Cp - C)).reshape(Cp, 1)

    mat_spec = pl.BlockSpec((Cp, tm), lambda i: (0, i))
    vec_spec = pl.BlockSpec((Cp, 1), lambda i: (0, 0))

    if residual is None:
        kern = functools.partial(_bn_act_kernel, relu=relu)
        in_specs = [mat_spec, vec_spec, vec_spec]
        args = (xm, s_p, t_p)
    else:
        rm = jnp.pad(
            residual.astype(jnp.float32).transpose(1, 0, 2, 3, 4).reshape(C, M),
            ((0, Cp - C), (0, Mp - M)))
        kern = functools.partial(_bn_act_res_kernel, relu=relu)
        in_specs = [mat_spec, vec_spec, vec_spec, mat_spec]
        args = (xm, s_p, t_p, rm)

    out = pl.pallas_call(
        kern,
        out_shape=jax.ShapeDtypeStruct((Cp, Mp), jnp.float32),
        grid_spec=pltpu.PrefetchScalarGridSpec(
            num_scalar_prefetch=0,
            grid=(Mp // tm,),
            in_specs=in_specs,
            out_specs=pl.BlockSpec((Cp, tm), lambda i: (0, i)),
        ),
        compiler_params=pltpu.CompilerParams(
            dimension_semantics=("parallel",)),
    )(*args)
    return out[:C, :M].reshape(C, N, D, H, W).transpose(1, 0, 2, 3, 4)


# --------------------- conv helpers (im2col glue) --------------------------
def conv3d(x, w, b=None, stride=(1, 1, 1), padding=(0, 0, 0)):
    """x: (N, Cin, D, H, W); w: (Cout, Cin, kD, kH, kW).  Cross-correlation."""
    N, Cin, D, H, W = x.shape
    Cout, _, kD, kH, kW = w.shape
    sd, sh, sw = stride
    pd, ph, pw = padding
    xp = jnp.pad(x.astype(jnp.bfloat16),
                 ((0, 0), (0, 0), (pd, pd), (ph, ph), (pw, pw)))
    Do = (D + 2 * pd - kD) // sd + 1
    Ho = (H + 2 * ph - kH) // sh + 1
    Wo = (W + 2 * pw - kW) // sw + 1
    cols = []
    for kd in range(kD):
        for kh in range(kH):
            for kw in range(kW):
                cols.append(xp[:, :,
                               kd:kd + (Do - 1) * sd + 1:sd,
                               kh:kh + (Ho - 1) * sh + 1:sh,
                               kw:kw + (Wo - 1) * sw + 1:sw])
    # channels-first im2col: (K = Cin*Ks, M = N*Do*Ho*Wo)
    patches = jnp.stack(cols, axis=2)                     # (N,Cin,Ks,Do,Ho,Wo)
    patches = patches.transpose(1, 2, 0, 3, 4, 5).reshape(
        Cin * kD * kH * kW, N * Do * Ho * Wo)
    wmat = w.reshape(Cout, Cin * kD * kH * kW)
    bias = b if b is not None else jnp.zeros((Cout,), jnp.float32)
    out = matmul_bias_cm(wmat, patches, bias)             # (Cout, M) f32
    return out.reshape(Cout, N, Do, Ho, Wo).transpose(1, 0, 2, 3, 4)


def conv_transpose3d_s221(x, w, b):
    """ConvTranspose3d(kernel=3, stride=(2,2,1), padding=1,
    output_padding=(1,1,0)) via sub-pixel decomposition (no zero insertion).
    x: (N, Cin, D, H, W); w: (Cin, Cout, 3, 3, 3) -> (N, Cout, 2D, 2H, W)."""
    N, Cin, D, H, W = x.shape
    Cout = w.shape[1]
    w_flip_w = jnp.flip(w, axis=4)     # correlation kernel along stride-1 W axis

    def axis_taps(parity):
        # even output rows: single tap k=1; odd output rows: taps [k=2, k=0]
        # with the input zero-padded by one at the far end of that axis.
        return ([1], (0, 0)) if parity == 0 else ([2, 0], (0, 1))

    subs = {}
    for pd_par in (0, 1):
        kd_idx, pad_d = axis_taps(pd_par)
        for ph_par in (0, 1):
            kh_idx, pad_h = axis_taps(ph_par)
            wsub = jnp.take(w_flip_w, jnp.array(kd_idx), axis=2)
            wsub = jnp.take(wsub, jnp.array(kh_idx), axis=3)
            wsub = jnp.transpose(wsub, (1, 0, 2, 3, 4))    # (Cout, Cin, ., ., 3)
            xs = jnp.pad(x, ((0, 0), (0, 0), pad_d, pad_h, (0, 0)))
            subs[(pd_par, ph_par)] = conv3d(xs, wsub, b, padding=(0, 0, 1))

    y = jnp.zeros((N, Cout, 2 * D, 2 * H, W), jnp.float32)
    for (pd_par, ph_par), o in subs.items():
        y = y.at[:, :, pd_par::2, ph_par::2, :].set(o)
    return y


def stride_supression(x, stride):
    if isinstance(stride, int):
        stride = (stride, stride, stride)
    s0, s1, s2 = stride
    pieces = []
    for z in range(s2):
        for y in range(s1):
            for xx in range(s0):
                pieces.append(x[..., xx::s0, y::s1, z::s2])
    return jnp.concatenate(pieces, axis=1)


# ------------------------- parameter init ----------------------------------
def init_params(key, ngf, output_nc, n_blocks):
    keys = iter(jax.random.split(key, 256))

    def conv_w(cout, cin, k):
        return jax.random.normal(next(keys), (cout, cin) + k, jnp.float32) * 0.05

    def conv_b(cout):
        return jax.random.normal(next(keys), (cout,), jnp.float32) * 0.05

    def bn_p(c):
        g = 1.0 + 0.1 * jax.random.normal(next(keys), (c,), jnp.float32)
        b = 0.1 * jax.random.normal(next(keys), (c,), jnp.float32)
        return {"gamma": g, "beta": b}

    dim = ngf * 4            # ngf * mult * 2 with mult = 2
    dimF = dim * 8           # after stride_supression(2)
    p = {
        "stem_conv1_w": conv_w(ngf, 1, (1, 1, 6)),
        "stem_conv1_b": conv_b(ngf),
        "stem_bn1": bn_p(ngf * 4),
        "stem_conv2_w": conv_w(ngf * 2, ngf * 4, (1, 1, 1)),
        "stem_conv2_b": conv_b(ngf * 2),
        "stem_bn2": bn_p(ngf * 2),
        "down": {
            "convA_w": conv_w(dim, ngf * 2, (3, 3, 3)),
            "bnA": bn_p(dimF),
            "convB_w": conv_w(dim, dimF, (3, 3, 3)),
            "bnB": bn_p(dim),
            "sc_w": conv_w(dim, ngf * 2, (1, 1, 1)),
            "sc_bn": bn_p(dim),
        },
        "middle": [
            {
                "conv1_w": conv_w(dim, dim, (3, 3, 3)),
                "bn1": bn_p(dim),
                "conv2_w": conv_w(dim, dim, (3, 3, 3)),
                "bn2": bn_p(dim),
            }
            for _ in range(n_blocks)
        ],
        "up1_w": jax.random.normal(next(keys), (ngf * 4, ngf * 2, 3, 3, 3),
                                   jnp.float32) * 0.05,
        "up1_b": conv_b(ngf * 2),
        "up1_bn": bn_p(ngf * 2),
        "up2_w": jax.random.normal(next(keys), (ngf * 2, ngf, 3, 3, 3),
                                   jnp.float32) * 0.05,
        "up2_b": conv_b(ngf),
        "up2_bn": bn_p(ngf),
        "final_w": conv_w(output_nc, ngf, (7, 7, 26)),
        "final_b": conv_b(output_nc),
    }
    return p


# ----------------------------- forward --------------------------------------
@jax.jit
def forward(params, x):
    # ---- stem ----
    h = conv3d(x, params["stem_conv1_w"], params["stem_conv1_b"],
               padding=(0, 0, 3))
    h = stride_supression(h, (2, 2, 1))
    h = batchnorm3d(h, **params["stem_bn1"], relu=True)
    h = conv3d(h, params["stem_conv2_w"], params["stem_conv2_b"])
    h = batchnorm3d(h, **params["stem_bn2"], relu=False)

    # ---- down: ResnetBlock with stride=2 ----
    dp = params["down"]
    main = conv3d(h, dp["convA_w"], None, padding=(1, 1, 1))
    main = stride_supression(main, 2)
    main = batchnorm3d(main, **dp["bnA"], relu=True)
    main = conv3d(main, dp["convB_w"], None, padding=(1, 1, 1))
    sc = conv3d(h, dp["sc_w"], None, stride=(2, 2, 2))
    sc = batchnorm3d(sc, **dp["sc_bn"], relu=False)
    h = batchnorm3d(main, **dp["bnB"], residual=sc, relu=True)

    # ---- middle: n_blocks ResnetBlocks (stride=1, identity shortcut) ----
    for bp in params["middle"]:
        m = conv3d(h, bp["conv1_w"], None, padding=(1, 1, 1))
        m = batchnorm3d(m, **bp["bn1"], relu=True)
        m = conv3d(m, bp["conv2_w"], None, padding=(1, 1, 1))
        h = batchnorm3d(m, **bp["bn2"], residual=h, relu=True)

    # ---- up: two ConvTranspose3d (sub-pixel decomposed) + BN + ReLU ----
    h = conv_transpose3d_s221(h, params["up1_w"], params["up1_b"])
    h = batchnorm3d(h, **params["up1_bn"], relu=True)
    h = conv_transpose3d_s221(h, params["up2_w"], params["up2_b"])
    h = batchnorm3d(h, **params["up2_bn"], relu=True)

    # ---- final: Conv3d(ngf, out, (7,7,26), pad (3,3,0)) ----
    # kW == W and pw == 0, so the W axis contracts fully; fold (Cin, W) into
    # the GEMM contraction dim to avoid a huge im2col unroll.
    N, C, D, H, W = h.shape
    wf = params["final_w"]
    Cout, _, kD, kH, kW = wf.shape
    xf = h.transpose(0, 1, 4, 2, 3).reshape(N, C * W, D, H, 1)
    wm = wf.transpose(0, 1, 4, 2, 3).reshape(Cout, C * kW, kD, kH, 1)
    return conv3d(xf, wm, params["final_b"], padding=(3, 3, 0))


if __name__ == "__main__":
    ngf, output_nc, n_blocks = 4, 2, 2
    key = jax.random.PRNGKey(0)
    xkey, pkey = jax.random.split(key)
    # input: (N, 1, D, H, W); D,H divisible by 4, W odd with (W+1)/2 >= 26.
    x = jax.random.normal(xkey, (1, 1, 8, 8, 51), jnp.float32)
    params = init_params(pkey, ngf=ngf, output_nc=output_nc, n_blocks=n_blocks)
    y = forward(params, x)
    y = jax.block_until_ready(y)
    assert y.shape == (1, output_nc, 8, 8, 1), y.shape
    assert bool(jnp.all(jnp.isfinite(y)))
    print("KERNEL_OK")
</pallas_src>

<mosaic_0001>
module attributes {stable_mosaic.version = 11 : i64} {
  func.func @_gemm_bias_kernel(%arg0: i32, %arg1: i32, %arg2: memref<16x128xbf16, #tpu.memory_space<vmem>>, %arg3: memref<128x512xbf16, #tpu.memory_space<vmem>>, %arg4: memref<16x1xf32, #tpu.memory_space<vmem>>, %arg5: memref<16x512xf32, #tpu.memory_space<vmem>>, %arg6: memref<16x512xf32, #tpu.memory_space<vmem>>) attributes {dimension_semantics = [#tpu.dimension_semantics<parallel>, #tpu.dimension_semantics<arbitrary>], iteration_bounds = array<i64: 7, 1>, scalar_prefetch = 0 : i64, scratch_operands = 1 : i64, tpu.core_type = #tpu.core_type<tc>, window_params = [{transform_indices = @transform_0, window_bounds = array<i64: 16, 128>}, {transform_indices = @transform_1, window_bounds = array<i64: 128, 512>}, {pipeline_mode = #tpu.pipeline_mode<synchronous>, transform_indices = @transform_2, window_bounds = array<i64: 16, 1>}, {transform_indices = @transform_3, window_bounds = array<i64: 16, 512>}]} {
    %c0_i32 = arith.constant 0 : i32
    %0 = arith.cmpi eq, %arg1, %c0_i32 : i32
    %1 = arith.extui %0 : i1 to i32
    %c0_i32_0 = arith.constant 0 : i32
    %2 = arith.cmpi ne, %1, %c0_i32_0 : i32
    scf.if %2 {
      %cst_10 = arith.constant 0.000000e+00 : f32
      %12 = vector.broadcast %cst_10 : f32 to vector<16x512xf32>
      %c0_11 = arith.constant 0 : index
      %c0_12 = arith.constant 0 : index
      %13 = vector.load %arg6[%c0_11, %c0_12] : memref<16x512xf32, #tpu.memory_space<vmem>>, vector<16x512xf32>
      tpu.vector_store %arg6[%c0_11, %c0_12], %12 {strides = array<i32>} : memref<16x512xf32, #tpu.memory_space<vmem>>, vector<16x512xf32>,
    } else {
    }
    %c0 = arith.constant 0 : index
    %c0_1 = arith.constant 0 : index
    %3 = vector.load %arg6[%c0, %c0_1] : memref<16x512xf32, #tpu.memory_space<vmem>>, vector<16x512xf32>
    %c0_2 = arith.constant 0 : index
    %c0_3 = arith.constant 0 : index
    %4 = vector.load %arg2[%c0_2, %c0_3] : memref<16x128xbf16, #tpu.memory_space<vmem>>, vector<16x128xbf16>
    %c0_4 = arith.constant 0 : index
    %c0_5 = arith.constant 0 : index
    %5 = vector.load %arg3[%c0_4, %c0_5] : memref<128x512xbf16, #tpu.memory_space<vmem>>, vector<128x512xbf16>
    %cst = arith.constant dense<0.000000e+00> : vector<16x512xf32>
    %6 = tpu.matmul %4, %5, %cst {dimension_numbers = #tpu.dot_dimension_numbers<[1], [0], [0], [1], [0, 0, 1, 1], [], []>} : vector<16x128xbf16>, vector<128x512xbf16>, vector<16x512xf32> -> vector<16x512xf32>
    %7 = arith.addf %3, %6 : vector<16x512xf32>
    %c0_6 = arith.constant 0 : index
    %c0_7 = arith.constant 0 : index
    %8 = vector.load %arg6[%c0_6, %c0_7] : memref<16x512xf32, #tpu.memory_space<vmem>>, vector<16x512xf32>
    tpu.vector_store %arg6[%c0_6, %c0_7], %7 {strides = array<i32>} : memref<16x512xf32, #tpu.memory_space<vmem>>, vector<16x512xf32>,
    %c0_i32_8 = arith.constant 0 : i32
    %9 = arith.cmpi eq, %arg1, %c0_i32_8 : i32
    %10 = arith.extui %9 : i1 to i32
    %c0_i32_9 = arith.constant 0 : i32
    %11 = arith.cmpi ne, %10, %c0_i32_9 : i32
    scf.if %11 {
      %c0_10 = arith.constant 0 : index
      %c0_11 = arith.constant 0 : index
      %12 = vector.load %arg6[%c0_10, %c0_11] : memref<16x512xf32, #tpu.memory_space<vmem>>, vector<16x512xf32>
      %c0_12 = arith.constant 0 : index
      %c0_13 = arith.constant 0 : index
      %13 = vector.load %arg4[%c0_12, %c0_13] : memref<16x1xf32, #tpu.memory_space<vmem>>, vector<16x1xf32>
      %14 = vector.broadcast %13 : vector<16x1xf32> to vector<16x512xf32>
      %15 = arith.addf %12, %14 : vector<16x512xf32>
      %c0_14 = arith.constant 0 : index
      %c0_15 = arith.constant 0 : index
      %16 = vector.load %arg5[%c0_14, %c0_15] : memref<16x512xf32, #tpu.memory_space<vmem>>, vector<16x512xf32>
      tpu.vector_store %arg5[%c0_14, %c0_15], %15 {strides = array<i32>} : memref<16x512xf32, #tpu.memory_space<vmem>>, vector<16x512xf32>,
    } else {
    }
    return
  }
  func.func @transform_0(%arg0: i32, %arg1: i32) -> (i32, i32) {
    %c0_i32 = arith.constant 0 : i32
    %c0_i32_0 = arith.constant 0 : i32
    return %c0_i32, %arg1 : i32, i32
  }
  func.func @transform_1(%arg0: i32, %arg1: i32) -> (i32, i32) {
    %c0_i32 = arith.constant 0 : i32
    return %arg1, %arg0 : i32, i32
  }
  func.func @transform_2(%arg0: i32, %arg1: i32) -> (i32, i32) {
    %c0_i32 = arith.constant 0 : i32
    %c0_i32_0 = arith.constant 0 : i32
    %c0_i32_1 = arith.constant 0 : i32
    return %c0_i32, %c0_i32_0 : i32, i32
  }
  func.func @transform_3(%arg0: i32, %arg1: i32) -> (i32, i32) {
    %c0_i32 = arith.constant 0 : i32
    %c0_i32_0 = arith.constant 0 : i32
    return %c0_i32, %arg0 : i32, i32
  }
}

module attributes {stable_mosaic.version = 11 : i64} {
  func.func @_bn_act_kernel(%arg0: i32, %arg1: memref<16x512xf32, #tpu.memory_space<vmem>>, %arg2: memref<16x1xf32, #tpu.memory_space<vmem>>, %arg3: memref<16x1xf32, #tpu.memory_space<vmem>>, %arg4: memref<16x512xf32, #tpu.memory_space<vmem>>) attributes {dimension_semantics = [#tpu.dimension_semantics<parallel>], iteration_bounds = array<i64: 2>, scalar_prefetch = 0 : i64, scratch_operands = 0 : i64, tpu.core_type = #tpu.core_type<tc>, window_params = [{transform_indices = @transform_0, window_bounds = array<i64: 16, 512>}, {pipeline_mode = #tpu.pipeline_mode<synchronous>, transform_indices = @transform_1, window_bounds = array<i64: 16, 1>}, {pipeline_mode = #tpu.pipeline_mode<synchronous>, transform_indices = @transform_2, window_bounds = array<i64: 16, 1>}, {transform_indices = @transform_3, window_bounds = array<i64: 16, 512>}]} {
    %c0 = arith.constant 0 : index
    %c0_0 = arith.constant 0 : index
    %0 = vector.load %arg1[%c0, %c0_0] : memref<16x512xf32, #tpu.memory_space<vmem>>, vector<16x512xf32>
    %c0_1 = arith.constant 0 : index
    %c0_2 = arith.constant 0 : index
    %1 = vector.load %arg2[%c0_1, %c0_2] : memref<16x1xf32, #tpu.memory_space<vmem>>, vector<16x1xf32>
    %2 = vector.broadcast %1 : vector<16x1xf32> to vector<16x512xf32>
    %3 = arith.mulf %0, %2 : vector<16x512xf32>
    %c0_3 = arith.constant 0 : index
    %c0_4 = arith.constant 0 : index
    %4 = vector.load %arg3[%c0_3, %c0_4] : memref<16x1xf32, #tpu.memory_space<vmem>>, vector<16x1xf32>
    %5 = vector.broadcast %4 : vector<16x1xf32> to vector<16x512xf32>
    %6 = arith.addf %3, %5 : vector<16x512xf32>
    %cst = arith.constant 0.000000e+00 : f32
    %7 = vector.broadcast %cst : f32 to vector<16x512xf32>
    %8 = arith.maximumf %6, %7 : vector<16x512xf32>
    %c0_5 = arith.constant 0 : index
    %c0_6 = arith.constant 0 : index
    %9 = vector.load %arg4[%c0_5, %c0_6] : memref<16x512xf32, #tpu.memory_space<vmem>>, vector<16x512xf32>
    tpu.vector_store %arg4[%c0_5, %c0_6], %8 {strides = array<i32>} : memref<16x512xf32, #tpu.memory_space<vmem>>, vector<16x512xf32>,
    return
  }
  func.func @transform_0(%arg0: i32) -> (i32, i32) {
    %c0_i32 = arith.constant 0 : i32
    %c0_i32_0 = arith.constant 0 : i32
    return %c0_i32, %arg0 : i32, i32
  }
  func.func @transform_1(%arg0: i32) -> (i32, i32) {
    %c0_i32 = arith.constant 0 : i32
    %c0_i32_0 = arith.constant 0 : i32
    %c0_i32_1 = arith.constant 0 : i32
    return %c0_i32, %c0_i32_0 : i32, i32
  }
  func.func @transform_2(%arg0: i32) -> (i32, i32) {
    %c0_i32 = arith.constant 0 : i32
    %c0_i32_0 = arith.constant 0 : i32
    %c0_i32_1 = arith.constant 0 : i32
    return %c0_i32, %c0_i32_0 : i32, i32
  }
  func.func @transform_3(%arg0: i32) -> (i32, i32) {
    %c0_i32 = arith.constant 0 : i32
    %c0_i32_0 = arith.constant 0 : i32
    return %c0_i32, %arg0 : i32, i32
  }
}

module attributes {stable_mosaic.version = 11 : i64} {
  func.func @_gemm_bias_kernel(%arg0: i32, %arg1: i32, %arg2: memref<16x128xbf16, #tpu.memory_space<vmem>>, %arg3: memref<128x512xbf16, #tpu.memory_space<vmem>>, %arg4: memref<16x1xf32, #tpu.memory_space<vmem>>, %arg5: memref<16x512xf32, #tpu.memory_space<vmem>>, %arg6: memref<16x512xf32, #tpu.memory_space<vmem>>) attributes {dimension_semantics = [#tpu.dimension_semantics<parallel>, #tpu.dimension_semantics<arbitrary>], iteration_bounds = array<i64: 2, 1>, scalar_prefetch = 0 : i64, scratch_operands = 1 : i64, tpu.core_type = #tpu.core_type<tc>, window_params = [{transform_indices = @transform_0, window_bounds = array<i64: 16, 128>}, {transform_indices = @transform_1, window_bounds = array<i64: 128, 512>}, {pipeline_mode = #tpu.pipeline_mode<synchronous>, transform_indices = @transform_2, window_bounds = array<i64: 16, 1>}, {transform_indices = @transform_3, window_bounds = array<i64: 16, 512>}]} {
    %c0_i32 = arith.constant 0 : i32
    %0 = arith.cmpi eq, %arg1, %c0_i32 : i32
    %1 = arith.extui %0 : i1 to i32
    %c0_i32_0 = arith.constant 0 : i32
    %2 = arith.cmpi ne, %1, %c0_i32_0 : i32
    scf.if %2 {
      %cst_10 = arith.constant 0.000000e+00 : f32
      %12 = vector.broadcast %cst_10 : f32 to vector<16x512xf32>
      %c0_11 = arith.constant 0 : index
      %c0_12 = arith.constant 0 : index
      %13 = vector.load %arg6[%c0_11, %c0_12] : memref<16x512xf32, #tpu.memory_space<vmem>>, vector<16x512xf32>
      tpu.vector_store %arg6[%c0_11, %c0_12], %12 {strides = array<i32>} : memref<16x512xf32, #tpu.memory_space<vmem>>, vector<16x512xf32>,
    } else {
    }
    %c0 = arith.constant 0 : index
    %c0_1 = arith.constant 0 : index
    %3 = vector.load %arg6[%c0, %c0_1] : memref<16x512xf32, #tpu.memory_space<vmem>>, vector<16x512xf32>
    %c0_2 = arith.constant 0 : index
    %c0_3 = arith.constant 0 : index
    %4 = vector.load %arg2[%c0_2, %c0_3] : memref<16x128xbf16, #tpu.memory_space<vmem>>, vector<16x128xbf16>
    %c0_4 = arith.constant 0 : index
    %c0_5 = arith.constant 0 : index
    %5 = vector.load %arg3[%c0_4, %c0_5] : memref<128x512xbf16, #tpu.memory_space<vmem>>, vector<128x512xbf16>
    %cst = arith.constant dense<0.000000e+00> : vector<16x512xf32>
    %6 = tpu.matmul %4, %5, %cst {dimension_numbers = #tpu.dot_dimension_numbers<[1], [0], [0], [1], [0, 0, 1, 1], [], []>} : vector<16x128xbf16>, vector<128x512xbf16>, vector<16x512xf32> -> vector<16x512xf32>
    %7 = arith.addf %3, %6 : vector<16x512xf32>
    %c0_6 = arith.constant 0 : index
    %c0_7 = arith.constant 0 : index
    %8 = vector.load %arg6[%c0_6, %c0_7] : memref<16x512xf32, #tpu.memory_space<vmem>>, vector<16x512xf32>
    tpu.vector_store %arg6[%c0_6, %c0_7], %7 {strides = array<i32>} : memref<16x512xf32, #tpu.memory_space<vmem>>, vector<16x512xf32>,
    %c0_i32_8 = arith.constant 0 : i32
    %9 = arith.cmpi eq, %arg1, %c0_i32_8 : i32
    %10 = arith.extui %9 : i1 to i32
    %c0_i32_9 = arith.constant 0 : i32
    %11 = arith.cmpi ne, %10, %c0_i32_9 : i32
    scf.if %11 {
      %c0_10 = arith.constant 0 : index
      %c0_11 = arith.constant 0 : index
      %12 = vector.load %arg6[%c0_10, %c0_11] : memref<16x512xf32, #tpu.memory_space<vmem>>, vector<16x512xf32>
      %c0_12 = arith.constant 0 : index
      %c0_13 = arith.constant 0 : index
      %13 = vector.load %arg4[%c0_12, %c0_13] : memref<16x1xf32, #tpu.memory_space<vmem>>, vector<16x1xf32>
      %14 = vector.broadcast %13 : vector<16x1xf32> to vector<16x512xf32>
      %15 = arith.addf %12, %14 : vector<16x512xf32>
      %c0_14 = arith.constant 0 : index
      %c0_15 = arith.constant 0 : index
      %16 = vector.load %arg5[%c0_14, %c0_15] : memref<16x512xf32, #tpu.memory_space<vmem>>, vector<16x512xf32>
      tpu.vector_store %arg5[%c0_14, %c0_15], %15 {strides = array<i32>} : memref<16x512xf32, #tpu.memory_space<vmem>>, vector<16x512xf32>,
    } else {
    }
    return
  }
  func.func @transform_0(%arg0: i32, %arg1: i32) -> (i32, i32) {
    %c0_i32 = arith.constant 0 : i32
    %c0_i32_0 = arith.constant 0 : i32
    return %c0_i32, %arg1 : i32, i32
  }
  func.func @transform_1(%arg0: i32, %arg1: i32) -> (i32, i32) {
    %c0_i32 = arith.constant 0 : i32
    return %arg1, %arg0 : i32, i32
  }
  func.func @transform_2(%arg0: i32, %arg1: i32) -> (i32, i32) {
    %c0_i32 = arith.constant 0 : i32
    %c0_i32_0 = arith.constant 0 : i32
    %c0_i32_1 = arith.constant 0 : i32
    return %c0_i32, %c0_i32_0 : i32, i32
  }
  func.func @transform_3(%arg0: i32, %arg1: i32) -> (i32, i32) {
    %c0_i32 = arith.constant 0 : i32
    %c0_i32_0 = arith.constant 0 : i32
    return %c0_i32, %arg0 : i32, i32
  }
}

module attributes {stable_mosaic.version = 11 : i64} {
  func.func @_bn_act_kernel(%arg0: i32, %arg1: memref<8x512xf32, #tpu.memory_space<vmem>>, %arg2: memref<8x1xf32, #tpu.memory_space<vmem>>, %arg3: memref<8x1xf32, #tpu.memory_space<vmem>>, %arg4: memref<8x512xf32, #tpu.memory_space<vmem>>) attributes {dimension_semantics = [#tpu.dimension_semantics<parallel>], iteration_bounds = array<i64: 2>, scalar_prefetch = 0 : i64, scratch_operands = 0 : i64, tpu.core_type = #tpu.core_type<tc>, window_params = [{transform_indices = @transform_0, window_bounds = array<i64: 8, 512>}, {pipeline_mode = #tpu.pipeline_mode<synchronous>, transform_indices = @transform_1, window_bounds = array<i64: 8, 1>}, {pipeline_mode = #tpu.pipeline_mode<synchronous>, transform_indices = @transform_2, window_bounds = array<i64: 8, 1>}, {transform_indices = @transform_3, window_bounds = array<i64: 8, 512>}]} {
    %c0 = arith.constant 0 : index
    %c0_0 = arith.constant 0 : index
    %0 = vector.load %arg1[%c0, %c0_0] : memref<8x512xf32, #tpu.memory_space<vmem>>, vector<8x512xf32>
    %c0_1 = arith.constant 0 : index
    %c0_2 = arith.constant 0 : index
    %1 = vector.load %arg2[%c0_1, %c0_2] : memref<8x1xf32, #tpu.memory_space<vmem>>, vector<8x1xf32>
    %2 = vector.broadcast %1 : vector<8x1xf32> to vector<8x512xf32>
    %3 = arith.mulf %0, %2 : vector<8x512xf32>
    %c0_3 = arith.constant 0 : index
    %c0_4 = arith.constant 0 : index
    %4 = vector.load %arg3[%c0_3, %c0_4] : memref<8x1xf32, #tpu.memory_space<vmem>>, vector<8x1xf32>
    %5 = vector.broadcast %4 : vector<8x1xf32> to vector<8x512xf32>
    %6 = arith.addf %3, %5 : vector<8x512xf32>
    %c0_5 = arith.constant 0 : index
    %c0_6 = arith.constant 0 : index
    %7 = vector.load %arg4[%c0_5, %c0_6] : memref<8x512xf32, #tpu.memory_space<vmem>>, vector<8x512xf32>
    tpu.vector_store %arg4[%c0_5, %c0_6], %6 {strides = array<i32>} : memref<8x512xf32, #tpu.memory_space<vmem>>, vector<8x512xf32>,
    return
  }
  func.func @transform_0(%arg0: i32) -> (i32, i32) {
    %c0_i32 = arith.constant 0 : i32
    %c0_i32_0 = arith.constant 0 : i32
    return %c0_i32, %arg0 : i32, i32
  }
  func.func @transform_1(%arg0: i32) -> (i32, i32) {
    %c0_i32 = arith.constant 0 : i32
    %c0_i32_0 = arith.constant 0 : i32
    %c0_i32_1 = arith.constant 0 : i32
    return %c0_i32, %c0_i32_0 : i32, i32
  }
  func.func @transform_2(%arg0: i32) -> (i32, i32) {
    %c0_i32 = arith.constant 0 : i32
    %c0_i32_0 = arith.constant 0 : i32
    %c0_i32_1 = arith.constant 0 : i32
    return %c0_i32, %c0_i32_0 : i32, i32
  }
  func.func @transform_3(%arg0: i32) -> (i32, i32) {
    %c0_i32 = arith.constant 0 : i32
    %c0_i32_0 = arith.constant 0 : i32
    return %c0_i32, %arg0 : i32, i32
  }
}

module attributes {stable_mosaic.version = 11 : i64} {
  func.func @_gemm_bias_kernel(%arg0: i32, %arg1: i32, %arg2: memref<16x256xbf16, #tpu.memory_space<vmem>>, %arg3: memref<256x512xbf16, #tpu.memory_space<vmem>>, %arg4: memref<16x1xf32, #tpu.memory_space<vmem>>, %arg5: memref<16x512xf32, #tpu.memory_space<vmem>>, %arg6: memref<16x512xf32, #tpu.memory_space<vmem>>) attributes {dimension_semantics = [#tpu.dimension_semantics<parallel>, #tpu.dimension_semantics<arbitrary>], iteration_bounds = array<i64: 2, 1>, scalar_prefetch = 0 : i64, scratch_operands = 1 : i64, tpu.core_type = #tpu.core_type<tc>, window_params = [{transform_indices = @transform_0, window_bounds = array<i64: 16, 256>}, {transform_indices = @transform_1, window_bounds = array<i64: 256, 512>}, {pipeline_mode = #tpu.pipeline_mode<synchronous>, transform_indices = @transform_2, window_bounds = array<i64: 16, 1>}, {transform_indices = @transform_3, window_bounds = array<i64: 16, 512>}]} {
    %c0_i32 = arith.constant 0 : i32
    %0 = arith.cmpi eq, %arg1, %c0_i32 : i32
    %1 = arith.extui %0 : i1 to i32
    %c0_i32_0 = arith.constant 0 : i32
    %2 = arith.cmpi ne, %1, %c0_i32_0 : i32
    scf.if %2 {
      %cst_10 = arith.constant 0.000000e+00 : f32
      %12 = vector.broadcast %cst_10 : f32 to vector<16x512xf32>
      %c0_11 = arith.constant 0 : index
      %c0_12 = arith.constant 0 : index
      %13 = vector.load %arg6[%c0_11, %c0_12] : memref<16x512xf32, #tpu.memory_space<vmem>>, vector<16x512xf32>
      tpu.vector_store %arg6[%c0_11, %c0_12], %12 {strides = array<i32>} : memref<16x512xf32, #tpu.memory_space<vmem>>, vector<16x512xf32>,
    } else {
    }
    %c0 = arith.constant 0 : index
    %c0_1 = arith.constant 0 : index
    %3 = vector.load %arg6[%c0, %c0_1] : memref<16x512xf32, #tpu.memory_space<vmem>>, vector<16x512xf32>
    %c0_2 = arith.constant 0 : index
    %c0_3 = arith.constant 0 : index
    %4 = vector.load %arg2[%c0_2, %c0_3] : memref<16x256xbf16, #tpu.memory_space<vmem>>, vector<16x256xbf16>
    %c0_4 = arith.constant 0 : index
    %c0_5 = arith.constant 0 : index
    %5 = vector.load %arg3[%c0_4, %c0_5] : memref<256x512xbf16, #tpu.memory_space<vmem>>, vector<256x512xbf16>
    %cst = arith.constant dense<0.000000e+00> : vector<16x512xf32>
    %6 = tpu.matmul %4, %5, %cst {dimension_numbers = #tpu.dot_dimension_numbers<[1], [0], [0], [1], [0, 0, 1, 1], [], []>} : vector<16x256xbf16>, vector<256x512xbf16>, vector<16x512xf32> -> vector<16x512xf32>
    %7 = arith.addf %3, %6 : vector<16x512xf32>
    %c0_6 = arith.constant 0 : index
    %c0_7 = arith.constant 0 : index
    %8 = vector.load %arg6[%c0_6, %c0_7] : memref<16x512xf32, #tpu.memory_space<vmem>>, vector<16x512xf32>
    tpu.vector_store %arg6[%c0_6, %c0_7], %7 {strides = array<i32>} : memref<16x512xf32, #tpu.memory_space<vmem>>, vector<16x512xf32>,
    %c0_i32_8 = arith.constant 0 : i32
    %9 = arith.cmpi eq, %arg1, %c0_i32_8 : i32
    %10 = arith.extui %9 : i1 to i32
    %c0_i32_9 = arith.constant 0 : i32
    %11 = arith.cmpi ne, %10, %c0_i32_9 : i32
    scf.if %11 {
      %c0_10 = arith.constant 0 : index
      %c0_11 = arith.constant 0 : index
      %12 = vector.load %arg6[%c0_10, %c0_11] : memref<16x512xf32, #tpu.memory_space<vmem>>, vector<16x512xf32>
      %c0_12 = arith.constant 0 : index
      %c0_13 = arith.constant 0 : index
      %13 = vector.load %arg4[%c0_12, %c0_13] : memref<16x1xf32, #tpu.memory_space<vmem>>, vector<16x1xf32>
      %14 = vector.broadcast %13 : vector<16x1xf32> to vector<16x512xf32>
      %15 = arith.addf %12, %14 : vector<16x512xf32>
      %c0_14 = arith.constant 0 : index
      %c0_15 = arith.constant 0 : index
      %16 = vector.load %arg5[%c0_14, %c0_15] : memref<16x512xf32, #tpu.memory_space<vmem>>, vector<16x512xf32>
      tpu.vector_store %arg5[%c0_14, %c0_15], %15 {strides = array<i32>} : memref<16x512xf32, #tpu.memory_space<vmem>>, vector<16x512xf32>,
    } else {
    }
    return
  }
  func.func @transform_0(%arg0: i32, %arg1: i32) -> (i32, i32) {
    %c0_i32 = arith.constant 0 : i32
    %c0_i32_0 = arith.constant 0 : i32
    return %c0_i32, %arg1 : i32, i32
  }
  func.func @transform_1(%arg0: i32, %arg1: i32) -> (i32, i32) {
    %c0_i32 = arith.constant 0 : i32
    return %arg1, %arg0 : i32, i32
  }
  func.func @transform_2(%arg0: i32, %arg1: i32) -> (i32, i32) {
    %c0_i32 = arith.constant 0 : i32
    %c0_i32_0 = arith.constant 0 : i32
    %c0_i32_1 = arith.constant 0 : i32
    return %c0_i32, %c0_i32_0 : i32, i32
  }
  func.func @transform_3(%arg0: i32, %arg1: i32) -> (i32, i32) {
    %c0_i32 = arith.constant 0 : i32
    %c0_i32_0 = arith.constant 0 : i32
    return %c0_i32, %arg0 : i32, i32
  }
}

module attributes {stable_mosaic.version = 11 : i64} {
  func.func @_bn_act_kernel(%arg0: i32, %arg1: memref<128x128xf32, #tpu.memory_space<vmem>>, %arg2: memref<128x1xf32, #tpu.memory_space<vmem>>, %arg3: memref<128x1xf32, #tpu.memory_space<vmem>>, %arg4: memref<128x128xf32, #tpu.memory_space<vmem>>) attributes {dimension_semantics = [#tpu.dimension_semantics<parallel>], iteration_bounds = array<i64: 1>, scalar_prefetch = 0 : i64, scratch_operands = 0 : i64, tpu.core_type = #tpu.core_type<tc>, window_params = [{transform_indices = @transform_0, window_bounds = array<i64: 128, 128>}, {pipeline_mode = #tpu.pipeline_mode<synchronous>, transform_indices = @transform_1, window_bounds = array<i64: 128, 1>}, {pipeline_mode = #tpu.pipeline_mode<synchronous>, transform_indices = @transform_2, window_bounds = array<i64: 128, 1>}, {transform_indices = @transform_3, window_bounds = array<i64: 128, 128>}]} {
    %c0 = arith.constant 0 : index
    %c0_0 = arith.constant 0 : index
    %0 = vector.load %arg1[%c0, %c0_0] : memref<128x128xf32, #tpu.memory_space<vmem>>, vector<128x128xf32>
    %c0_1 = arith.constant 0 : index
    %c0_2 = arith.constant 0 : index
    %1 = vector.load %arg2[%c0_1, %c0_2] : memref<128x1xf32, #tpu.memory_space<vmem>>, vector<128x1xf32>
    %2 = vector.broadcast %1 : vector<128x1xf32> to vector<128x128xf32>
    %3 = arith.mulf %0, %2 : vector<128x128xf32>
    %c0_3 = arith.constant 0 : index
    %c0_4 = arith.constant 0 : index
    %4 = vector.load %arg3[%c0_3, %c0_4] : memref<128x1xf32, #tpu.memory_space<vmem>>, vector<128x1xf32>
    %5 = vector.broadcast %4 : vector<128x1xf32> to vector<128x128xf32>
    %6 = arith.addf %3, %5 : vector<128x128xf32>
    %cst = arith.constant 0.000000e+00 : f32
    %7 = vector.broadcast %cst : f32 to vector<128x128xf32>
    %8 = arith.maximumf %6, %7 : vector<128x128xf32>
    %c0_5 = arith.constant 0 : index
    %c0_6 = arith.constant 0 : index
    %9 = vector.load %arg4[%c0_5, %c0_6] : memref<128x128xf32, #tpu.memory_space<vmem>>, vector<128x128xf32>
    tpu.vector_store %arg4[%c0_5, %c0_6], %8 {strides = array<i32>} : memref<128x128xf32, #tpu.memory_space<vmem>>, vector<128x128xf32>,
    return
  }
  func.func @transform_0(%arg0: i32) -> (i32, i32) {
    %c0_i32 = arith.constant 0 : i32
    %c0_i32_0 = arith.constant 0 : i32
    return %c0_i32, %arg0 : i32, i32
  }
  func.func @transform_1(%arg0: i32) -> (i32, i32) {
    %c0_i32 = arith.constant 0 : i32
    %c0_i32_0 = arith.constant 0 : i32
    %c0_i32_1 = arith.constant 0 : i32
    return %c0_i32, %c0_i32_0 : i32, i32
  }
  func.func @transform_2(%arg0: i32) -> (i32, i32) {
    %c0_i32 = arith.constant 0 : i32
    %c0_i32_0 = arith.constant 0 : i32
    %c0_i32_1 = arith.constant 0 : i32
    return %c0_i32, %c0_i32_0 : i32, i32
  }
  func.func @transform_3(%arg0: i32) -> (i32, i32) {
    %c0_i32 = arith.constant 0 : i32
    %c0_i32_0 = arith.constant 0 : i32
    return %c0_i32, %arg0 : i32, i32
  }
}

module attributes {stable_mosaic.version = 11 : i64} {
  func.func @_gemm_bias_kernel(%arg0: i32, %arg1: i32, %arg2: memref<16x512xbf16, #tpu.memory_space<vmem>>, %arg3: memref<512x128xbf16, #tpu.memory_space<vmem>>, %arg4: memref<16x1xf32, #tpu.memory_space<vmem>>, %arg5: memref<16x128xf32, #tpu.memory_space<vmem>>, %arg6: memref<16x128xf32, #tpu.memory_space<vmem>>) attributes {dimension_semantics = [#tpu.dimension_semantics<parallel>, #tpu.dimension_semantics<arbitrary>], iteration_bounds = array<i64: 1, 7>, scalar_prefetch = 0 : i64, scratch_operands = 1 : i64, tpu.core_type = #tpu.core_type<tc>, window_params = [{transform_indices = @transform_0, window_bounds = array<i64: 16, 512>}, {transform_indices = @transform_1, window_bounds = array<i64: 512, 128>}, {pipeline_mode = #tpu.pipeline_mode<synchronous>, transform_indices = @transform_2, window_bounds = array<i64: 16, 1>}, {transform_indices = @transform_3, window_bounds = array<i64: 16, 128>}]} {
    %c0_i32 = arith.constant 0 : i32
    %0 = arith.cmpi eq, %arg1, %c0_i32 : i32
    %1 = arith.extui %0 : i1 to i32
    %c0_i32_0 = arith.constant 0 : i32
    %2 = arith.cmpi ne, %1, %c0_i32_0 : i32
    scf.if %2 {
      %cst_9 = arith.constant 0.000000e+00 : f32
      %12 = vector.broadcast %cst_9 : f32 to vector<16x128xf32>
      %c0_10 = arith.constant 0 : index
      %c0_11 = arith.constant 0 : index
      %13 = vector.load %arg6[%c0_10, %c0_11] : memref<16x128xf32, #tpu.memory_space<vmem>>, vector<16x128xf32>
      tpu.vector_store %arg6[%c0_10, %c0_11], %12 {strides = array<i32>} : memref<16x128xf32, #tpu.memory_space<vmem>>, vector<16x128xf32>,
    } else {
    }
    %c0 = arith.constant 0 : index
    %c0_1 = arith.constant 0 : index
    %3 = vector.load %arg6[%c0, %c0_1] : memref<16x128xf32, #tpu.memory_space<vmem>>, vector<16x128xf32>
    %c0_2 = arith.constant 0 : index
    %c0_3 = arith.constant 0 : index
    %4 = vector.load %arg2[%c0_2, %c0_3] : memref<16x512xbf16, #tpu.memory_space<vmem>>, vector<16x512xbf16>
    %c0_4 = arith.constant 0 : index
    %c0_5 = arith.constant 0 : index
    %5 = vector.load %arg3[%c0_4, %c0_5] : memref<512x128xbf16, #tpu.memory_space<vmem>>, vector<512x128xbf16>
    %cst = arith.constant dense<0.000000e+00> : vector<16x128xf32>
    %6 = tpu.matmul %4, %5, %cst {dimension_numbers = #tpu.dot_dimension_numbers<[1], [0], [0], [1], [0, 0, 1, 1], [], []>} : vector<16x512xbf16>, vector<512x128xbf16>, vector<16x128xf32> -> vector<16x128xf32>
    %7 = arith.addf %3, %6 : vector<16x128xf32>
    %c0_6 = arith.constant 0 : index
    %c0_7 = arith.constant 0 : index
    %8 = vector.load %arg6[%c0_6, %c0_7] : memref<16x128xf32, #tpu.memory_space<vmem>>, vector<16x128xf32>
    tpu.vector_store %arg6[%c0_6, %c0_7], %7 {strides = array<i32>} : memref<16x128xf32, #tpu.memory_space<vmem>>, vector<16x128xf32>,
    %c6_i32 = arith.constant 6 : i32
    %9 = arith.cmpi eq, %arg1, %c6_i32 : i32
    %10 = arith.extui %9 : i1 to i32
    %c0_i32_8 = arith.constant 0 : i32
    %11 = arith.cmpi ne, %10, %c0_i32_8 : i32
    scf.if %11 {
      %c0_9 = arith.constant 0 : index
      %c0_10 = arith.constant 0 : index
      %12 = vector.load %arg6[%c0_9, %c0_10] : memref<16x128xf32, #tpu.memory_space<vmem>>, vector<16x128xf32>
      %c0_11 = arith.constant 0 : index
      %c0_12 = arith.constant 0 : index
      %13 = vector.load %arg4[%c0_11, %c0_12] : memref<16x1xf32, #tpu.memory_space<vmem>>, vector<16x1xf32>
      %14 = vector.broadcast %13 : vector<16x1xf32> to vector<16x128xf32>
      %15 = arith.addf %12, %14 : vector<16x128xf32>
      %c0_13 = arith.constant 0 : index
      %c0_14 = arith.constant 0 : index
      %16 = vector.load %arg5[%c0_13, %c0_14] : memref<16x128xf32, #tpu.memory_space<vmem>>, vector<16x128xf32>
      tpu.vector_store %arg5[%c0_13, %c0_14], %15 {strides = array<i32>} : memref<16x128xf32, #tpu.memory_space<vmem>>, vector<16x128xf32>,
    } else {
    }
    return
  }
  func.func @transform_0(%arg0: i32, %arg1: i32) -> (i32, i32) {
    %c0_i32 = arith.constant 0 : i32
    %c0_i32_0 = arith.constant 0 : i32
    return %c0_i32, %arg1 : i32, i32
  }
  func.func @transform_1(%arg0: i32, %arg1: i32) -> (i32, i32) {
    %c0_i32 = arith.constant 0 : i32
    return %arg1, %arg0 : i32, i32
  }
  func.func @transform_2(%arg0: i32, %arg1: i32) -> (i32, i32) {
    %c0_i32 = arith.constant 0 : i32
    %c0_i32_0 = arith.constant 0 : i32
    %c0_i32_1 = arith.constant 0 : i32
    return %c0_i32, %c0_i32_0 : i32, i32
  }
  func.func @transform_3(%arg0: i32, %arg1: i32) -> (i32, i32) {
    %c0_i32 = arith.constant 0 : i32
    %c0_i32_0 = arith.constant 0 : i32
    return %c0_i32, %arg0 : i32, i32
  }
}

module attributes {stable_mosaic.version = 11 : i64} {
  func.func @_bn_act_kernel(%arg0: i32, %arg1: memref<16x128xf32, #tpu.memory_space<vmem>>, %arg2: memref<16x1xf32, #tpu.memory_space<vmem>>, %arg3: memref<16x1xf32, #tpu.memory_space<vmem>>, %arg4: memref<16x128xf32, #tpu.memory_space<vmem>>) attributes {dimension_semantics = [#tpu.dimension_semantics<parallel>], iteration_bounds = array<i64: 1>, scalar_prefetch = 0 : i64, scratch_operands = 0 : i64, tpu.core_type = #tpu.core_type<tc>, window_params = [{transform_indices = @transform_0, window_bounds = array<i64: 16, 128>}, {pipeline_mode = #tpu.pipeline_mode<synchronous>, transform_indices = @transform_1, window_bounds = array<i64: 16, 1>}, {pipeline_mode = #tpu.pipeline_mode<synchronous>, transform_indices = @transform_2, window_bounds = array<i64: 16, 1>}, {transform_indices = @transform_3, window_bounds = array<i64: 16, 128>}]} {
    %c0 = arith.constant 0 : index
    %c0_0 = arith.constant 0 : index
    %0 = vector.load %arg1[%c0, %c0_0] : memref<16x128xf32, #tpu.memory_space<vmem>>, vector<16x128xf32>
    %c0_1 = arith.constant 0 : index
    %c0_2 = arith.constant 0 : index
    %1 = vector.load %arg2[%c0_1, %c0_2] : memref<16x1xf32, #tpu.memory_space<vmem>>, vector<16x1xf32>
    %2 = vector.broadcast %1 : vector<16x1xf32> to vector<16x128xf32>
    %3 = arith.mulf %0, %2 : vector<16x128xf32>
    %c0_3 = arith.constant 0 : index
    %c0_4 = arith.constant 0 : index
    %4 = vector.load %arg3[%c0_3, %c0_4] : memref<16x1xf32, #tpu.memory_space<vmem>>, vector<16x1xf32>
    %5 = vector.broadcast %4 : vector<16x1xf32> to vector<16x128xf32>
    %6 = arith.addf %3, %5 : vector<16x128xf32>
    %c0_5 = arith.constant 0 : index
    %c0_6 = arith.constant 0 : index
    %7 = vector.load %arg4[%c0_5, %c0_6] : memref<16x128xf32, #tpu.memory_space<vmem>>, vector<16x128xf32>
    tpu.vector_store %arg4[%c0_5, %c0_6], %6 {strides = array<i32>} : memref<16x128xf32, #tpu.memory_space<vmem>>, vector<16x128xf32>,
    return
  }
  func.func @transform_0(%arg0: i32) -> (i32, i32) {
    %c0_i32 = arith.constant 0 : i32
    %c0_i32_0 = arith.constant 0 : i32
    return %c0_i32, %arg0 : i32, i32
  }
  func.func @transform_1(%arg0: i32) -> (i32, i32) {
    %c0_i32 = arith.constant 0 : i32
    %c0_i32_0 = arith.constant 0 : i32
    %c0_i32_1 = arith.constant 0 : i32
    return %c0_i32, %c0_i32_0 : i32, i32
  }
  func.func @transform_2(%arg0: i32) -> (i32, i32) {
    %c0_i32 = arith.constant 0 : i32
    %c0_i32_0 = arith.constant 0 : i32
    %c0_i32_1 = arith.constant 0 : i32
    return %c0_i32, %c0_i32_0 : i32, i32
  }
  func.func @transform_3(%arg0: i32) -> (i32, i32) {
    %c0_i32 = arith.constant 0 : i32
    %c0_i32_0 = arith.constant 0 : i32
    return %c0_i32, %arg0 : i32, i32
  }
}

module attributes {stable_mosaic.version = 11 : i64} {
  func.func @_gemm_bias_kernel(%arg0: i32, %arg1: i32, %arg2: memref<16x128xbf16, #tpu.memory_space<vmem>>, %arg3: memref<128x128xbf16, #tpu.memory_space<vmem>>, %arg4: memref<16x1xf32, #tpu.memory_space<vmem>>, %arg5: memref<16x128xf32, #tpu.memory_space<vmem>>, %arg6: memref<16x128xf32, #tpu.memory_space<vmem>>) attributes {dimension_semantics = [#tpu.dimension_semantics<parallel>, #tpu.dimension_semantics<arbitrary>], iteration_bounds = array<i64: 1, 1>, scalar_prefetch = 0 : i64, scratch_operands = 1 : i64, tpu.core_type = #tpu.core_type<tc>, window_params = [{transform_indices = @transform_0, window_bounds = array<i64: 16, 128>}, {transform_indices = @transform_1, window_bounds = array<i64: 128, 128>}, {pipeline_mode = #tpu.pipeline_mode<synchronous>, transform_indices = @transform_2, window_bounds = array<i64: 16, 1>}, {transform_indices = @transform_3, window_bounds = array<i64: 16, 128>}]} {
    %c0_i32 = arith.constant 0 : i32
    %0 = arith.cmpi eq, %arg1, %c0_i32 : i32
    %1 = arith.extui %0 : i1 to i32
    %c0_i32_0 = arith.constant 0 : i32
    %2 = arith.cmpi ne, %1, %c0_i32_0 : i32
    scf.if %2 {
      %cst_10 = arith.constant 0.000000e+00 : f32
      %12 = vector.broadcast %cst_10 : f32 to vector<16x128xf32>
      %c0_11 = arith.constant 0 : index
      %c0_12 = arith.constant 0 : index
      %13 = vector.load %arg6[%c0_11, %c0_12] : memref<16x128xf32, #tpu.memory_space<vmem>>, vector<16x128xf32>
      tpu.vector_store %arg6[%c0_11, %c0_12], %12 {strides = array<i32>} : memref<16x128xf32, #tpu.memory_space<vmem>>, vector<16x128xf32>,
    } else {
    }
    %c0 = arith.constant 0 : index
    %c0_1 = arith.constant 0 : index
    %3 = vector.load %arg6[%c0, %c0_1] : memref<16x128xf32, #tpu.memory_space<vmem>>, vector<16x128xf32>
    %c0_2 = arith.constant 0 : index
    %c0_3 = arith.constant 0 : index
    %4 = vector.load %arg2[%c0_2, %c0_3] : memref<16x128xbf16, #tpu.memory_space<vmem>>, vector<16x128xbf16>
    %c0_4 = arith.constant 0 : index
    %c0_5 = arith.constant 0 : index
    %5 = vector.load %arg3[%c0_4, %c0_5] : memref<128x128xbf16, #tpu.memory_space<vmem>>, vector<128x128xbf16>
    %cst = arith.constant dense<0.000000e+00> : vector<16x128xf32>
    %6 = tpu.matmul %4, %5, %cst {dimension_numbers = #tpu.dot_dimension_numbers<[1], [0], [0], [1], [0, 0, 1, 1], [], []>} : vector<16x128xbf16>, vector<128x128xbf16>, vector<16x128xf32> -> vector<16x128xf32>
    %7 = arith.addf %3, %6 : vector<16x128xf32>
    %c0_6 = arith.constant 0 : index
    %c0_7 = arith.constant 0 : index
    %8 = vector.load %arg6[%c0_6, %c0_7] : memref<16x128xf32, #tpu.memory_space<vmem>>, vector<16x128xf32>
    tpu.vector_store %arg6[%c0_6, %c0_7], %7 {strides = array<i32>} : memref<16x128xf32, #tpu.memory_space<vmem>>, vector<16x128xf32>,
    %c0_i32_8 = arith.constant 0 : i32
    %9 = arith.cmpi eq, %arg1, %c0_i32_8 : i32
    %10 = arith.extui %9 : i1 to i32
    %c0_i32_9 = arith.constant 0 : i32
    %11 = arith.cmpi ne, %10, %c0_i32_9 : i32
    scf.if %11 {
      %c0_10 = arith.constant 0 : index
      %c0_11 = arith.constant 0 : index
      %12 = vector.load %arg6[%c0_10, %c0_11] : memref<16x128xf32, #tpu.memory_space<vmem>>, vector<16x128xf32>
      %c0_12 = arith.constant 0 : index
      %c0_13 = arith.constant 0 : index
      %13 = vector.load %arg4[%c0_12, %c0_13] : memref<16x1xf32, #tpu.memory_space<vmem>>, vector<16x1xf32>
      %14 = vector.broadcast %13 : vector<16x1xf32> to vector<16x128xf32>
      %15 = arith.addf %12, %14 : vector<16x128xf32>
      %c0_14 = arith.constant 0 : index
      %c0_15 = arith.constant 0 : index
      %16 = vector.load %arg5[%c0_14, %c0_15] : memref<16x128xf32, #tpu.memory_space<vmem>>, vector<16x128xf32>
      tpu.vector_store %arg5[%c0_14, %c0_15], %15 {strides = array<i32>} : memref<16x128xf32, #tpu.memory_space<vmem>>, vector<16x128xf32>,
    } else {
    }
    return
  }
  func.func @transform_0(%arg0: i32, %arg1: i32) -> (i32, i32) {
    %c0_i32 = arith.constant 0 : i32
    %c0_i32_0 = arith.constant 0 : i32
    return %c0_i32, %arg1 : i32, i32
  }
  func.func @transform_1(%arg0: i32, %arg1: i32) -> (i32, i32) {
    %c0_i32 = arith.constant 0 : i32
    return %arg1, %arg0 : i32, i32
  }
  func.func @transform_2(%arg0: i32, %arg1: i32) -> (i32, i32) {
    %c0_i32 = arith.constant 0 : i32
    %c0_i32_0 = arith.constant 0 : i32
    %c0_i32_1 = arith.constant 0 : i32
    return %c0_i32, %c0_i32_0 : i32, i32
  }
  func.func @transform_3(%arg0: i32, %arg1: i32) -> (i32, i32) {
    %c0_i32 = arith.constant 0 : i32
    %c0_i32_0 = arith.constant 0 : i32
    return %c0_i32, %arg0 : i32, i32
  }
}

module attributes {stable_mosaic.version = 11 : i64} {
  func.func @_bn_act_res_kernel(%arg0: i32, %arg1: memref<16x128xf32, #tpu.memory_space<vmem>>, %arg2: memref<16x1xf32, #tpu.memory_space<vmem>>, %arg3: memref<16x1xf32, #tpu.memory_space<vmem>>, %arg4: memref<16x128xf32, #tpu.memory_space<vmem>>, %arg5: memref<16x128xf32, #tpu.memory_space<vmem>>) attributes {dimension_semantics = [#tpu.dimension_semantics<parallel>], iteration_bounds = array<i64: 1>, scalar_prefetch = 0 : i64, scratch_operands = 0 : i64, tpu.core_type = #tpu.core_type<tc>, window_params = [{transform_indices = @transform_0, window_bounds = array<i64: 16, 128>}, {pipeline_mode = #tpu.pipeline_mode<synchronous>, transform_indices = @transform_1, window_bounds = array<i64: 16, 1>}, {pipeline_mode = #tpu.pipeline_mode<synchronous>, transform_indices = @transform_2, window_bounds = array<i64: 16, 1>}, {transform_indices = @transform_3, window_bounds = array<i64: 16, 128>}, {transform_indices = @transform_4, window_bounds = array<i64: 16, 128>}]} {
    %c0 = arith.constant 0 : index
    %c0_0 = arith.constant 0 : index
    %0 = vector.load %arg1[%c0, %c0_0] : memref<16x128xf32, #tpu.memory_space<vmem>>, vector<16x128xf32>
    %c0_1 = arith.constant 0 : index
    %c0_2 = arith.constant 0 : index
    %1 = vector.load %arg2[%c0_1, %c0_2] : memref<16x1xf32, #tpu.memory_space<vmem>>, vector<16x1xf32>
    %2 = vector.broadcast %1 : vector<16x1xf32> to vector<16x128xf32>
    %3 = arith.mulf %0, %2 : vector<16x128xf32>
    %c0_3 = arith.constant 0 : index
    %c0_4 = arith.constant 0 : index
    %4 = vector.load %arg3[%c0_3, %c0_4] : memref<16x1xf32, #tpu.memory_space<vmem>>, vector<16x1xf32>
    %5 = vector.broadcast %4 : vector<16x1xf32> to vector<16x128xf32>
    %6 = arith.addf %3, %5 : vector<16x128xf32>
    %c0_5 = arith.constant 0 : index
    %c0_6 = arith.constant 0 : index
    %7 = vector.load %arg4[%c0_5, %c0_6] : memref<16x128xf32, #tpu.memory_space<vmem>>, vector<16x128xf32>
    %8 = arith.addf %6, %7 : vector<16x128xf32>
    %cst = arith.constant 0.000000e+00 : f32
    %9 = vector.broadcast %cst : f32 to vector<16x128xf32>
    %10 = arith.maximumf %8, %9 : vector<16x128xf32>
    %c0_7 = arith.constant 0 : index
    %c0_8 = arith.constant 0 : index
    %11 = vector.load %arg5[%c0_7, %c0_8] : memref<16x128xf32, #tpu.memory_space<vmem>>, vector<16x128xf32>
    tpu.vector_store %arg5[%c0_7, %c0_8], %10 {strides = array<i32>} : memref<16x128xf32, #tpu.memory_space<vmem>>, vector<16x128xf32>,
    return
  }
  func.func @transform_0(%arg0: i32) -> (i32, i32) {
    %c0_i32 = arith.constant 0 : i32
    %c0_i32_0 = arith.constant 0 : i32
    return %c0_i32, %arg0 : i32, i32
  }
  func.func @transform_1(%arg0: i32) -> (i32, i32) {
    %c0_i32 = arith.constant 0 : i32
    %c0_i32_0 = arith.constant 0 : i32
    %c0_i32_1 = arith.constant 0 : i32
    return %c0_i32, %c0_i32_0 : i32, i32
  }
  func.func @transform_2(%arg0: i32) -> (i32, i32) {
    %c0_i32 = arith.constant 0 : i32
    %c0_i32_0 = arith.constant 0 : i32
    %c0_i32_1 = arith.constant 0 : i32
    return %c0_i32, %c0_i32_0 : i32, i32
  }
  func.func @transform_3(%arg0: i32) -> (i32, i32) {
    %c0_i32 = arith.constant 0 : i32
    %c0_i32_0 = arith.constant 0 : i32
    return %c0_i32, %arg0 : i32, i32
  }
  func.func @transform_4(%arg0: i32) -> (i32, i32) {
    %c0_i32 = arith.constant 0 : i32
    %c0_i32_0 = arith.constant 0 : i32
    return %c0_i32, %arg0 : i32, i32
  }
}

module attributes {stable_mosaic.version = 11 : i64} {
  func.func @_gemm_bias_kernel(%arg0: i32, %arg1: i32, %arg2: memref<16x512xbf16, #tpu.memory_space<vmem>>, %arg3: memref<512x128xbf16, #tpu.memory_space<vmem>>, %arg4: memref<16x1xf32, #tpu.memory_space<vmem>>, %arg5: memref<16x128xf32, #tpu.memory_space<vmem>>, %arg6: memref<16x128xf32, #tpu.memory_space<vmem>>) attributes {dimension_semantics = [#tpu.dimension_semantics<parallel>, #tpu.dimension_semantics<arbitrary>], iteration_bounds = array<i64: 1, 1>, scalar_prefetch = 0 : i64, scratch_operands = 1 : i64, tpu.core_type = #tpu.core_type<tc>, window_params = [{transform_indices = @transform_0, window_bounds = array<i64: 16, 512>}, {transform_indices = @transform_1, window_bounds = array<i64: 512, 128>}, {pipeline_mode = #tpu.pipeline_mode<synchronous>, transform_indices = @transform_2, window_bounds = array<i64: 16, 1>}, {transform_indices = @transform_3, window_bounds = array<i64: 16, 128>}]} {
    %c0_i32 = arith.constant 0 : i32
    %0 = arith.cmpi eq, %arg1, %c0_i32 : i32
    %1 = arith.extui %0 : i1 to i32
    %c0_i32_0 = arith.constant 0 : i32
    %2 = arith.cmpi ne, %1, %c0_i32_0 : i32
    scf.if %2 {
      %cst_10 = arith.constant 0.000000e+00 : f32
      %12 = vector.broadcast %cst_10 : f32 to vector<16x128xf32>
      %c0_11 = arith.constant 0 : index
      %c0_12 = arith.constant 0 : index
      %13 = vector.load %arg6[%c0_11, %c0_12] : memref<16x128xf32, #tpu.memory_space<vmem>>, vector<16x128xf32>
      tpu.vector_store %arg6[%c0_11, %c0_12], %12 {strides = array<i32>} : memref<16x128xf32, #tpu.memory_space<vmem>>, vector<16x128xf32>,
    } else {
    }
    %c0 = arith.constant 0 : index
    %c0_1 = arith.constant 0 : index
    %3 = vector.load %arg6[%c0, %c0_1] : memref<16x128xf32, #tpu.memory_space<vmem>>, vector<16x128xf32>
    %c0_2 = arith.constant 0 : index
    %c0_3 = arith.constant 0 : index
    %4 = vector.load %arg2[%c0_2, %c0_3] : memref<16x512xbf16, #tpu.memory_space<vmem>>, vector<16x512xbf16>
    %c0_4 = arith.constant 0 : index
    %c0_5 = arith.constant 0 : index
    %5 = vector.load %arg3[%c0_4, %c0_5] : memref<512x128xbf16, #tpu.memory_space<vmem>>, vector<512x128xbf16>
    %cst = arith.constant dense<0.000000e+00> : vector<16x128xf32>
    %6 = tpu.matmul %4, %5, %cst {dimension_numbers = #tpu.dot_dimension_numbers<[1], [0], [0], [1], [0, 0, 1, 1], [], []>} : vector<16x512xbf16>, vector<512x128xbf16>, vector<16x128xf32> -> vector<16x128xf32>
    %7 = arith.addf %3, %6 : vector<16x128xf32>
    %c0_6 = arith.constant 0 : index
    %c0_7 = arith.constant 0 : index
    %8 = vector.load %arg6[%c0_6, %c0_7] : memref<16x128xf32, #tpu.memory_space<vmem>>, vector<16x128xf32>
    tpu.vector_store %arg6[%c0_6, %c0_7], %7 {strides = array<i32>} : memref<16x128xf32, #tpu.memory_space<vmem>>, vector<16x128xf32>,
    %c0_i32_8 = arith.constant 0 : i32
    %9 = arith.cmpi eq, %arg1, %c0_i32_8 : i32
    %10 = arith.extui %9 : i1 to i32
    %c0_i32_9 = arith.constant 0 : i32
    %11 = arith.cmpi ne, %10, %c0_i32_9 : i32
    scf.if %11 {
      %c0_10 = arith.constant 0 : index
      %c0_11 = arith.constant 0 : index
      %12 = vector.load %arg6[%c0_10, %c0_11] : memref<16x128xf32, #tpu.memory_space<vmem>>, vector<16x128xf32>
      %c0_12 = arith.constant 0 : index
      %c0_13 = arith.constant 0 : index
      %13 = vector.load %arg4[%c0_12, %c0_13] : memref<16x1xf32, #tpu.memory_space<vmem>>, vector<16x1xf32>
      %14 = vector.broadcast %13 : vector<16x1xf32> to vector<16x128xf32>
      %15 = arith.addf %12, %14 : vector<16x128xf32>
      %c0_14 = arith.constant 0 : index
      %c0_15 = arith.constant 0 : index
      %16 = vector.load %arg5[%c0_14, %c0_15] : memref<16x128xf32, #tpu.memory_space<vmem>>, vector<16x128xf32>
      tpu.vector_store %arg5[%c0_14, %c0_15], %15 {strides = array<i32>} : memref<16x128xf32, #tpu.memory_space<vmem>>, vector<16x128xf32>,
    } else {
    }
    return
  }
  func.func @transform_0(%arg0: i32, %arg1: i32) -> (i32, i32) {
    %c0_i32 = arith.constant 0 : i32
    %c0_i32_0 = arith.constant 0 : i32
    return %c0_i32, %arg1 : i32, i32
  }
  func.func @transform_1(%arg0: i32, %arg1: i32) -> (i32, i32) {
    %c0_i32 = arith.constant 0 : i32
    return %arg1, %arg0 : i32, i32
  }
  func.func @transform_2(%arg0: i32, %arg1: i32) -> (i32, i32) {
    %c0_i32 = arith.constant 0 : i32
    %c0_i32_0 = arith.constant 0 : i32
    %c0_i32_1 = arith.constant 0 : i32
    return %c0_i32, %c0_i32_0 : i32, i32
  }
  func.func @transform_3(%arg0: i32, %arg1: i32) -> (i32, i32) {
    %c0_i32 = arith.constant 0 : i32
    %c0_i32_0 = arith.constant 0 : i32
    return %c0_i32, %arg0 : i32, i32
  }
}

module attributes {stable_mosaic.version = 11 : i64} {
  func.func @_bn_act_kernel(%arg0: i32, %arg1: memref<16x128xf32, #tpu.memory_space<vmem>>, %arg2: memref<16x1xf32, #tpu.memory_space<vmem>>, %arg3: memref<16x1xf32, #tpu.memory_space<vmem>>, %arg4: memref<16x128xf32, #tpu.memory_space<vmem>>) attributes {dimension_semantics = [#tpu.dimension_semantics<parallel>], iteration_bounds = array<i64: 1>, scalar_prefetch = 0 : i64, scratch_operands = 0 : i64, tpu.core_type = #tpu.core_type<tc>, window_params = [{transform_indices = @transform_0, window_bounds = array<i64: 16, 128>}, {pipeline_mode = #tpu.pipeline_mode<synchronous>, transform_indices = @transform_1, window_bounds = array<i64: 16, 1>}, {pipeline_mode = #tpu.pipeline_mode<synchronous>, transform_indices = @transform_2, window_bounds = array<i64: 16, 1>}, {transform_indices = @transform_3, window_bounds = array<i64: 16, 128>}]} {
    %c0 = arith.constant 0 : index
    %c0_0 = arith.constant 0 : index
    %0 = vector.load %arg1[%c0, %c0_0] : memref<16x128xf32, #tpu.memory_space<vmem>>, vector<16x128xf32>
    %c0_1 = arith.constant 0 : index
    %c0_2 = arith.constant 0 : index
    %1 = vector.load %arg2[%c0_1, %c0_2] : memref<16x1xf32, #tpu.memory_space<vmem>>, vector<16x1xf32>
    %2 = vector.broadcast %1 : vector<16x1xf32> to vector<16x128xf32>
    %3 = arith.mulf %0, %2 : vector<16x128xf32>
    %c0_3 = arith.constant 0 : index
    %c0_4 = arith.constant 0 : index
    %4 = vector.load %arg3[%c0_3, %c0_4] : memref<16x1xf32, #tpu.memory_space<vmem>>, vector<16x1xf32>
    %5 = vector.broadcast %4 : vector<16x1xf32> to vector<16x128xf32>
    %6 = arith.addf %3, %5 : vector<16x128xf32>
    %cst = arith.constant 0.000000e+00 : f32
    %7 = vector.broadcast %cst : f32 to vector<16x128xf32>
    %8 = arith.maximumf %6, %7 : vector<16x128xf32>
    %c0_5 = arith.constant 0 : index
    %c0_6 = arith.constant 0 : index
    %9 = vector.load %arg4[%c0_5, %c0_6] : memref<16x128xf32, #tpu.memory_space<vmem>>, vector<16x128xf32>
    tpu.vector_store %arg4[%c0_5, %c0_6], %8 {strides = array<i32>} : memref<16x128xf32, #tpu.memory_space<vmem>>, vector<16x128xf32>,
    return
  }
  func.func @transform_0(%arg0: i32) -> (i32, i32) {
    %c0_i32 = arith.constant 0 : i32
    %c0_i32_0 = arith.constant 0 : i32
    return %c0_i32, %arg0 : i32, i32
  }
  func.func @transform_1(%arg0: i32) -> (i32, i32) {
    %c0_i32 = arith.constant 0 : i32
    %c0_i32_0 = arith.constant 0 : i32
    %c0_i32_1 = arith.constant 0 : i32
    return %c0_i32, %c0_i32_0 : i32, i32
  }
  func.func @transform_2(%arg0: i32) -> (i32, i32) {
    %c0_i32 = arith.constant 0 : i32
    %c0_i32_0 = arith.constant 0 : i32
    %c0_i32_1 = arith.constant 0 : i32
    return %c0_i32, %c0_i32_0 : i32, i32
  }
  func.func @transform_3(%arg0: i32) -> (i32, i32) {
    %c0_i32 = arith.constant 0 : i32
    %c0_i32_0 = arith.constant 0 : i32
    return %c0_i32, %arg0 : i32, i32
  }
}

module attributes {stable_mosaic.version = 11 : i64} {
  func.func @_gemm_bias_kernel(%arg0: i32, %arg1: i32, %arg2: memref<16x256xbf16, #tpu.memory_space<vmem>>, %arg3: memref<256x128xbf16, #tpu.memory_space<vmem>>, %arg4: memref<16x1xf32, #tpu.memory_space<vmem>>, %arg5: memref<16x128xf32, #tpu.memory_space<vmem>>, %arg6: memref<16x128xf32, #tpu.memory_space<vmem>>) attributes {dimension_semantics = [#tpu.dimension_semantics<parallel>, #tpu.dimension_semantics<arbitrary>], iteration_bounds = array<i64: 1, 1>, scalar_prefetch = 0 : i64, scratch_operands = 1 : i64, tpu.core_type = #tpu.core_type<tc>, window_params = [{transform_indices = @transform_0, window_bounds = array<i64: 16, 256>}, {transform_indices = @transform_1, window_bounds = array<i64: 256, 128>}, {pipeline_mode = #tpu.pipeline_mode<synchronous>, transform_indices = @transform_2, window_bounds = array<i64: 16, 1>}, {transform_indices = @transform_3, window_bounds = array<i64: 16, 128>}]} {
    %c0_i32 = arith.constant 0 : i32
    %0 = arith.cmpi eq, %arg1, %c0_i32 : i32
    %1 = arith.extui %0 : i1 to i32
    %c0_i32_0 = arith.constant 0 : i32
    %2 = arith.cmpi ne, %1, %c0_i32_0 : i32
    scf.if %2 {
      %cst_10 = arith.constant 0.000000e+00 : f32
      %12 = vector.broadcast %cst_10 : f32 to vector<16x128xf32>
      %c0_11 = arith.constant 0 : index
      %c0_12 = arith.constant 0 : index
      %13 = vector.load %arg6[%c0_11, %c0_12] : memref<16x128xf32, #tpu.memory_space<vmem>>, vector<16x128xf32>
      tpu.vector_store %arg6[%c0_11, %c0_12], %12 {strides = array<i32>} : memref<16x128xf32, #tpu.memory_space<vmem>>, vector<16x128xf32>,
    } else {
    }
    %c0 = arith.constant 0 : index
    %c0_1 = arith.constant 0 : index
    %3 = vector.load %arg6[%c0, %c0_1] : memref<16x128xf32, #tpu.memory_space<vmem>>, vector<16x128xf32>
    %c0_2 = arith.constant 0 : index
    %c0_3 = arith.constant 0 : index
    %4 = vector.load %arg2[%c0_2, %c0_3] : memref<16x256xbf16, #tpu.memory_space<vmem>>, vector<16x256xbf16>
    %c0_4 = arith.constant 0 : index
    %c0_5 = arith.constant 0 : index
    %5 = vector.load %arg3[%c0_4, %c0_5] : memref<256x128xbf16, #tpu.memory_space<vmem>>, vector<256x128xbf16>
    %cst = arith.constant dense<0.000000e+00> : vector<16x128xf32>
    %6 = tpu.matmul %4, %5, %cst {dimension_numbers = #tpu.dot_dimension_numbers<[1], [0], [0], [1], [0, 0, 1, 1], [], []>} : vector<16x256xbf16>, vector<256x128xbf16>, vector<16x128xf32> -> vector<16x128xf32>
    %7 = arith.addf %3, %6 : vector<16x128xf32>
    %c0_6 = arith.constant 0 : index
    %c0_7 = arith.constant 0 : index
    %8 = vector.load %arg6[%c0_6, %c0_7] : memref<16x128xf32, #tpu.memory_space<vmem>>, vector<16x128xf32>
    tpu.vector_store %arg6[%c0_6, %c0_7], %7 {strides = array<i32>} : memref<16x128xf32, #tpu.memory_space<vmem>>, vector<16x128xf32>,
    %c0_i32_8 = arith.constant 0 : i32
    %9 = arith.cmpi eq, %arg1, %c0_i32_8 : i32
    %10 = arith.extui %9 : i1 to i32
    %c0_i32_9 = arith.constant 0 : i32
    %11 = arith.cmpi ne, %10, %c0_i32_9 : i32
    scf.if %11 {
      %c0_10 = arith.constant 0 : index
      %c0_11 = arith.constant 0 : index
      %12 = vector.load %arg6[%c0_10, %c0_11] : memref<16x128xf32, #tpu.memory_space<vmem>>, vector<16x128xf32>
      %c0_12 = arith.constant 0 : index
      %c0_13 = arith.constant 0 : index
      %13 = vector.load %arg4[%c0_12, %c0_13] : memref<16x1xf32, #tpu.memory_space<vmem>>, vector<16x1xf32>
      %14 = vector.broadcast %13 : vector<16x1xf32> to vector<16x128xf32>
      %15 = arith.addf %12, %14 : vector<16x128xf32>
      %c0_14 = arith.constant 0 : index
      %c0_15 = arith.constant 0 : index
      %16 = vector.load %arg5[%c0_14, %c0_15] : memref<16x128xf32, #tpu.memory_space<vmem>>, vector<16x128xf32>
      tpu.vector_store %arg5[%c0_14, %c0_15], %15 {strides = array<i32>} : memref<16x128xf32, #tpu.memory_space<vmem>>, vector<16x128xf32>,
    } else {
    }
    return
  }
  func.func @transform_0(%arg0: i32, %arg1: i32) -> (i32, i32) {
    %c0_i32 = arith.constant 0 : i32
    %c0_i32_0 = arith.constant 0 : i32
    return %c0_i32, %arg1 : i32, i32
  }
  func.func @transform_1(%arg0: i32, %arg1: i32) -> (i32, i32) {
    %c0_i32 = arith.constant 0 : i32
    return %arg1, %arg0 : i32, i32
  }
  func.func @transform_2(%arg0: i32, %arg1: i32) -> (i32, i32) {
    %c0_i32 = arith.constant 0 : i32
    %c0_i32_0 = arith.constant 0 : i32
    %c0_i32_1 = arith.constant 0 : i32
    return %c0_i32, %c0_i32_0 : i32, i32
  }
  func.func @transform_3(%arg0: i32, %arg1: i32) -> (i32, i32) {
    %c0_i32 = arith.constant 0 : i32
    %c0_i32_0 = arith.constant 0 : i32
    return %c0_i32, %arg0 : i32, i32
  }
}

module attributes {stable_mosaic.version = 11 : i64} {
  func.func @_bn_act_kernel(%arg0: i32, %arg1: memref<8x512xf32, #tpu.memory_space<vmem>>, %arg2: memref<8x1xf32, #tpu.memory_space<vmem>>, %arg3: memref<8x1xf32, #tpu.memory_space<vmem>>, %arg4: memref<8x512xf32, #tpu.memory_space<vmem>>) attributes {dimension_semantics = [#tpu.dimension_semantics<parallel>], iteration_bounds = array<i64: 1>, scalar_prefetch = 0 : i64, scratch_operands = 0 : i64, tpu.core_type = #tpu.core_type<tc>, window_params = [{transform_indices = @transform_0, window_bounds = array<i64: 8, 512>}, {pipeline_mode = #tpu.pipeline_mode<synchronous>, transform_indices = @transform_1, window_bounds = array<i64: 8, 1>}, {pipeline_mode = #tpu.pipeline_mode<synchronous>, transform_indices = @transform_2, window_bounds = array<i64: 8, 1>}, {transform_indices = @transform_3, window_bounds = array<i64: 8, 512>}]} {
    %c0 = arith.constant 0 : index
    %c0_0 = arith.constant 0 : index
    %0 = vector.load %arg1[%c0, %c0_0] : memref<8x512xf32, #tpu.memory_space<vmem>>, vector<8x512xf32>
    %c0_1 = arith.constant 0 : index
    %c0_2 = arith.constant 0 : index
    %1 = vector.load %arg2[%c0_1, %c0_2] : memref<8x1xf32, #tpu.memory_space<vmem>>, vector<8x1xf32>
    %2 = vector.broadcast %1 : vector<8x1xf32> to vector<8x512xf32>
    %3 = arith.mulf %0, %2 : vector<8x512xf32>
    %c0_3 = arith.constant 0 : index
    %c0_4 = arith.constant 0 : index
    %4 = vector.load %arg3[%c0_3, %c0_4] : memref<8x1xf32, #tpu.memory_space<vmem>>, vector<8x1xf32>
    %5 = vector.broadcast %4 : vector<8x1xf32> to vector<8x512xf32>
    %6 = arith.addf %3, %5 : vector<8x512xf32>
    %cst = arith.constant 0.000000e+00 : f32
    %7 = vector.broadcast %cst : f32 to vector<8x512xf32>
    %8 = arith.maximumf %6, %7 : vector<8x512xf32>
    %c0_5 = arith.constant 0 : index
    %c0_6 = arith.constant 0 : index
    %9 = vector.load %arg4[%c0_5, %c0_6] : memref<8x512xf32, #tpu.memory_space<vmem>>, vector<8x512xf32>
    tpu.vector_store %arg4[%c0_5, %c0_6], %8 {strides = array<i32>} : memref<8x512xf32, #tpu.memory_space<vmem>>, vector<8x512xf32>,
    return
  }
  func.func @transform_0(%arg0: i32) -> (i32, i32) {
    %c0_i32 = arith.constant 0 : i32
    %c0_i32_0 = arith.constant 0 : i32
    return %c0_i32, %arg0 : i32, i32
  }
  func.func @transform_1(%arg0: i32) -> (i32, i32) {
    %c0_i32 = arith.constant 0 : i32
    %c0_i32_0 = arith.constant 0 : i32
    %c0_i32_1 = arith.constant 0 : i32
    return %c0_i32, %c0_i32_0 : i32, i32
  }
  func.func @transform_2(%arg0: i32) -> (i32, i32) {
    %c0_i32 = arith.constant 0 : i32
    %c0_i32_0 = arith.constant 0 : i32
    %c0_i32_1 = arith.constant 0 : i32
    return %c0_i32, %c0_i32_0 : i32, i32
  }
  func.func @transform_3(%arg0: i32) -> (i32, i32) {
    %c0_i32 = arith.constant 0 : i32
    %c0_i32_0 = arith.constant 0 : i32
    return %c0_i32, %arg0 : i32, i32
  }
}

module attributes {stable_mosaic.version = 11 : i64} {
  func.func @_gemm_bias_kernel(%arg0: i32, %arg1: i32, %arg2: memref<16x128xbf16, #tpu.memory_space<vmem>>, %arg3: memref<128x512xbf16, #tpu.memory_space<vmem>>, %arg4: memref<16x1xf32, #tpu.memory_space<vmem>>, %arg5: memref<16x512xf32, #tpu.memory_space<vmem>>, %arg6: memref<16x512xf32, #tpu.memory_space<vmem>>) attributes {dimension_semantics = [#tpu.dimension_semantics<parallel>, #tpu.dimension_semantics<arbitrary>], iteration_bounds = array<i64: 1, 1>, scalar_prefetch = 0 : i64, scratch_operands = 1 : i64, tpu.core_type = #tpu.core_type<tc>, window_params = [{transform_indices = @transform_0, window_bounds = array<i64: 16, 128>}, {transform_indices = @transform_1, window_bounds = array<i64: 128, 512>}, {pipeline_mode = #tpu.pipeline_mode<synchronous>, transform_indices = @transform_2, window_bounds = array<i64: 16, 1>}, {transform_indices = @transform_3, window_bounds = array<i64: 16, 512>}]} {
    %c0_i32 = arith.constant 0 : i32
    %0 = arith.cmpi eq, %arg1, %c0_i32 : i32
    %1 = arith.extui %0 : i1 to i32
    %c0_i32_0 = arith.constant 0 : i32
    %2 = arith.cmpi ne, %1, %c0_i32_0 : i32
    scf.if %2 {
      %cst_10 = arith.constant 0.000000e+00 : f32
      %12 = vector.broadcast %cst_10 : f32 to vector<16x512xf32>
      %c0_11 = arith.constant 0 : index
      %c0_12 = arith.constant 0 : index
      %13 = vector.load %arg6[%c0_11, %c0_12] : memref<16x512xf32, #tpu.memory_space<vmem>>, vector<16x512xf32>
      tpu.vector_store %arg6[%c0_11, %c0_12], %12 {strides = array<i32>} : memref<16x512xf32, #tpu.memory_space<vmem>>, vector<16x512xf32>,
    } else {
    }
    %c0 = arith.constant 0 : index
    %c0_1 = arith.constant 0 : index
    %3 = vector.load %arg6[%c0, %c0_1] : memref<16x512xf32, #tpu.memory_space<vmem>>, vector<16x512xf32>
    %c0_2 = arith.constant 0 : index
    %c0_3 = arith.constant 0 : index
    %4 = vector.load %arg2[%c0_2, %c0_3] : memref<16x128xbf16, #tpu.memory_space<vmem>>, vector<16x128xbf16>
    %c0_4 = arith.constant 0 : index
    %c0_5 = arith.constant 0 : index
    %5 = vector.load %arg3[%c0_4, %c0_5] : memref<128x512xbf16, #tpu.memory_space<vmem>>, vector<128x512xbf16>
    %cst = arith.constant dense<0.000000e+00> : vector<16x512xf32>
    %6 = tpu.matmul %4, %5, %cst {dimension_numbers = #tpu.dot_dimension_numbers<[1], [0], [0], [1], [0, 0, 1, 1], [], []>} : vector<16x128xbf16>, vector<128x512xbf16>, vector<16x512xf32> -> vector<16x512xf32>
    %7 = arith.addf %3, %6 : vector<16x512xf32>
    %c0_6 = arith.constant 0 : index
    %c0_7 = arith.constant 0 : index
    %8 = vector.load %arg6[%c0_6, %c0_7] : memref<16x512xf32, #tpu.memory_space<vmem>>, vector<16x512xf32>
    tpu.vector_store %arg6[%c0_6, %c0_7], %7 {strides = array<i32>} : memref<16x512xf32, #tpu.memory_space<vmem>>, vector<16x512xf32>,
    %c0_i32_8 = arith.constant 0 : i32
    %9 = arith.cmpi eq, %arg1, %c0_i32_8 : i32
    %10 = arith.extui %9 : i1 to i32
    %c0_i32_9 = arith.constant 0 : i32
    %11 = arith.cmpi ne, %10, %c0_i32_9 : i32
    scf.if %11 {
      %c0_10 = arith.constant 0 : index
      %c0_11 = arith.constant 0 : index
      %12 = vector.load %arg6[%c0_10, %c0_11] : memref<16x512xf32, #tpu.memory_space<vmem>>, vector<16x512xf32>
      %c0_12 = arith.constant 0 : index
      %c0_13 = arith.constant 0 : index
      %13 = vector.load %arg4[%c0_12, %c0_13] : memref<16x1xf32, #tpu.memory_space<vmem>>, vector<16x1xf32>
      %14 = vector.broadcast %13 : vector<16x1xf32> to vector<16x512xf32>
      %15 = arith.addf %12, %14 : vector<16x512xf32>
      %c0_14 = arith.constant 0 : index
      %c0_15 = arith.constant 0 : index
      %16 = vector.load %arg5[%c0_14, %c0_15] : memref<16x512xf32, #tpu.memory_space<vmem>>, vector<16x512xf32>
      tpu.vector_store %arg5[%c0_14, %c0_15], %15 {strides = array<i32>} : memref<16x512xf32, #tpu.memory_space<vmem>>, vector<16x512xf32>,
    } else {
    }
    return
  }
  func.func @transform_0(%arg0: i32, %arg1: i32) -> (i32, i32) {
    %c0_i32 = arith.constant 0 : i32
    %c0_i32_0 = arith.constant 0 : i32
    return %c0_i32, %arg1 : i32, i32
  }
  func.func @transform_1(%arg0: i32, %arg1: i32) -> (i32, i32) {
    %c0_i32 = arith.constant 0 : i32
    return %arg1, %arg0 : i32, i32
  }
  func.func @transform_2(%arg0: i32, %arg1: i32) -> (i32, i32) {
    %c0_i32 = arith.constant 0 : i32
    %c0_i32_0 = arith.constant 0 : i32
    %c0_i32_1 = arith.constant 0 : i32
    return %c0_i32, %c0_i32_0 : i32, i32
  }
  func.func @transform_3(%arg0: i32, %arg1: i32) -> (i32, i32) {
    %c0_i32 = arith.constant 0 : i32
    %c0_i32_0 = arith.constant 0 : i32
    return %c0_i32, %arg0 : i32, i32
  }
}

module attributes {stable_mosaic.version = 11 : i64} {
  func.func @_bn_act_kernel(%arg0: i32, %arg1: memref<8x512xf32, #tpu.memory_space<vmem>>, %arg2: memref<8x1xf32, #tpu.memory_space<vmem>>, %arg3: memref<8x1xf32, #tpu.memory_space<vmem>>, %arg4: memref<8x512xf32, #tpu.memory_space<vmem>>) attributes {dimension_semantics = [#tpu.dimension_semantics<parallel>], iteration_bounds = array<i64: 4>, scalar_prefetch = 0 : i64, scratch_operands = 0 : i64, tpu.core_type = #tpu.core_type<tc>, window_params = [{transform_indices = @transform_0, window_bounds = array<i64: 8, 512>}, {pipeline_mode = #tpu.pipeline_mode<synchronous>, transform_indices = @transform_1, window_bounds = array<i64: 8, 1>}, {pipeline_mode = #tpu.pipeline_mode<synchronous>, transform_indices = @transform_2, window_bounds = array<i64: 8, 1>}, {transform_indices = @transform_3, window_bounds = array<i64: 8, 512>}]} {
    %c0 = arith.constant 0 : index
    %c0_0 = arith.constant 0 : index
    %0 = vector.load %arg1[%c0, %c0_0] : memref<8x512xf32, #tpu.memory_space<vmem>>, vector<8x512xf32>
    %c0_1 = arith.constant 0 : index
    %c0_2 = arith.constant 0 : index
    %1 = vector.load %arg2[%c0_1, %c0_2] : memref<8x1xf32, #tpu.memory_space<vmem>>, vector<8x1xf32>
    %2 = vector.broadcast %1 : vector<8x1xf32> to vector<8x512xf32>
    %3 = arith.mulf %0, %2 : vector<8x512xf32>
    %c0_3 = arith.constant 0 : index
    %c0_4 = arith.constant 0 : index
    %4 = vector.load %arg3[%c0_3, %c0_4] : memref<8x1xf32, #tpu.memory_space<vmem>>, vector<8x1xf32>
    %5 = vector.broadcast %4 : vector<8x1xf32> to vector<8x512xf32>
    %6 = arith.addf %3, %5 : vector<8x512xf32>
    %cst = arith.constant 0.000000e+00 : f32
    %7 = vector.broadcast %cst : f32 to vector<8x512xf32>
    %8 = arith.maximumf %6, %7 : vector<8x512xf32>
    %c0_5 = arith.constant 0 : index
    %c0_6 = arith.constant 0 : index
    %9 = vector.load %arg4[%c0_5, %c0_6] : memref<8x512xf32, #tpu.memory_space<vmem>>, vector<8x512xf32>
    tpu.vector_store %arg4[%c0_5, %c0_6], %8 {strides = array<i32>} : memref<8x512xf32, #tpu.memory_space<vmem>>, vector<8x512xf32>,
    return
  }
  func.func @transform_0(%arg0: i32) -> (i32, i32) {
    %c0_i32 = arith.constant 0 : i32
    %c0_i32_0 = arith.constant 0 : i32
    return %c0_i32, %arg0 : i32, i32
  }
  func.func @transform_1(%arg0: i32) -> (i32, i32) {
    %c0_i32 = arith.constant 0 : i32
    %c0_i32_0 = arith.constant 0 : i32
    %c0_i32_1 = arith.constant 0 : i32
    return %c0_i32, %c0_i32_0 : i32, i32
  }
  func.func @transform_2(%arg0: i32) -> (i32, i32) {
    %c0_i32 = arith.constant 0 : i32
    %c0_i32_0 = arith.constant 0 : i32
    %c0_i32_1 = arith.constant 0 : i32
    return %c0_i32, %c0_i32_0 : i32, i32
  }
  func.func @transform_3(%arg0: i32) -> (i32, i32) {
    %c0_i32 = arith.constant 0 : i32
    %c0_i32_0 = arith.constant 0 : i32
    return %c0_i32, %arg0 : i32, i32
  }
}

module attributes {stable_mosaic.version = 11 : i64} {
  func.func @_gemm_bias_kernel(%arg0: i32, %arg1: i32, %arg2: memref<16x512xbf16, #tpu.memory_space<vmem>>, %arg3: memref<512x128xbf16, #tpu.memory_space<vmem>>, %arg4: memref<16x1xf32, #tpu.memory_space<vmem>>, %arg5: memref<16x128xf32, #tpu.memory_space<vmem>>, %arg6: memref<16x128xf32, #tpu.memory_space<vmem>>) attributes {dimension_semantics = [#tpu.dimension_semantics<parallel>, #tpu.dimension_semantics<arbitrary>], iteration_bounds = array<i64: 1, 10>, scalar_prefetch = 0 : i64, scratch_operands = 1 : i64, tpu.core_type = #tpu.core_type<tc>, window_params = [{transform_indices = @transform_0, window_bounds = array<i64: 16, 512>}, {transform_indices = @transform_1, window_bounds = array<i64: 512, 128>}, {pipeline_mode = #tpu.pipeline_mode<synchronous>, transform_indices = @transform_2, window_bounds = array<i64: 16, 1>}, {transform_indices = @transform_3, window_bounds = array<i64: 16, 128>}]} {
    %c0_i32 = arith.constant 0 : i32
    %0 = arith.cmpi eq, %arg1, %c0_i32 : i32
    %1 = arith.extui %0 : i1 to i32
    %c0_i32_0 = arith.constant 0 : i32
    %2 = arith.cmpi ne, %1, %c0_i32_0 : i32
    scf.if %2 {
      %cst_9 = arith.constant 0.000000e+00 : f32
      %12 = vector.broadcast %cst_9 : f32 to vector<16x128xf32>
      %c0_10 = arith.constant 0 : index
      %c0_11 = arith.constant 0 : index
      %13 = vector.load %arg6[%c0_10, %c0_11] : memref<16x128xf32, #tpu.memory_space<vmem>>, vector<16x128xf32>
      tpu.vector_store %arg6[%c0_10, %c0_11], %12 {strides = array<i32>} : memref<16x128xf32, #tpu.memory_space<vmem>>, vector<16x128xf32>,
    } else {
    }
    %c0 = arith.constant 0 : index
    %c0_1 = arith.constant 0 : index
    %3 = vector.load %arg6[%c0, %c0_1] : memref<16x128xf32, #tpu.memory_space<vmem>>, vector<16x128xf32>
    %c0_2 = arith.constant 0 : index
    %c0_3 = arith.constant 0 : index
    %4 = vector.load %arg2[%c0_2, %c0_3] : memref<16x512xbf16, #tpu.memory_space<vmem>>, vector<16x512xbf16>
    %c0_4 = arith.constant 0 : index
    %c0_5 = arith.constant 0 : index
    %5 = vector.load %arg3[%c0_4, %c0_5] : memref<512x128xbf16, #tpu.memory_space<vmem>>, vector<512x128xbf16>
    %cst = arith.constant dense<0.000000e+00> : vector<16x128xf32>
    %6 = tpu.matmul %4, %5, %cst {dimension_numbers = #tpu.dot_dimension_numbers<[1], [0], [0], [1], [0, 0, 1, 1], [], []>} : vector<16x512xbf16>, vector<512x128xbf16>, vector<16x128xf32> -> vector<16x128xf32>
    %7 = arith.addf %3, %6 : vector<16x128xf32>
    %c0_6 = arith.constant 0 : index
    %c0_7 = arith.constant 0 : index
    %8 = vector.load %arg6[%c0_6, %c0_7] : memref<16x128xf32, #tpu.memory_space<vmem>>, vector<16x128xf32>
    tpu.vector_store %arg6[%c0_6, %c0_7], %7 {strides = array<i32>} : memref<16x128xf32, #tpu.memory_space<vmem>>, vector<16x128xf32>,
    %c9_i32 = arith.constant 9 : i32
    %9 = arith.cmpi eq, %arg1, %c9_i32 : i32
    %10 = arith.extui %9 : i1 to i32
    %c0_i32_8 = arith.constant 0 : i32
    %11 = arith.cmpi ne, %10, %c0_i32_8 : i32
    scf.if %11 {
      %c0_9 = arith.constant 0 : index
      %c0_10 = arith.constant 0 : index
      %12 = vector.load %arg6[%c0_9, %c0_10] : memref<16x128xf32, #tpu.memory_space<vmem>>, vector<16x128xf32>
      %c0_11 = arith.constant 0 : index
      %c0_12 = arith.constant 0 : index
      %13 = vector.load %arg4[%c0_11, %c0_12] : memref<16x1xf32, #tpu.memory_space<vmem>>, vector<16x1xf32>
      %14 = vector.broadcast %13 : vector<16x1xf32> to vector<16x128xf32>
      %15 = arith.addf %12, %14 : vector<16x128xf32>
      %c0_13 = arith.constant 0 : index
      %c0_14 = arith.constant 0 : index
      %16 = vector.load %arg5[%c0_13, %c0_14] : memref<16x128xf32, #tpu.memory_space<vmem>>, vector<16x128xf32>
      tpu.vector_store %arg5[%c0_13, %c0_14], %15 {strides = array<i32>} : memref<16x128xf32, #tpu.memory_space<vmem>>, vector<16x128xf32>,
    } else {
    }
    return
  }
  func.func @transform_0(%arg0: i32, %arg1: i32) -> (i32, i32) {
    %c0_i32 = arith.constant 0 : i32
    %c0_i32_0 = arith.constant 0 : i32
    return %c0_i32, %arg1 : i32, i32
  }
  func.func @transform_1(%arg0: i32, %arg1: i32) -> (i32, i32) {
    %c0_i32 = arith.constant 0 : i32
    return %arg1, %arg0 : i32, i32
  }
  func.func @transform_2(%arg0: i32, %arg1: i32) -> (i32, i32) {
    %c0_i32 = arith.constant 0 : i32
    %c0_i32_0 = arith.constant 0 : i32
    %c0_i32_1 = arith.constant 0 : i32
    return %c0_i32, %c0_i32_0 : i32, i32
  }
  func.func @transform_3(%arg0: i32, %arg1: i32) -> (i32, i32) {
    %c0_i32 = arith.constant 0 : i32
    %c0_i32_0 = arith.constant 0 : i32
    return %c0_i32, %arg0 : i32, i32
  }
}

</mosaic_0001>

<bundles_post_ra>
// kernel: forward.29
= control target key start
LH: loop header
LB: loop body
LE: loop exit
PB: predicated region body
PF: predicated region fallthrough
CT: control target
= control target key end

     0   :  { %s1025_s12 = smov 0   ;;  %s1027_s13 = smov 0   ;;  %s1262_s0 = inlined_call_operand.vmem [shape: bf16[16,128], index: 0, kind: input, shape index: {}]   ;;  %s1263_s1 = inlined_call_operand.vmem [shape: bf16[128,3584], index: 1, kind: input, shape index: {}]   ;;  %s1264_s2 = inlined_call_operand.vmem [shape: f32[16,1], index: 2, kind: input, shape index: {}]   ;;  %s1265_s3 = inlined_call_operand.vmem [shape: f32[16,3584], index: 3, kind: output, shape index: {}]  }
   0x1   :  { %s1029_s14 = smov 0   ;;  %s1031_s15 = smov 0  }
   0x2   :  { %s1033_s16 = smov 0  }
   0x3 LB: > { %s25_s17 = sadd.s32 1, %s998_s15  ;;  %s739_s18 = sadd.s32 4294967295, %s1002_s16   ;;  %s1002_s16 = sphi %s1033_s16, %s13_s16   ;;  %s998_s15 = sphi %s1031_s15, %s1270_s15   ;;  %s994_s14 = sphi %s1029_s14, %s1269_s14   ;;  %s990_s13 = sphi %s1027_s13, %s1268_s13   ;;  %s986_s12 = sphi %s1025_s12, %s1267_s12  }
   0x4   : > { %p27_p0 = scmp.ge.s32.totalorder %s25_s17, 7  ;;  %p67_p1 = scmp.ne.s32.totalorder %s990_s13, %s986_s12 }
   0x5   : > { %p68_p2 = scmp.eq.s32.totalorder %s1002_s16, 0  ;;  %p118_p4 = scmp.eq.s32.totalorder %s739_s18, 6 }
   0x6   : > { %s1272_s17 = smov (%p27_p0, %s25_s17), 0  ;;  %s60_s20 = sadd.s32 1, %s990_s13 }
   0x7   : > { %p69_p3 = por %p68_p2, %p67_p1  ;;  %s56_s19 = ssub.s32 %s998_s15, %s1272_s17 }
   0x8   : > { %p58_p5 = scmp.eq.s32.totalorder %s56_s19, 0  ;;  %p1060_p6 = por %p118_p4, %p67_p1 }
   0x9   : > { %p743_p7 = scmp.ge.s32.totalorder %s1002_s16, 7 }
   0xa   : > { %s1065_s22 = scalar_select %p58_p5, %s990_s13, %s60_s20  }
   0xb   : > { %150 = sbr.rel (%p743_p7) target bundleno = 52 (0x34), region = 24 }
  0x10   : > { %153 = sbr.rel (!%p69_p3) target bundleno = 52 (0x34), region = 28  ;;  %s155_s23 = sand.u32 (%p69_p3), 1, %s990_s13  }
  0x11   : > { %s887_s24 = sshll.u32 (%p69_p3), %s998_s15, 4  ;;  %s744_s25 = sshll.u32 (%p69_p3), %s155_s23, 8 }
  0x12   : > { %s1073_s28 = scalar_lea.vmem (%p69_p3), %s1263_s1, %s887_s24  ;;  %s1078_s29 = scalar_lea.vmem (%p69_p3), [#allocation3], %s744_s25 }
  0x13   : > { %v176_v0 = vld [vmem:[%s1073_s28] sm:$0xff] (%p69_p3)  ;;  %v178_v1 = vld [vmem:[%s1073_s28 + $0x8] sm:$0xff] (%p69_p3)  ;;  %v180_v2 = vld [vmem:[%s1073_s28 + $0x70] sm:$0xff] (%p69_p3) }
  0x14   : > { %177 = vst [vmem:[%s1078_s29] sm:$0xff] (%p69_p3), %v176_v0  ;;  %v182_v3 = vld [vmem:[%s1073_s28 + $0x78] sm:$0xff] (%p69_p3)  ;;  %v184_v4 = vld [vmem:[%s1073_s28 + $0xe0] sm:$0xff] (%p69_p3)  ;;  %v186_v5 = vld [vmem:[%s1073_s28 + $0xe8] sm:$0xff] (%p69_p3) }
  0x15   : > { %179 = vst [vmem:[%s1078_s29 + $0x8] sm:$0xff] %v178_v1  ;;  %v188_v6 = vld [vmem:[%s1073_s28 + $0x150] sm:$0xff]  ;;  %v190_v7 = vld [vmem:[%s1073_s28 + $0x158] sm:$0xff]  ;;  %v192_v8 = vld [vmem:[%s1073_s28 + $0x1c0] sm:$0xff] }
  0x16   : > { %181 = vst [vmem:[%s1078_s29 + $0x10] sm:$0xff] %v180_v2  ;;  %v194_v9 = vld [vmem:[%s1073_s28 + $0x1c8] sm:$0xff]  ;;  %v196_v10 = vld [vmem:[%s1073_s28 + $0x230] sm:$0xff]  ;;  %v198_v11 = vld [vmem:[%s1073_s28 + $0x238] sm:$0xff] }
  0x17   : > { %183 = vst [vmem:[%s1078_s29 + $0x18] sm:$0xff] %v182_v3  ;;  %v200_v12 = vld [vmem:[%s1073_s28 + $0x2a0] sm:$0xff]  ;;  %v202_v13 = vld [vmem:[%s1073_s28 + $0x2a8] sm:$0xff]  ;;  %v204_v14 = vld [vmem:[%s1073_s28 + $0x310] sm:$0xff] }
  0x18   : > { %185 = vst [vmem:[%s1078_s29 + $0x20] sm:$0xff] %v184_v4  ;;  %v206_v15 = vld [vmem:[%s1073_s28 + $0x318] sm:$0xff]  ;;  %v208_v16 = vld [vmem:[%s1073_s28 + $0x380] sm:$0xff]  ;;  %v210_v17 = vld [vmem:[%s1073_s28 + $0x388] sm:$0xff] }
  0x19   : > { %187 = vst [vmem:[%s1078_s29 + $0x28] sm:$0xff] %v186_v5  ;;  %v212_v18 = vld [vmem:[%s1073_s28 + $0x3f0] sm:$0xff]  ;;  %v214_v19 = vld [vmem:[%s1073_s28 + $0x3f8] sm:$0xff]  ;;  %v216_v20 = vld [vmem:[%s1073_s28 + $0x460] sm:$0xff] }
  0x1a   : > { %189 = vst [vmem:[%s1078_s29 + $0x30] sm:$0xff] %v188_v6  ;;  %v218_v21 = vld [vmem:[%s1073_s28 + $0x468] sm:$0xff]  ;;  %v220_v22 = vld [vmem:[%s1073_s28 + $0x4d0] sm:$0xff]  ;;  %v222_v23 = vld [vmem:[%s1073_s28 + $0x4d8] sm:$0xff] }
  0x1b   : > { %191 = vst [vmem:[%s1078_s29 + $0x38] sm:$0xff] %v190_v7  ;;  %v224_v24 = vld [vmem:[%s1073_s28 + $0x540] sm:$0xff]  ;;  %v226_v25 = vld [vmem:[%s1073_s28 + $0x548] sm:$0xff]  ;;  %v228_v26 = vld [vmem:[%s1073_s28 + $0x5b0] sm:$0xff] }
  0x1c   : > { %193 = vst [vmem:[%s1078_s29 + $0x40] sm:$0xff] %v192_v8  ;;  %v230_v27 = vld [vmem:[%s1073_s28 + $0x5b8] sm:$0xff]  ;;  %v232_v28 = vld [vmem:[%s1073_s28 + $0x620] sm:$0xff]  ;;  %v234_v29 = vld [vmem:[%s1073_s28 + $0x628] sm:$0xff] }
  0x1d   : > { %195 = vst [vmem:[%s1078_s29 + $0x48] sm:$0xff] %v194_v9  ;;  %v236_v30 = vld [vmem:[%s1073_s28 + $0x690] sm:$0xff]  ;;  %v238_v31 = vld [vmem:[%s1073_s28 + $0x698] sm:$0xff] }
  0x1e   : > { %197 = vst [vmem:[%s1078_s29 + $0x50] sm:$0xff] %v196_v10 }
  0x1f   : > { %199 = vst [vmem:[%s1078_s29 + $0x58] sm:$0xff] %v198_v11 }
  0x20   : > { %201 = vst [vmem:[%s1078_s29 + $0x60] sm:$0xff] %v200_v12 }
  0x21   : > { %203 = vst [vmem:[%s1078_s29 + $0x68] sm:$0xff] %v202_v13 }
  0x22   : > { %205 = vst [vmem:[%s1078_s29 + $0x70] sm:$0xff] %v204_v14 }
  0x23   : > { %207 = vst [vmem:[%s1078_s29 + $0x78] sm:$0xff] %v206_v15 }
  0x24   : > { %209 = vst [vmem:[%s1078_s29 + $0x80] sm:$0xff] %v208_v16 }
  0x25   : > { %211 = vst [vmem:[%s1078_s29 + $0x88] sm:$0xff] %v210_v17 }
  0x26   : > { %213 = vst [vmem:[%s1078_s29 + $0x90] sm:$0xff] %v212_v18 }
  0x27   : > { %215 = vst [vmem:[%s1078_s29 + $0x98] sm:$0xff] %v214_v19 }
  0x28   : > { %217 = vst [vmem:[%s1078_s29 + $0xa0] sm:$0xff] %v216_v20 }
  0x29   : > { %219 = vst [vmem:[%s1078_s29 + $0xa8] sm:$0xff] %v218_v21 }
  0x2a   : > { %221 = vst [vmem:[%s1078_s29 + $0xb0] sm:$0xff] %v220_v22 }
  0x2b   : > { %223 = vst [vmem:[%s1078_s29 + $0xb8] sm:$0xff] %v222_v23 }
  0x2c   : > { %225 = vst [vmem:[%s1078_s29 + $0xc0] sm:$0xff] %v224_v24 }
  0x2d   : > { %227 = vst [vmem:[%s1078_s29 + $0xc8] sm:$0xff] %v226_v25 }
  0x2e   : > { %229 = vst [vmem:[%s1078_s29 + $0xd0] sm:$0xff] %v228_v26 }
  0x2f   : > { %231 = vst [vmem:[%s1078_s29 + $0xd8] sm:$0xff] %v230_v27 }
  0x30   : > { %233 = vst [vmem:[%s1078_s29 + $0xe0] sm:$0xff] %v232_v28 }
  0x31   : > { %235 = vst [vmem:[%s1078_s29 + $0xe8] sm:$0xff] %v234_v29 }
  0x32   : > { %237 = vst [vmem:[%s1078_s29 + $0xf0] sm:$0xff] %v236_v30 }
  0x33   : > { %239 = vst [vmem:[%s1078_s29 + $0xf8] sm:$0xff] %v238_v31 }
  0x34 PF: > { %p747_p8 = scmp.ge.s32.totalorder %s1002_s16, 1  ;;  %p244_p9 = scmp.lt.s32.totalorder %s1002_s16, 8 }
  0x36   : > { %p245_p10 = pnand %p747_p8, %p244_p9 }
  0x37   : > { %s251_s30 = sand.u32 (!%p245_p10), 1, %s986_s12  }
  0x38   : > { %248 = sbr.rel (%p245_p10) target bundleno = 248 (0xf8), region = 51  ;;  %s748_s4 = sshll.u32 (!%p245_p10), %s251_s30, 8 }
  0x39   : > { %s1146_s5 = scalar_lea.vmem (!%p245_p10), [#allocation3], %s748_s4  ;;  %s749_s18 = sshll.u32 (!%p245_p10), %s251_s30, 6 }
  0x3a   : > { %s1223_s19 = scalar_lea.vmem (!%p245_p10), [#allocation4], %s749_s18 }
  0x3d   : > { %v868_v32 = vld [vmem:[%s1146_s5 + $0xe0] sm:$0xf]  ;;  %v919_v33 = vld [vmem:[%s1146_s5 + $0xec] sm:$0xf0]  ;;  %v917_v34 = vld [vmem:[%s1146_s5 + $0xe4] sm:$0xf] }
  0x3e   : > { %v869_v35 = vor.u32 %v919_v33, %v868_v32  ;;  %v870_v36 = vld [vmem:[%s1146_s5 + $0xf0] sm:$0xf0]  ;;  %v876_v37 = vld [vmem:[%s1146_s5 + $0xe8] sm:$0xf]  ;;  %v920_v38 = vld [vmem:[%s1146_s5 + $0xf4] sm:$0xf0] }
  0x3f   : > { %v873_v39 = vor.u32 %v917_v34, %v870_v36  ;;  %v877_v40 = vor.u32 %v920_v38, %v876_v37  ;;  %v918_v41 = vld [vmem:[%s1146_s5 + $0xec] sm:$0xf]  ;;  %v878_v42 = vld [vmem:[%s1146_s5 + $0xf8] sm:$0xf0]  ;;  %v852_v43 = vld [vmem:[%s1146_s5 + $0xc0] sm:$0xf] }
  0x40   : > { %504 = vmatpush.bf16.msra.mxu0 %v869_v35  ;;  %v881_v44 = vor.u32 %v918_v41, %v878_v42  ;;  %v915_v45 = vld [vmem:[%s1146_s5 + $0xcc] sm:$0xf0]  ;;  %v913_v46 = vld [vmem:[%s1146_s5 + $0xc4] sm:$0xf]  ;;  %v854_v47 = vld [vmem:[%s1146_s5 + $0xd0] sm:$0xf0] }
  0x41   : > { %518 = vmatpush.bf16.msra.mxu1 %v873_v39  ;;  %532 = vmatpush.bf16.msra.mxu2 %v877_v40  ;;  %v853_v48 = vor.u32 %v915_v45, %v852_v43  ;;  %v857_v49 = vor.u32 %v913_v46, %v854_v47  ;;  %v860_v50 = vld [vmem:[%s1146_s5 + $0xc8] sm:$0xf]  ;;  %v916_v51 = vld [vmem:[%s1146_s5 + $0xd4] sm:$0xf0]  ;;  %v914_v52 = vld [vmem:[%s1146_s5 + $0xcc] sm:$0xf] }
  0x42   : > { %546 = vmatpush.bf16.msra.mxu3 %v881_v44  ;;  %v861_v53 = vor.u32 %v916_v51, %v860_v50  ;;  %v862_v54 = vld [vmem:[%s1146_s5 + $0xd8] sm:$0xf0]  ;;  %v836_v55 = vld [vmem:[%s1146_s5 + $0xa0] sm:$0xf]  ;;  %v911_v56 = vld [vmem:[%s1146_s5 + $0xac] sm:$0xf0] }
  0x43   : > { %v865_v57 = vor.u32 %v914_v52, %v862_v54  ;;  %v909_v58 = vld [vmem:[%s1146_s5 + $0xa4] sm:$0xf]  ;;  %v838_v59 = vld [vmem:[%s1146_s5 + $0xb0] sm:$0xf0]  ;;  %v844_v60 = vld [vmem:[%s1146_s5 + $0xa8] sm:$0xf]  ;;  %v837_v61 = vor.u32 %v911_v56, %v836_v55 }
  0x44   : > { %505 = vmatpush.bf16.msra.mxu0 %v853_v48  ;;  %v912_v62 = vld [vmem:[%s1146_s5 + $0xb4] sm:$0xf0]  ;;  %v910_v63 = vld [vmem:[%s1146_s5 + $0xac] sm:$0xf]  ;;  %v846_v0 = vld [vmem:[%s1146_s5 + $0xb8] sm:$0xf0]  ;;  %v841_v1 = vor.u32 %v909_v58, %v838_v59 }
  0x45   : > { %519 = vmatpush.bf16.msra.mxu1 %v857_v49  ;;  %533 = vmatpush.bf16.msra.mxu2 %v861_v53  ;;  %v845_v2 = vor.u32 %v912_v62, %v844_v60  ;;  %v820_v3 = vld [vmem:[%s1146_s5 + $0x80] sm:$0xf]  ;;  %v907_v4 = vld [vmem:[%s1146_s5 + $0x8c] sm:$0xf0]  ;;  %v905_v5 = vld [vmem:[%s1146_s5 + $0x84] sm:$0xf]  ;;  %v849_v6 = vor.u32 %v910_v63, %v846_v0 }
  0x46   : > { %547 = vmatpush.bf16.msra.mxu3 %v865_v57  ;;  %v822_v7 = vld [vmem:[%s1146_s5 + $0x90] sm:$0xf0]  ;;  %v828_v8 = vld [vmem:[%s1146_s5 + $0x88] sm:$0xf]  ;;  %v908_v9 = vld [vmem:[%s1146_s5 + $0x94] sm:$0xf0]  ;;  %v821_v12 = vor.u32 %v907_v4, %v820_v3 }
  0x47   : > { %v906_v10 = vld [vmem:[%s1146_s5 + $0x8c] sm:$0xf]  ;;  %v830_v11 = vld [vmem:[%s1146_s5 + $0x98] sm:$0xf0]  ;;  %v825_v13 = vor.u32 %v905_v5, %v822_v7  ;;  %v829_v14 = vor.u32 %v908_v9, %v828_v8  ;;  %v804_v15 = vld [vmem:[%s1146_s5 + $0x60] sm:$0xf] }
  0x48   : > { %506 = vmatpush.bf16.msra.mxu0 %v837_v61  ;;  %v903_v16 = vld [vmem:[%s1146_s5 + $0x6c] sm:$0xf0]  ;;  %v901_v17 = vld [vmem:[%s1146_s5 + $0x64] sm:$0xf]  ;;  %v833_v18 = vor.u32 %v906_v10, %v830_v11  ;;  %v806_v19 = vld [vmem:[%s1146_s5 + $0x70] sm:$0xf0] }
  0x49   : > { %520 = vmatpush.bf16.msra.mxu1 %v841_v1  ;;  %534 = vmatpush.bf16.msra.mxu2 %v845_v2  ;;  %v812_v20 = vld [vmem:[%s1146_s5 + $0x68] sm:$0xf]  ;;  %v904_v21 = vld [vmem:[%s1146_s5 + $0x74] sm:$0xf0]  ;;  %v902_v22 = vld [vmem:[%s1146_s5 + $0x6c] sm:$0xf]  ;;  %v805_v24 = vor.u32 %v903_v16, %v804_v15  ;;  %v809_v25 = vor.u32 %v901_v17, %v806_v19 }
  0x4a   : > { %548 = vmatpush.bf16.msra.mxu3 %v849_v6  ;;  %v814_v23 = vld [vmem:[%s1146_s5 + $0x78] sm:$0xf0]  ;;  %v813_v26 = vor.u32 %v904_v21, %v812_v20  ;;  %v788_v27 = vld [vmem:[%s1146_s5 + $0x40] sm:$0xf]  ;;  %v899_v28 = vld [vmem:[%s1146_s5 + $0x4c] sm:$0xf0] }
  0x4b   : > { %v897_v29 = vld [vmem:[%s1146_s5 + $0x44] sm:$0xf]  ;;  %v817_v30 = vor.u32 %v902_v22, %v814_v23  ;;  %v790_v31 = vld [vmem:[%s1146_s5 + $0x50] sm:$0xf0]  ;;  %v796_v32 = vld [vmem:[%s1146_s5 + $0x48] sm:$0xf]  ;;  %v789_v36 = vor.u32 %v899_v28, %v788_v27 }
  0x4c   : > { %507 = vmatpush.bf16.msra.mxu0 %v821_v12  ;;  %v900_v33 = vld [vmem:[%s1146_s5 + $0x54] sm:$0xf0]  ;;  %v898_v34 = vld [vmem:[%s1146_s5 + $0x4c] sm:$0xf]  ;;  %v798_v35 = vld [vmem:[%s1146_s5 + $0x58] sm:$0xf0]  ;;  %v793_v38 = vor.u32 %v897_v29, %v790_v31 }
  0x4d   : > { %521 = vmatpush.bf16.msra.mxu1 %v825_v13  ;;  %535 = vmatpush.bf16.msra.mxu2 %v829_v14  ;;  %v772_v37 = vld [vmem:[%s1146_s5 + $0x20] sm:$0xf]  ;;  %v797_v39 = vor.u32 %v900_v33, %v796_v32  ;;  %v895_v40 = vld [vmem:[%s1146_s5 + $0x2c] sm:$0xf0]  ;;  %v893_v41 = vld [vmem:[%s1146_s5 + $0x24] sm:$0xf]  ;;  %v801_v43 = vor.u32 %v898_v34, %v798_v35 }
  0x4e   : > { %549 = vmatpush.bf16.msra.mxu3 %v833_v18  ;;  %v774_v42 = vld [vmem:[%s1146_s5 + $0x30] sm:$0xf0]  ;;  %v780_v44 = vld [vmem:[%s1146_s5 + $0x28] sm:$0xf]  ;;  %v896_v45 = vld [vmem:[%s1146_s5 + $0x34] sm:$0xf0]  ;;  %v773_v50 = vor.u32 %v895_v40, %v772_v37 }
  0x4f   : > { %v587_v46 = vld [vmem:[%s1264_s2] sm:$0xff]  ;;  %v894_v47 = vld [vmem:[%s1146_s5 + $0x2c] sm:$0xf]  ;;  %v782_v48 = vld [vmem:[%s1146_s5 + $0x38] sm:$0xf0]  ;;  %v1004_v49 = vmov 0   ;;  %v777_v51 = vor.u32 %v893_v41, %v774_v42  ;;  %v781_v52 = vor.u32 %v896_v45, %v780_v44 }
  0x50   : > { %508 = vmatpush.bf16.msra.mxu0 %v805_v24  ;;  %963 = vset.pattern.permute.xlu0 %v1004_v49  ;;  %v756_v53 = vld [vmem:[%s1146_s5] sm:$0xf]  ;;  %v891_v54 = vld [vmem:[%s1146_s5 + $0xc] sm:$0xf0]  ;;  %v889_v55 = vld [vmem:[%s1146_s5 + $0x4] sm:$0xf]  ;;  %v785_v56 = vor.u32 %v894_v47, %v782_v48 }
  0x51   : > { %522 = vmatpush.bf16.msra.mxu1 %v809_v25  ;;  %536 = vmatpush.bf16.msra.mxu2 %v813_v26  ;;  %v758_v57 = vld [vmem:[%s1146_s5 + $0x10] sm:$0xf0]  ;;  %v764_v58 = vld [vmem:[%s1146_s5 + $0x8] sm:$0xf]  ;;  %v892_v59 = vld [vmem:[%s1146_s5 + $0x14] sm:$0xf0]  ;;  %v757_v62 = vor.u32 %v891_v54, %v756_v53 }
  0x52   : > { %550 = vmatpush.bf16.msra.mxu3 %v817_v30  ;;  %591 = vperm.xlu0 %963, %v587_v46   ;;  %v890_v60 = vld [vmem:[%s1146_s5 + $0xc] sm:$0xf]  ;;  %v766_v61 = vld [vmem:[%s1146_s5 + $0x18] sm:$0xf0]  ;;  %v761_v63 = vor.u32 %v889_v55, %v758_v57  ;;  %v765_v0 = vor.u32 %v892_v59, %v764_v58  ;;  %v888_v3 = vld [vmem:[%s1262_s0] sm:$0xff]  ;;  %s921_s12 = sshll.u32 (%p1060_p6), %s994_s14, 5 }
  0x53   : > { %v588_v1 = vld [vmem:[%s1264_s2 + $0x8] sm:$0xff]  ;;  %v769_v2 = vor.u32 %v890_v60, %v766_v61  ;;  %s624_s24 = scalar_lea.vmem (%p1060_p6), %s1265_s3, %s921_s12 }
  0x54   : > { %509 = vmatpush.bf16.msra.mxu0 %v789_v36 }
  0x55   : > { %523 = vmatpush.bf16.msra.mxu1 %v793_v38  ;;  %537 = vmatpush.bf16.msra.mxu2 %v797_v39 }
  0x56   : > { %551 = vmatpush.bf16.msra.mxu3 %v801_v43 }
  0x58   : > { %510 = vmatpush.bf16.msra.mxu0 %v773_v50 }
  0x59   : > { %524 = vmatpush.bf16.msra.mxu1 %v777_v51  ;;  %538 = vmatpush.bf16.msra.mxu2 %v781_v52 }
  0x5a   : > { %552 = vmatpush.bf16.msra.mxu3 %v785_v56  ;;  %596 = vperm.xlu0 %963, %v588_v1  }
  0x5c   : > { %511 = vmatpush.bf16.msra.mxu0 %v757_v62 }
  0x5d   : > { %525 = vmatpush.bf16.msra.mxu1 %v761_v63  ;;  %539 = vmatpush.bf16.msra.mxu2 %v765_v0 }
  0x5e   : > { %553 = vmatpush.bf16.msra.mxu3 %v769_v2 }
  0x5f   : > { %512 = vmatmul.bf16.vlgmr.msra.gmra.mxu0 %v888_v3 }
  0x60   : > { %526 = vmatmul.bf16.vlgmr.msra.gmra.mxu1 %v888_v3  ;;  %540 = vmatmul.bf16.vlgmr.msra.gmra.mxu2 %v888_v3 }
  0x61   : > { %554 = vmatmul.bf16.vlgmr.msra.gmra.mxu3 %v888_v3 }
  0xc4   : > { %v592_v4 = vpop.permute.xlu0 %591 }
  0xcc   : > { %v597_v9 = vpop.permute.xlu0 %596 }
  0xdc   : > { %v513_v5 = vpop.f32.mrf.mxu0 }
  0xdd   : > { %v599_v6 = vadd.f32 %v592_v4, %v513_v5  ;;  %v527_v7 = vpop.f32.mrf.mxu1 }
  0xde   : > { %v600_v8 = vadd.f32 %v592_v4, %v527_v7 }
  0xdf   : > { %607 = vst [vmem:[%s1223_s19] sm:$0xff] %v599_v6 }
  0xe0   : > { %608 = vst [vmem:[%s1223_s19 + $0x8] sm:$0xff] %v600_v8 }
  0xe3   : > { %v541_v10 = vpop.f32.mrf.mxu2 }
  0xe4   : > { %v601_v11 = vadd.f32 %v592_v4, %v541_v10  ;;  %v555_v12 = vpop.f32.mrf.mxu3  ;;  %v515_v13 = vpop.f32.mrf.mxu0 }
  0xe5   : > { %v602_v14 = vadd.f32 %v592_v4, %v555_v12  ;;  %v603_v15 = vadd.f32 %v597_v9, %v515_v13  ;;  %v529_v16 = vpop.f32.mrf.mxu1 }
  0xe6   : > { %609 = vst [vmem:[%s1223_s19 + $0x10] sm:$0xff] %v601_v11  ;;  %v604_v17 = vadd.f32 %v597_v9, %v529_v16  ;;  %v637_v22 = vld [vmem:[%s1223_s19] sm:$0xff] (%p1060_p6) }
  0xe7   : > { %610 = vst [vmem:[%s1223_s19 + $0x18] sm:$0xff] %v602_v14  ;;  %v639_v23 = vld [vmem:[%s1223_s19 + $0x8] sm:$0xff] (%p1060_p6) }
  0xe8   : > { %611 = vst [vmem:[%s1223_s19 + $0x20] sm:$0xff] %v603_v15 }
  0xe9   : > { %612 = vst [vmem:[%s1223_s19 + $0x28] sm:$0xff] %v604_v17 }
  0xea   : > { %638 = vst [vmem:[%s624_s24] sm:$0xff] (%p1060_p6), %v637_v22 }
  0xeb   : > { %v543_v18 = vpop.f32.mrf.mxu2  ;;  %621 = sbr.rel (!%p1060_p6) target bundleno = 248 (0xf8), region = 67  ;;  %640 = vst [vmem:[%s624_s24 + $0x8] sm:$0xff] (%p1060_p6), %v639_v23 }
  0xec   : > { %v605_v19 = vadd.f32 %v597_v9, %v543_v18  ;;  %v557_v20 = vpop.f32.mrf.mxu3 }
  0xed   : > { %v606_v21 = vadd.f32 %v597_v9, %v557_v20  ;;  %v641_v24 = vld [vmem:[%s1223_s19 + $0x10] sm:$0xff] (%p1060_p6) }
  0xee   : > { %613 = vst [vmem:[%s1223_s19 + $0x30] sm:$0xff] %v605_v19  ;;  %v643_v25 = vld [vmem:[%s1223_s19 + $0x18] sm:$0xff] (%p1060_p6) }
  0xef   : > { %614 = vst [vmem:[%s1223_s19 + $0x38] sm:$0xff] %v606_v21  ;;  %v645_v26 = vld [vmem:[%s1223_s19 + $0x20] sm:$0xff] (%p1060_p6) }
  0xf0   : > { %642 = vst [vmem:[%s624_s24 + $0x10] sm:$0xff] %v641_v24  ;;  %v647_v27 = vld [vmem:[%s1223_s19 + $0x28] sm:$0xff] }
  0xf1   : > { %644 = vst [vmem:[%s624_s24 + $0x18] sm:$0xff] %v643_v25 }
  0xf2   : > { %646 = vst [vmem:[%s624_s24 + $0xe0] sm:$0xff] %v645_v26 }
  0xf3   : > { %648 = vst [vmem:[%s624_s24 + $0xe8] sm:$0xff] %v647_v27 }
  0xf5   : > { %v649_v28 = vld [vmem:[%s1223_s19 + $0x30] sm:$0xff] }
  0xf6   : > { %v651_v29 = vld [vmem:[%s1223_s19 + $0x38] sm:$0xff]  ;;  %650 = vst [vmem:[%s624_s24 + $0xf0] sm:$0xff] %v649_v28 }
  0xf7   : > { %652 = vst [vmem:[%s624_s24 + $0xf8] sm:$0xff] %v651_v29 }
  0xf8 PF: > { %s13_s16 = sadd.s32 1, %s1002_s16   ;;  %s1267_s12 = smov %s990_s13 }
  0xf9   : > { %p10_p11 = scmp.ge.s32.totalorder %s13_s16, 9   ;;  %s1268_s13 = smov %s1065_s22 }
  0xfa   : > { %s1269_s14 = smov %s998_s15  ;;  %s1270_s15 = smov %s1272_s17 }
  0xfb   :  { %12 = sbr.rel (!%p10_p11) target bundleno = 3 (0x3), region = 124 }

// kernel: forward.30
= control target key start
LH: loop header
LB: loop body
LE: loop exit
PB: predicated region body
PF: predicated region fallthrough
CT: control target
= control target key end

     0   :  { %s451_s12 = smov 0   ;;  %s453_s13 = smov 0   ;;  %s541_s0 = inlined_call_operand.vmem [shape: f32[16,1024], index: 0, kind: input, shape index: {}]   ;;  %s542_s1 = inlined_call_operand.vmem [shape: f32[16,1], index: 1, kind: input, shape index: {}]   ;;  %s543_s2 = inlined_call_operand.vmem [shape: f32[16,1], index: 2, kind: input, shape index: {}]   ;;  %s544_s3 = inlined_call_operand.vmem [shape: f32[16,1024], index: 3, kind: output, shape index: {}]  }
   0x1   :  { %s455_s14 = smov 0  }
   0x2 LB: > { %s362_s15 = sadd.s32 4294967295, %s428_s14   ;;  %s468_s16 = sadd.s32 1, %s428_s14   ;;  %s428_s14 = sphi %s455_s14, %s548_s14   ;;  %s424_s13 = sphi %s453_s13, %s547_s13   ;;  %s420_s12 = sphi %s451_s12, %s546_s12  }
   0x3   : > { %s17_s17 = ssub.s32 %s428_s14, %s468_s16  ;;  %s20_s18 = sadd.s32 1, %s424_s13 }
   0x4   : > { %p18_p0 = scmp.eq.s32.totalorder %s17_s17, 0  ;;  %p27_p1 = scmp.ne.s32.totalorder %s424_s13, %s420_s12 }
   0x5   : > { %p28_p2 = scmp.eq.s32.totalorder %s428_s14, 0  ;;  %p99_p3 = scmp.eq.s32.totalorder %s362_s15, 1 }
   0x6   : > { %s479_s19 = scalar_select %p18_p0, %s424_s13, %s20_s18  }
   0x7   : > { %p29_p4 = por %p28_p2, %p27_p1  ;;  %p481_p5 = por %p99_p3, %p27_p1 }
   0x8   : > { %p365_p6 = scmp.ge.s32.totalorder %s428_s14, 2 }
   0xa   : > { %127 = sbr.rel (%p365_p6) target bundleno = 27 (0x1b), region = 24 }
   0xf   : > { %130 = sbr.rel (!%p29_p4) target bundleno = 27 (0x1b), region = 28  ;;  %s132_s21 = sand.u32 (%p29_p4), 1, %s424_s13  }
  0x10   : > { %s377_s22 = sshll.u32 (%p29_p4), %s428_s14, 5  ;;  %s366_s23 = sshll.u32 (%p29_p4), %s132_s21, 6 }
  0x11   : > { %s137_s26 = scalar_lea.vmem (%p29_p4), %s541_s0, %s377_s22  ;;  %s134_s27 = scalar_lea.vmem (%p29_p4), [#allocation2], %s366_s23 }
  0x12   : > { %v150_v0 = vld [vmem:[%s137_s26] sm:$0xff] (%p29_p4)  ;;  %v152_v1 = vld [vmem:[%s137_s26 + $0x8] sm:$0xff] (%p29_p4)  ;;  %v154_v2 = vld [vmem:[%s137_s26 + $0x10] sm:$0xff] (%p29_p4) }
  0x13   : > { %151 = vst [vmem:[%s134_s27] sm:$0xff] (%p29_p4), %v150_v0  ;;  %v156_v3 = vld [vmem:[%s137_s26 + $0x18] sm:$0xff] (%p29_p4)  ;;  %v158_v4 = vld [vmem:[%s137_s26 + $0x40] sm:$0xff] (%p29_p4)  ;;  %v160_v5 = vld [vmem:[%s137_s26 + $0x48] sm:$0xff] (%p29_p4) }
  0x14   : > { %153 = vst [vmem:[%s134_s27 + $0x8] sm:$0xff] %v152_v1  ;;  %v162_v6 = vld [vmem:[%s137_s26 + $0x50] sm:$0xff]  ;;  %v164_v7 = vld [vmem:[%s137_s26 + $0x58] sm:$0xff] }
  0x15   : > { %155 = vst [vmem:[%s134_s27 + $0x10] sm:$0xff] %v154_v2 }
  0x16   : > { %157 = vst [vmem:[%s134_s27 + $0x18] sm:$0xff] %v156_v3 }
  0x17   : > { %159 = vst [vmem:[%s134_s27 + $0x20] sm:$0xff] %v158_v4 }
  0x18   : > { %161 = vst [vmem:[%s134_s27 + $0x28] sm:$0xff] %v160_v5 }
  0x19   : > { %163 = vst [vmem:[%s134_s27 + $0x30] sm:$0xff] %v162_v6 }
  0x1a   : > { %165 = vst [vmem:[%s134_s27 + $0x38] sm:$0xff] %v164_v7 }
  0x1b PF: > { %p369_p7 = scmp.ge.s32.totalorder %s428_s14, 1  ;;  %p170_p8 = scmp.lt.s32.totalorder %s428_s14, 3 }
  0x1d   : > { %p171_p9 = pnand %p369_p7, %p170_p8 }
  0x1e   : > { %s177_s9 = sand.u32 (!%p171_p9), 1, %s420_s12  }
  0x1f   : > { %174 = sbr.rel (%p171_p9) target bundleno = 179 (0xb3), region = 51  ;;  %s370_s10 = sshll.u32 (!%p171_p9), %s177_s9, 6 }
  0x20   : > { %s179_s11 = scalar_lea.vmem (!%p171_p9), [#allocation2], %s370_s10  ;;  %s506_s12 = scalar_lea.vmem (!%p171_p9), [#allocation3], %s370_s10 }
  0x24   : > { %v229_v8 = vld [vmem:[%s543_s2] sm:$0xff]  ;;  %v430_v10 = vmov 0   ;;  %v230_v11 = vld [vmem:[%s543_s2 + $0x8] sm:$0xff]  ;;  %v203_v15 = vld [vmem:[%s179_s11 + $0x10] sm:$0xff]  ;;  %s378_s17 = sshll.u32 (%p481_p5), %s362_s15, 5 }
  0x25   : > { %v209_v9 = vld [vmem:[%s542_s1] sm:$0xff]  ;;  %405 = vset.pattern.permute.xlu1 %v430_v10  ;;  %404 = vset.pattern.permute.xlu0 %v430_v10  ;;  %v210_v12 = vld [vmem:[%s542_s1 + $0x8] sm:$0xff]  ;;  %v204_v16 = vld [vmem:[%s179_s11 + $0x18] sm:$0xff]  ;;  %s274_s22 = scalar_lea.vmem (%p481_p5), %s544_s3, %s378_s17 }
  0x26   : > { %233 = vperm.xlu1 %405, %v229_v8   ;;  %213 = vperm.xlu0 %404, %v209_v9   ;;  %v201_v13 = vld [vmem:[%s179_s11] sm:$0xff]  ;;  %v202_v14 = vld [vmem:[%s179_s11 + $0x8] sm:$0xff]  ;;  %v207_v33 = vld [vmem:[%s179_s11 + $0x30] sm:$0xff] }
  0x27   : > { %v205_v30 = vld [vmem:[%s179_s11 + $0x20] sm:$0xff]  ;;  %v206_v32 = vld [vmem:[%s179_s11 + $0x28] sm:$0xff]  ;;  %v208_v34 = vld [vmem:[%s179_s11 + $0x38] sm:$0xff] }
  0x2e   : > { %238 = vperm.xlu1 %405, %v230_v11   ;;  %218 = vperm.xlu0 %404, %v210_v12  }
  0x98   : > { %v234_v17 = vpop.permute.xlu1 %233  ;;  %v214_v18 = vpop.permute.xlu0 %213 }
  0x99   : > { %v221_v19 = vmul.f32 %v214_v18, %v201_v13  ;;  %v222_v20 = vmul.f32 %v214_v18, %v202_v14  ;;  %v223_v21 = vmul.f32 %v214_v18, %v203_v15  ;;  %v224_v22 = vmul.f32 %v214_v18, %v204_v16 }
  0x9b   : > { %v241_v23 = vadd.f32 %v234_v17, %v221_v19  ;;  %v242_v24 = vadd.f32 %v234_v17, %v222_v20  ;;  %v243_v25 = vadd.f32 %v234_v17, %v223_v21  ;;  %v244_v26 = vadd.f32 %v234_v17, %v224_v22 }
  0x9d   : > { %v249_v27 = vmax.f32 %v241_v23, 0.0  ;;  %v250_v28 = vmax.f32 %v242_v24, 0.0  ;;  %v251_v29 = vmax.f32 %v243_v25, 0.0  ;;  %v252_v31 = vmax.f32 %v244_v26, 0.0 }
  0x9f   : > { %257 = vst [vmem:[%s506_s12] sm:$0xff] %v249_v27 }
  0xa0   : > { %258 = vst [vmem:[%s506_s12 + $0x8] sm:$0xff] %v250_v28  ;;  %v219_v35 = vpop.permute.xlu0 %218  ;;  %v239_v40 = vpop.permute.xlu1 %238 }
  0xa1   : > { %259 = vst [vmem:[%s506_s12 + $0x10] sm:$0xff] %v251_v29  ;;  %v225_v36 = vmul.f32 %v219_v35, %v205_v30  ;;  %v226_v37 = vmul.f32 %v219_v35, %v206_v32  ;;  %v227_v38 = vmul.f32 %v219_v35, %v207_v33  ;;  %v228_v39 = vmul.f32 %v219_v35, %v208_v34 }
  0xa2   : > { %260 = vst [vmem:[%s506_s12 + $0x18] sm:$0xff] %v252_v31 }
  0xa3   : > { %v245_v41 = vadd.f32 %v239_v40, %v225_v36  ;;  %v246_v42 = vadd.f32 %v239_v40, %v226_v37  ;;  %v247_v43 = vadd.f32 %v239_v40, %v227_v38  ;;  %v248_v44 = vadd.f32 %v239_v40, %v228_v39 }
  0xa5   : > { %v253_v45 = vmax.f32 %v245_v41, 0.0  ;;  %v254_v46 = vmax.f32 %v246_v42, 0.0  ;;  %v255_v47 = vmax.f32 %v247_v43, 0.0  ;;  %v256_v48 = vmax.f32 %v248_v44, 0.0 }
  0xa6   : > { %271 = sbr.rel (!%p481_p5) target bundleno = 179 (0xb3), region = 59  ;;  %v287_v49 = vld [vmem:[%s506_s12] sm:$0xff] (%p481_p5) }
  0xa7   : > { %261 = vst [vmem:[%s506_s12 + $0x20] sm:$0xff] %v253_v45  ;;  %v289_v50 = vld [vmem:[%s506_s12 + $0x8] sm:$0xff] (%p481_p5) }
  0xa8   : > { %262 = vst [vmem:[%s506_s12 + $0x28] sm:$0xff] %v254_v46  ;;  %v291_v51 = vld [vmem:[%s506_s12 + $0x10] sm:$0xff] (%p481_p5) }
  0xa9   : > { %263 = vst [vmem:[%s506_s12 + $0x30] sm:$0xff] %v255_v47  ;;  %v293_v52 = vld [vmem:[%s506_s12 + $0x18] sm:$0xff] (%p481_p5) }
  0xaa   : > { %264 = vst [vmem:[%s506_s12 + $0x38] sm:$0xff] %v256_v48 }
  0xab   : > { %288 = vst [vmem:[%s274_s22] sm:$0xff] %v287_v49 }
  0xac   : > { %290 = vst [vmem:[%s274_s22 + $0x8] sm:$0xff] %v289_v50 }
  0xad   : > { %292 = vst [vmem:[%s274_s22 + $0x10] sm:$0xff] %v291_v51 }
  0xae   : > { %v295_v53 = vld [vmem:[%s506_s12 + $0x20] sm:$0xff]  ;;  %294 = vst [vmem:[%s274_s22 + $0x18] sm:$0xff] %v293_v52 }
  0xaf   : > { %v297_v54 = vld [vmem:[%s506_s12 + $0x28] sm:$0xff]  ;;  %296 = vst [vmem:[%s274_s22 + $0x40] sm:$0xff] %v295_v53 }
  0xb0   : > { %v299_v55 = vld [vmem:[%s506_s12 + $0x30] sm:$0xff]  ;;  %298 = vst [vmem:[%s274_s22 + $0x48] sm:$0xff] %v297_v54 }
  0xb1   : > { %v301_v56 = vld [vmem:[%s506_s12 + $0x38] sm:$0xff]  ;;  %300 = vst [vmem:[%s274_s22 + $0x50] sm:$0xff] %v299_v55 }
  0xb2   : > { %302 = vst [vmem:[%s274_s22 + $0x58] sm:$0xff] %v301_v56 }
  0xb3 PF: > { %p10_p10 = scmp.ge.s32.totalorder %s468_s16, 4   ;;  %s546_s12 = smov %s424_s13 }
  0xb4   : > { %s547_s13 = smov %s479_s19  ;;  %s548_s14 = smov %s468_s16 }
  0xb5   :  { %12 = sbr.rel (!%p10_p10) target bundleno = 2 (0x2), region = 113 }

// kernel: forward.32
= control target key start
LH: loop header
LB: loop body
LE: loop exit
PB: predicated region body
PF: predicated region fallthrough
CT: control target
= control target key end

     0   :  { %s308_s12 = smov 0   ;;  %s331_s0 = inlined_call_operand.vmem [shape: f32[8,1024], index: 0, kind: input, shape index: {}]   ;;  %s332_s1 = inlined_call_operand.vmem [shape: f32[8,1], index: 1, kind: input, shape index: {}]   ;;  %s333_s2 = inlined_call_operand.vmem [shape: f32[8,1], index: 2, kind: input, shape index: {}]   ;;  %s334_s3 = inlined_call_operand.vmem [shape: f32[8,1024], index: 3, kind: output, shape index: {}]  }
   0x1 LB: > { %s258_s13 = sadd.s32 4294967295, %s285_s12   ;;  %p262_p0 = scmp.ge.s32.totalorder %s285_s12, 1  ;;  %s285_s12 = sphi %s308_s12, %s13_s12  }
   0x2   : > { %p138_p1 = scmp.lt.s32.totalorder %s285_s12, 3 }
   0x4   : > { %p139_p2 = pnand %p262_p0, %p138_p1 }
   0x5   : > { %s263_s18 = sshll.u32 (!%p139_p2), %s258_s13, 2 }
   0x6   : > { %142 = sbr.rel (%p139_p2) target bundleno = 142 (0x8e), region = 32  ;;  %p163_p3 = scmp.lt.s32.totalorder (!%p139_p2), %s263_s18, 7 }
   0xb   : > { %v178_v0 = vld [vmem:[%s332_s1] sm:$0xff]  ;;  %v287_v1 = vmov 0   ;;  %s336_s18 = smov (!%p163_p3, %s263_s18), 7 }
   0xc   : > { %278 = vset.pattern.permute.xlu0 %v287_v1  ;;  %v188_v2 = vld [vmem:[%s333_s2] sm:$0xff]  ;;  %s264_s19 = sshll.u32 %s336_s18, 3 }
   0xd   : > { %181 = vperm.xlu0 %278, %v178_v0   ;;  %s166_s22 = scalar_lea.vmem %s331_s0, %s264_s19  ;;  %s172_s25 = scalar_lea.vmem %s334_s3, %s264_s19 }
   0xe   : > { %v174_v4 = vld [vmem:[%s166_s22] sm:$0xff]  ;;  %v175_v5 = vld [vmem:[%s166_s22 + $0x8] sm:$0xff]  ;;  %v176_v6 = vld [vmem:[%s166_s22 + $0x10] sm:$0xff] }
   0xf   : > { %v177_v7 = vld [vmem:[%s166_s22 + $0x18] sm:$0xff] }
  0x15   : > { %191 = vperm.xlu0 %278, %v188_v2  }
  0x7f   : > { %v182_v3 = vpop.permute.xlu0 %181 }
  0x80   : > { %v184_v8 = vmul.f32 %v182_v3, %v174_v4  ;;  %v185_v9 = vmul.f32 %v182_v3, %v175_v5  ;;  %v186_v11 = vmul.f32 %v182_v3, %v176_v6  ;;  %v187_v14 = vmul.f32 %v182_v3, %v177_v7 }
  0x87   : > { %v192_v10 = vpop.permute.xlu0 %191 }
  0x88   : > { %v194_v12 = vadd.f32 %v192_v10, %v184_v8  ;;  %v195_v13 = vadd.f32 %v192_v10, %v185_v9  ;;  %v196_v15 = vadd.f32 %v192_v10, %v186_v11  ;;  %v197_v16 = vadd.f32 %v192_v10, %v187_v14 }
  0x8a   : > { %198 = vst [vmem:[%s172_s25] sm:$0xff] %v194_v12 }
  0x8b   : > { %199 = vst [vmem:[%s172_s25 + $0x8] sm:$0xff] %v195_v13 }
  0x8c   : > { %200 = vst [vmem:[%s172_s25 + $0x10] sm:$0xff] %v196_v15 }
  0x8d   : > { %201 = vst [vmem:[%s172_s25 + $0x18] sm:$0xff] %v197_v16 }
  0x8e PF: > { %s13_s12 = sadd.s32 1, %s285_s12  }
  0x8f   : > { %p10_p4 = scmp.ge.s32.totalorder %s13_s12, 4  }
  0x91   :  { %12 = sbr.rel (!%p10_p4) target bundleno = 1 (0x1), region = 62 }

// kernel: forward.31
= control target key start
LH: loop header
LB: loop body
LE: loop exit
PB: predicated region body
PF: predicated region fallthrough
CT: control target
= control target key end

     0   :  { %s1025_s12 = smov 0   ;;  %s1027_s13 = smov 0   ;;  %s1262_s0 = inlined_call_operand.vmem [shape: bf16[16,128], index: 0, kind: input, shape index: {}]   ;;  %s1263_s1 = inlined_call_operand.vmem [shape: bf16[128,1024], index: 1, kind: input, shape index: {}]   ;;  %s1264_s2 = inlined_call_operand.vmem [shape: f32[16,1], index: 2, kind: input, shape index: {}]   ;;  %s1265_s3 = inlined_call_operand.vmem [shape: f32[16,1024], index: 3, kind: output, shape index: {}]  }
   0x1   :  { %s1029_s14 = smov 0   ;;  %s1031_s15 = smov 0  }
   0x2   :  { %s1033_s16 = smov 0  }
   0x3 LB: > { %s25_s17 = sadd.s32 1, %s998_s15  ;;  %s739_s18 = sadd.s32 4294967295, %s1002_s16   ;;  %s1002_s16 = sphi %s1033_s16, %s13_s16   ;;  %s998_s15 = sphi %s1031_s15, %s1270_s15   ;;  %s994_s14 = sphi %s1029_s14, %s1269_s14   ;;  %s990_s13 = sphi %s1027_s13, %s1268_s13   ;;  %s986_s12 = sphi %s1025_s12, %s1267_s12  }
   0x4   : > { %p27_p0 = scmp.ge.s32.totalorder %s25_s17, 2  ;;  %p67_p1 = scmp.ne.s32.totalorder %s990_s13, %s986_s12 }
   0x5   : > { %p68_p2 = scmp.eq.s32.totalorder %s1002_s16, 0  ;;  %p118_p4 = scmp.eq.s32.totalorder %s739_s18, 1 }
   0x6   : > { %s1272_s17 = smov (%p27_p0, %s25_s17), 0  ;;  %s60_s20 = sadd.s32 1, %s990_s13 }
   0x7   : > { %p69_p3 = por %p68_p2, %p67_p1  ;;  %s56_s19 = ssub.s32 %s998_s15, %s1272_s17 }
   0x8   : > { %p58_p5 = scmp.eq.s32.totalorder %s56_s19, 0  ;;  %p1060_p6 = por %p118_p4, %p67_p1 }
   0x9   : > { %p743_p7 = scmp.ge.s32.totalorder %s1002_s16, 2 }
   0xa   : > { %s1065_s22 = scalar_select %p58_p5, %s990_s13, %s60_s20  }
   0xb   : > { %150 = sbr.rel (%p743_p7) target bundleno = 52 (0x34), region = 24 }
  0x10   : > { %153 = sbr.rel (!%p69_p3) target bundleno = 52 (0x34), region = 28  ;;  %s155_s23 = sand.u32 (%p69_p3), 1, %s990_s13  }
  0x11   : > { %s887_s24 = sshll.u32 (%p69_p3), %s998_s15, 4  ;;  %s744_s25 = sshll.u32 (%p69_p3), %s155_s23, 8 }
  0x12   : > { %s1073_s28 = scalar_lea.vmem (%p69_p3), %s1263_s1, %s887_s24  ;;  %s1078_s29 = scalar_lea.vmem (%p69_p3), [#allocation3], %s744_s25 }
  0x13   : > { %v176_v0 = vld [vmem:[%s1073_s28] sm:$0xff] (%p69_p3)  ;;  %v178_v1 = vld [vmem:[%s1073_s28 + $0x8] sm:$0xff] (%p69_p3) }
  0x14   : > { %v180_v2 = vld [vmem:[%s1073_s28 + $0x20] sm:$0xff] (%p69_p3)  ;;  %177 = vst [vmem:[%s1078_s29] sm:$0xff] (%p69_p3), %v176_v0  ;;  %v182_v3 = vld [vmem:[%s1073_s28 + $0x28] sm:$0xff] (%p69_p3) }
  0x15   : > { %179 = vst [vmem:[%s1078_s29 + $0x8] sm:$0xff] %v178_v1  ;;  %v184_v4 = vld [vmem:[%s1073_s28 + $0x40] sm:$0xff]  ;;  %v186_v5 = vld [vmem:[%s1073_s28 + $0x48] sm:$0xff] }
  0x16   : > { %181 = vst [vmem:[%s1078_s29 + $0x10] sm:$0xff] %v180_v2  ;;  %v188_v6 = vld [vmem:[%s1073_s28 + $0x60] sm:$0xff]  ;;  %v190_v7 = vld [vmem:[%s1073_s28 + $0x68] sm:$0xff] }
  0x17   : > { %183 = vst [vmem:[%s1078_s29 + $0x18] sm:$0xff] %v182_v3  ;;  %v192_v8 = vld [vmem:[%s1073_s28 + $0x80] sm:$0xff]  ;;  %v194_v9 = vld [vmem:[%s1073_s28 + $0x88] sm:$0xff] }
  0x18   : > { %185 = vst [vmem:[%s1078_s29 + $0x20] sm:$0xff] %v184_v4  ;;  %v196_v10 = vld [vmem:[%s1073_s28 + $0xa0] sm:$0xff]  ;;  %v198_v11 = vld [vmem:[%s1073_s28 + $0xa8] sm:$0xff] }
  0x19   : > { %187 = vst [vmem:[%s1078_s29 + $0x28] sm:$0xff] %v186_v5  ;;  %v200_v12 = vld [vmem:[%s1073_s28 + $0xc0] sm:$0xff]  ;;  %v202_v13 = vld [vmem:[%s1073_s28 + $0xc8] sm:$0xff] }
  0x1a   : > { %189 = vst [vmem:[%s1078_s29 + $0x30] sm:$0xff] %v188_v6  ;;  %v204_v14 = vld [vmem:[%s1073_s28 + $0xe0] sm:$0xff]  ;;  %v206_v15 = vld [vmem:[%s1073_s28 + $0xe8] sm:$0xff] }
  0x1b   : > { %191 = vst [vmem:[%s1078_s29 + $0x38] sm:$0xff] %v190_v7  ;;  %v208_v16 = vld [vmem:[%s1073_s28 + $0x100] sm:$0xff]  ;;  %v210_v17 = vld [vmem:[%s1073_s28 + $0x108] sm:$0xff] }
  0x1c   : > { %193 = vst [vmem:[%s1078_s29 + $0x40] sm:$0xff] %v192_v8  ;;  %v212_v18 = vld [vmem:[%s1073_s28 + $0x120] sm:$0xff]  ;;  %v214_v19 = vld [vmem:[%s1073_s28 + $0x128] sm:$0xff] }
  0x1d   : > { %195 = vst [vmem:[%s1078_s29 + $0x48] sm:$0xff] %v194_v9  ;;  %v216_v20 = vld [vmem:[%s1073_s28 + $0x140] sm:$0xff]  ;;  %v218_v21 = vld [vmem:[%s1073_s28 + $0x148] sm:$0xff] }
  0x1e   : > { %197 = vst [vmem:[%s1078_s29 + $0x50] sm:$0xff] %v196_v10  ;;  %v220_v22 = vld [vmem:[%s1073_s28 + $0x160] sm:$0xff]  ;;  %v222_v23 = vld [vmem:[%s1073_s28 + $0x168] sm:$0xff] }
  0x1f   : > { %199 = vst [vmem:[%s1078_s29 + $0x58] sm:$0xff] %v198_v11  ;;  %v224_v24 = vld [vmem:[%s1073_s28 + $0x180] sm:$0xff]  ;;  %v226_v25 = vld [vmem:[%s1073_s28 + $0x188] sm:$0xff] }
  0x20   : > { %201 = vst [vmem:[%s1078_s29 + $0x60] sm:$0xff] %v200_v12  ;;  %v228_v26 = vld [vmem:[%s1073_s28 + $0x1a0] sm:$0xff]  ;;  %v230_v27 = vld [vmem:[%s1073_s28 + $0x1a8] sm:$0xff] }
  0x21   : > { %203 = vst [vmem:[%s1078_s29 + $0x68] sm:$0xff] %v202_v13  ;;  %v232_v28 = vld [vmem:[%s1073_s28 + $0x1c0] sm:$0xff]  ;;  %v234_v29 = vld [vmem:[%s1073_s28 + $0x1c8] sm:$0xff] }
  0x22   : > { %205 = vst [vmem:[%s1078_s29 + $0x70] sm:$0xff] %v204_v14  ;;  %v236_v30 = vld [vmem:[%s1073_s28 + $0x1e0] sm:$0xff]  ;;  %v238_v31 = vld [vmem:[%s1073_s28 + $0x1e8] sm:$0xff] }
  0x23   : > { %207 = vst [vmem:[%s1078_s29 + $0x78] sm:$0xff] %v206_v15 }
  0x24   : > { %209 = vst [vmem:[%s1078_s29 + $0x80] sm:$0xff] %v208_v16 }
  0x25   : > { %211 = vst [vmem:[%s1078_s29 + $0x88] sm:$0xff] %v210_v17 }
  0x26   : > { %213 = vst [vmem:[%s1078_s29 + $0x90] sm:$0xff] %v212_v18 }
  0x27   : > { %215 = vst [vmem:[%s1078_s29 + $0x98] sm:$0xff] %v214_v19 }
  0x28   : > { %217 = vst [vmem:[%s1078_s29 + $0xa0] sm:$0xff] %v216_v20 }
  0x29   : > { %219 = vst [vmem:[%s1078_s29 + $0xa8] sm:$0xff] %v218_v21 }
  0x2a   : > { %221 = vst [vmem:[%s1078_s29 + $0xb0] sm:$0xff] %v220_v22 }
  0x2b   : > { %223 = vst [vmem:[%s1078_s29 + $0xb8] sm:$0xff] %v222_v23 }
  0x2c   : > { %225 = vst [vmem:[%s1078_s29 + $0xc0] sm:$0xff] %v224_v24 }
  0x2d   : > { %227 = vst [vmem:[%s1078_s29 + $0xc8] sm:$0xff] %v226_v25 }
  0x2e   : > { %229 = vst [vmem:[%s1078_s29 + $0xd0] sm:$0xff] %v228_v26 }
  0x2f   : > { %231 = vst [vmem:[%s1078_s29 + $0xd8] sm:$0xff] %v230_v27 }
  0x30   : > { %233 = vst [vmem:[%s1078_s29 + $0xe0] sm:$0xff] %v232_v28 }
  0x31   : > { %235 = vst [vmem:[%s1078_s29 + $0xe8] sm:$0xff] %v234_v29 }
  0x32   : > { %237 = vst [vmem:[%s1078_s29 + $0xf0] sm:$0xff] %v236_v30 }
  0x33   : > { %239 = vst [vmem:[%s1078_s29 + $0xf8] sm:$0xff] %v238_v31 }
  0x34 PF: > { %p747_p8 = scmp.ge.s32.totalorder %s1002_s16, 1  ;;  %p244_p9 = scmp.lt.s32.totalorder %s1002_s16, 3 }
  0x36   : > { %p245_p10 = pnand %p747_p8, %p244_p9 }
  0x37   : > { %s251_s30 = sand.u32 (!%p245_p10), 1, %s986_s12  }
  0x38   : > { %248 = sbr.rel (%p245_p10) target bundleno = 248 (0xf8), region = 51  ;;  %s748_s4 = sshll.u32 (!%p245_p10), %s251_s30, 8 }
  0x39   : > { %s1146_s5 = scalar_lea.vmem (!%p245_p10), [#allocation3], %s748_s4  ;;  %s749_s18 = sshll.u32 (!%p245_p10), %s251_s30, 6 }
  0x3a   : > { %s1223_s19 = scalar_lea.vmem (!%p245_p10), [#allocation4], %s749_s18 }
  0x3d   : > { %v868_v32 = vld [vmem:[%s1146_s5 + $0xe0] sm:$0xf]  ;;  %v919_v33 = vld [vmem:[%s1146_s5 + $0xec] sm:$0xf0]  ;;  %v917_v34 = vld [vmem:[%s1146_s5 + $0xe4] sm:$0xf] }
  0x3e   : > { %v869_v35 = vor.u32 %v919_v33, %v868_v32  ;;  %v870_v36 = vld [vmem:[%s1146_s5 + $0xf0] sm:$0xf0]  ;;  %v876_v37 = vld [vmem:[%s1146_s5 + $0xe8] sm:$0xf]  ;;  %v920_v38 = vld [vmem:[%s1146_s5 + $0xf4] sm:$0xf0] }
  0x3f   : > { %v873_v39 = vor.u32 %v917_v34, %v870_v36  ;;  %v877_v40 = vor.u32 %v920_v38, %v876_v37  ;;  %v918_v41 = vld [vmem:[%s1146_s5 + $0xec] sm:$0xf]  ;;  %v878_v42 = vld [vmem:[%s1146_s5 + $0xf8] sm:$0xf0]  ;;  %v852_v43 = vld [vmem:[%s1146_s5 + $0xc0] sm:$0xf] }
  0x40   : > { %504 = vmatpush.bf16.msra.mxu0 %v869_v35  ;;  %v881_v44 = vor.u32 %v918_v41, %v878_v42  ;;  %v915_v45 = vld [vmem:[%s1146_s5 + $0xcc] sm:$0xf0]  ;;  %v913_v46 = vld [vmem:[%s1146_s5 + $0xc4] sm:$0xf]  ;;  %v854_v47 = vld [vmem:[%s1146_s5 + $0xd0] sm:$0xf0] }
  0x41   : > { %518 = vmatpush.bf16.msra.mxu1 %v873_v39  ;;  %532 = vmatpush.bf16.msra.mxu2 %v877_v40  ;;  %v853_v48 = vor.u32 %v915_v45, %v852_v43  ;;  %v857_v49 = vor.u32 %v913_v46, %v854_v47  ;;  %v860_v50 = vld [vmem:[%s1146_s5 + $0xc8] sm:$0xf]  ;;  %v916_v51 = vld [vmem:[%s1146_s5 + $0xd4] sm:$0xf0]  ;;  %v914_v52 = vld [vmem:[%s1146_s5 + $0xcc] sm:$0xf] }
  0x42   : > { %546 = vmatpush.bf16.msra.mxu3 %v881_v44  ;;  %v861_v53 = vor.u32 %v916_v51, %v860_v50  ;;  %v862_v54 = vld [vmem:[%s1146_s5 + $0xd8] sm:$0xf0]  ;;  %v836_v55 = vld [vmem:[%s1146_s5 + $0xa0] sm:$0xf]  ;;  %v911_v56 = vld [vmem:[%s1146_s5 + $0xac] sm:$0xf0] }
  0x43   : > { %v865_v57 = vor.u32 %v914_v52, %v862_v54  ;;  %v909_v58 = vld [vmem:[%s1146_s5 + $0xa4] sm:$0xf]  ;;  %v838_v59 = vld [vmem:[%s1146_s5 + $0xb0] sm:$0xf0]  ;;  %v844_v60 = vld [vmem:[%s1146_s5 + $0xa8] sm:$0xf]  ;;  %v837_v61 = vor.u32 %v911_v56, %v836_v55 }
  0x44   : > { %505 = vmatpush.bf16.msra.mxu0 %v853_v48  ;;  %v912_v62 = vld [vmem:[%s1146_s5 + $0xb4] sm:$0xf0]  ;;  %v910_v63 = vld [vmem:[%s1146_s5 + $0xac] sm:$0xf]  ;;  %v846_v0 = vld [vmem:[%s1146_s5 + $0xb8] sm:$0xf0]  ;;  %v841_v1 = vor.u32 %v909_v58, %v838_v59 }
  0x45   : > { %519 = vmatpush.bf16.msra.mxu1 %v857_v49  ;;  %533 = vmatpush.bf16.msra.mxu2 %v861_v53  ;;  %v845_v2 = vor.u32 %v912_v62, %v844_v60  ;;  %v820_v3 = vld [vmem:[%s1146_s5 + $0x80] sm:$0xf]  ;;  %v907_v4 = vld [vmem:[%s1146_s5 + $0x8c] sm:$0xf0]  ;;  %v905_v5 = vld [vmem:[%s1146_s5 + $0x84] sm:$0xf]  ;;  %v849_v6 = vor.u32 %v910_v63, %v846_v0 }
  0x46   : > { %547 = vmatpush.bf16.msra.mxu3 %v865_v57  ;;  %v822_v7 = vld [vmem:[%s1146_s5 + $0x90] sm:$0xf0]  ;;  %v828_v8 = vld [vmem:[%s1146_s5 + $0x88] sm:$0xf]  ;;  %v908_v9 = vld [vmem:[%s1146_s5 + $0x94] sm:$0xf0]  ;;  %v821_v12 = vor.u32 %v907_v4, %v820_v3 }
  0x47   : > { %v906_v10 = vld [vmem:[%s1146_s5 + $0x8c] sm:$0xf]  ;;  %v830_v11 = vld [vmem:[%s1146_s5 + $0x98] sm:$0xf0]  ;;  %v825_v13 = vor.u32 %v905_v5, %v822_v7  ;;  %v829_v14 = vor.u32 %v908_v9, %v828_v8  ;;  %v804_v15 = vld [vmem:[%s1146_s5 + $0x60] sm:$0xf] }
  0x48   : > { %506 = vmatpush.bf16.msra.mxu0 %v837_v61  ;;  %v903_v16 = vld [vmem:[%s1146_s5 + $0x6c] sm:$0xf0]  ;;  %v901_v17 = vld [vmem:[%s1146_s5 + $0x64] sm:$0xf]  ;;  %v833_v18 = vor.u32 %v906_v10, %v830_v11  ;;  %v806_v19 = vld [vmem:[%s1146_s5 + $0x70] sm:$0xf0] }
  0x49   : > { %520 = vmatpush.bf16.msra.mxu1 %v841_v1  ;;  %534 = vmatpush.bf16.msra.mxu2 %v845_v2  ;;  %v812_v20 = vld [vmem:[%s1146_s5 + $0x68] sm:$0xf]  ;;  %v904_v21 = vld [vmem:[%s1146_s5 + $0x74] sm:$0xf0]  ;;  %v902_v22 = vld [vmem:[%s1146_s5 + $0x6c] sm:$0xf]  ;;  %v805_v24 = vor.u32 %v903_v16, %v804_v15  ;;  %v809_v25 = vor.u32 %v901_v17, %v806_v19 }
  0x4a   : > { %548 = vmatpush.bf16.msra.mxu3 %v849_v6  ;;  %v814_v23 = vld [vmem:[%s1146_s5 + $0x78] sm:$0xf0]  ;;  %v813_v26 = vor.u32 %v904_v21, %v812_v20  ;;  %v788_v27 = vld [vmem:[%s1146_s5 + $0x40] sm:$0xf]  ;;  %v899_v28 = vld [vmem:[%s1146_s5 + $0x4c] sm:$0xf0] }
  0x4b   : > { %v897_v29 = vld [vmem:[%s1146_s5 + $0x44] sm:$0xf]  ;;  %v817_v30 = vor.u32 %v902_v22, %v814_v23  ;;  %v790_v31 = vld [vmem:[%s1146_s5 + $0x50] sm:$0xf0]  ;;  %v796_v32 = vld [vmem:[%s1146_s5 + $0x48] sm:$0xf]  ;;  %v789_v36 = vor.u32 %v899_v28, %v788_v27 }
  0x4c   : > { %507 = vmatpush.bf16.msra.mxu0 %v821_v12  ;;  %v900_v33 = vld [vmem:[%s1146_s5 + $0x54] sm:$0xf0]  ;;  %v898_v34 = vld [vmem:[%s1146_s5 + $0x4c] sm:$0xf]  ;;  %v798_v35 = vld [vmem:[%s1146_s5 + $0x58] sm:$0xf0]  ;;  %v793_v38 = vor.u32 %v897_v29, %v790_v31 }
  0x4d   : > { %521 = vmatpush.bf16.msra.mxu1 %v825_v13  ;;  %535 = vmatpush.bf16.msra.mxu2 %v829_v14  ;;  %v772_v37 = vld [vmem:[%s1146_s5 + $0x20] sm:$0xf]  ;;  %v797_v39 = vor.u32 %v900_v33, %v796_v32  ;;  %v895_v40 = vld [vmem:[%s1146_s5 + $0x2c] sm:$0xf0]  ;;  %v893_v41 = vld [vmem:[%s1146_s5 + $0x24] sm:$0xf]  ;;  %v801_v43 = vor.u32 %v898_v34, %v798_v35 }
  0x4e   : > { %549 = vmatpush.bf16.msra.mxu3 %v833_v18  ;;  %v774_v42 = vld [vmem:[%s1146_s5 + $0x30] sm:$0xf0]  ;;  %v780_v44 = vld [vmem:[%s1146_s5 + $0x28] sm:$0xf]  ;;  %v896_v45 = vld [vmem:[%s1146_s5 + $0x34] sm:$0xf0]  ;;  %v773_v50 = vor.u32 %v895_v40, %v772_v37 }
  0x4f   : > { %v587_v46 = vld [vmem:[%s1264_s2] sm:$0xff]  ;;  %v894_v47 = vld [vmem:[%s1146_s5 + $0x2c] sm:$0xf]  ;;  %v782_v48 = vld [vmem:[%s1146_s5 + $0x38] sm:$0xf0]  ;;  %v1004_v49 = vmov 0   ;;  %v777_v51 = vor.u32 %v893_v41, %v774_v42  ;;  %v781_v52 = vor.u32 %v896_v45, %v780_v44 }
  0x50   : > { %508 = vmatpush.bf16.msra.mxu0 %v805_v24  ;;  %963 = vset.pattern.permute.xlu0 %v1004_v49  ;;  %v756_v53 = vld [vmem:[%s1146_s5] sm:$0xf]  ;;  %v891_v54 = vld [vmem:[%s1146_s5 + $0xc] sm:$0xf0]  ;;  %v889_v55 = vld [vmem:[%s1146_s5 + $0x4] sm:$0xf]  ;;  %v785_v56 = vor.u32 %v894_v47, %v782_v48 }
  0x51   : > { %522 = vmatpush.bf16.msra.mxu1 %v809_v25  ;;  %536 = vmatpush.bf16.msra.mxu2 %v813_v26  ;;  %v758_v57 = vld [vmem:[%s1146_s5 + $0x10] sm:$0xf0]  ;;  %v764_v58 = vld [vmem:[%s1146_s5 + $0x8] sm:$0xf]  ;;  %v892_v59 = vld [vmem:[%s1146_s5 + $0x14] sm:$0xf0]  ;;  %v757_v62 = vor.u32 %v891_v54, %v756_v53 }
  0x52   : > { %550 = vmatpush.bf16.msra.mxu3 %v817_v30  ;;  %591 = vperm.xlu0 %963, %v587_v46   ;;  %v890_v60 = vld [vmem:[%s1146_s5 + $0xc] sm:$0xf]  ;;  %v766_v61 = vld [vmem:[%s1146_s5 + $0x18] sm:$0xf0]  ;;  %v761_v63 = vor.u32 %v889_v55, %v758_v57  ;;  %v765_v0 = vor.u32 %v892_v59, %v764_v58  ;;  %v888_v3 = vld [vmem:[%s1262_s0] sm:$0xff]  ;;  %s921_s12 = sshll.u32 (%p1060_p6), %s994_s14, 5 }
  0x53   : > { %v588_v1 = vld [vmem:[%s1264_s2 + $0x8] sm:$0xff]  ;;  %v769_v2 = vor.u32 %v890_v60, %v766_v61  ;;  %s624_s24 = scalar_lea.vmem (%p1060_p6), %s1265_s3, %s921_s12 }
  0x54   : > { %509 = vmatpush.bf16.msra.mxu0 %v789_v36 }
  0x55   : > { %523 = vmatpush.bf16.msra.mxu1 %v793_v38  ;;  %537 = vmatpush.bf16.msra.mxu2 %v797_v39 }
  0x56   : > { %551 = vmatpush.bf16.msra.mxu3 %v801_v43 }
  0x58   : > { %510 = vmatpush.bf16.msra.mxu0 %v773_v50 }
  0x59   : > { %524 = vmatpush.bf16.msra.mxu1 %v777_v51  ;;  %538 = vmatpush.bf16.msra.mxu2 %v781_v52 }
  0x5a   : > { %552 = vmatpush.bf16.msra.mxu3 %v785_v56  ;;  %596 = vperm.xlu0 %963, %v588_v1  }
  0x5c   : > { %511 = vmatpush.bf16.msra.mxu0 %v757_v62 }
  0x5d   : > { %525 = vmatpush.bf16.msra.mxu1 %v761_v63  ;;  %539 = vmatpush.bf16.msra.mxu2 %v765_v0 }
  0x5e   : > { %553 = vmatpush.bf16.msra.mxu3 %v769_v2 }
  0x5f   : > { %512 = vmatmul.bf16.vlgmr.msra.gmra.mxu0 %v888_v3 }
  0x60   : > { %526 = vmatmul.bf16.vlgmr.msra.gmra.mxu1 %v888_v3  ;;  %540 = vmatmul.bf16.vlgmr.msra.gmra.mxu2 %v888_v3 }
  0x61   : > { %554 = vmatmul.bf16.vlgmr.msra.gmra.mxu3 %v888_v3 }
  0xc4   : > { %v592_v4 = vpop.permute.xlu0 %591 }
  0xcc   : > { %v597_v9 = vpop.permute.xlu0 %596 }
  0xdc   : > { %v513_v5 = vpop.f32.mrf.mxu0 }
  0xdd   : > { %v599_v6 = vadd.f32 %v592_v4, %v513_v5  ;;  %v527_v7 = vpop.f32.mrf.mxu1 }
  0xde   : > { %v600_v8 = vadd.f32 %v592_v4, %v527_v7 }
  0xdf   : > { %607 = vst [vmem:[%s1223_s19] sm:$0xff] %v599_v6 }
  0xe0   : > { %608 = vst [vmem:[%s1223_s19 + $0x8] sm:$0xff] %v600_v8 }
  0xe3   : > { %v541_v10 = vpop.f32.mrf.mxu2 }
  0xe4   : > { %v601_v11 = vadd.f32 %v592_v4, %v541_v10  ;;  %v555_v12 = vpop.f32.mrf.mxu3  ;;  %v515_v13 = vpop.f32.mrf.mxu0 }
  0xe5   : > { %v602_v14 = vadd.f32 %v592_v4, %v555_v12  ;;  %v603_v15 = vadd.f32 %v597_v9, %v515_v13  ;;  %v529_v16 = vpop.f32.mrf.mxu1 }
  0xe6   : > { %609 = vst [vmem:[%s1223_s19 + $0x10] sm:$0xff] %v601_v11  ;;  %v604_v17 = vadd.f32 %v597_v9, %v529_v16  ;;  %v637_v22 = vld [vmem:[%s1223_s19] sm:$0xff] (%p1060_p6) }
  0xe7   : > { %610 = vst [vmem:[%s1223_s19 + $0x18] sm:$0xff] %v602_v14  ;;  %v639_v23 = vld [vmem:[%s1223_s19 + $0x8] sm:$0xff] (%p1060_p6) }
  0xe8   : > { %611 = vst [vmem:[%s1223_s19 + $0x20] sm:$0xff] %v603_v15 }
  0xe9   : > { %612 = vst [vmem:[%s1223_s19 + $0x28] sm:$0xff] %v604_v17 }
  0xea   : > { %638 = vst [vmem:[%s624_s24] sm:$0xff] (%p1060_p6), %v637_v22 }
  0xeb   : > { %v543_v18 = vpop.f32.mrf.mxu2  ;;  %621 = sbr.rel (!%p1060_p6) target bundleno = 248 (0xf8), region = 67  ;;  %640 = vst [vmem:[%s624_s24 + $0x8] sm:$0xff] (%p1060_p6), %v639_v23 }
  0xec   : > { %v605_v19 = vadd.f32 %v597_v9, %v543_v18  ;;  %v557_v20 = vpop.f32.mrf.mxu3 }
  0xed   : > { %v606_v21 = vadd.f32 %v597_v9, %v557_v20  ;;  %v641_v24 = vld [vmem:[%s1223_s19 + $0x10] sm:$0xff] (%p1060_p6) }
  0xee   : > { %613 = vst [vmem:[%s1223_s19 + $0x30] sm:$0xff] %v605_v19  ;;  %v643_v25 = vld [vmem:[%s1223_s19 + $0x18] sm:$0xff] (%p1060_p6) }
  0xef   : > { %614 = vst [vmem:[%s1223_s19 + $0x38] sm:$0xff] %v606_v21  ;;  %v645_v26 = vld [vmem:[%s1223_s19 + $0x20] sm:$0xff] (%p1060_p6) }
  0xf0   : > { %642 = vst [vmem:[%s624_s24 + $0x10] sm:$0xff] %v641_v24  ;;  %v647_v27 = vld [vmem:[%s1223_s19 + $0x28] sm:$0xff] }
  0xf1   : > { %644 = vst [vmem:[%s624_s24 + $0x18] sm:$0xff] %v643_v25 }
  0xf2   : > { %646 = vst [vmem:[%s624_s24 + $0x40] sm:$0xff] %v645_v26 }
  0xf3   : > { %648 = vst [vmem:[%s624_s24 + $0x48] sm:$0xff] %v647_v27 }
  0xf5   : > { %v649_v28 = vld [vmem:[%s1223_s19 + $0x30] sm:$0xff] }
  0xf6   : > { %v651_v29 = vld [vmem:[%s1223_s19 + $0x38] sm:$0xff]  ;;  %650 = vst [vmem:[%s624_s24 + $0x50] sm:$0xff] %v649_v28 }
  0xf7   : > { %652 = vst [vmem:[%s624_s24 + $0x58] sm:$0xff] %v651_v29 }
  0xf8 PF: > { %s13_s16 = sadd.s32 1, %s1002_s16   ;;  %s1267_s12 = smov %s990_s13 }
  0xf9   : > { %p10_p11 = scmp.ge.s32.totalorder %s13_s16, 4   ;;  %s1268_s13 = smov %s1065_s22 }
  0xfa   : > { %s1269_s14 = smov %s998_s15  ;;  %s1270_s15 = smov %s1272_s17 }
  0xfb   :  { %12 = sbr.rel (!%p10_p11) target bundleno = 3 (0x3), region = 124 }

// kernel: forward.33
= control target key start
LH: loop header
LB: loop body
LE: loop exit
PB: predicated region body
PF: predicated region fallthrough
CT: control target
= control target key end

     0   :  { %s1511_s12 = smov 0   ;;  %s1513_s13 = smov 0   ;;  %s1897_s0 = inlined_call_operand.vmem [shape: bf16[16,256], index: 0, kind: input, shape index: {}]   ;;  %s1898_s1 = inlined_call_operand.vmem [shape: bf16[256,1024], index: 1, kind: input, shape index: {}]   ;;  %s1899_s2 = inlined_call_operand.vmem [shape: f32[16,1], index: 2, kind: input, shape index: {}]   ;;  %s1900_s3 = inlined_call_operand.vmem [shape: f32[16,1024], index: 3, kind: output, shape index: {}]  }
   0x1   :  { %s1515_s14 = smov 0   ;;  %s1517_s15 = smov 0  }
   0x2   :  { %s1519_s16 = smov 0  }
   0x3 LB: > { %s25_s17 = sadd.s32 1, %s1484_s15  ;;  %s1060_s18 = sadd.s32 4294967295, %s1488_s16   ;;  %s1488_s16 = sphi %s1519_s16, %s13_s16   ;;  %s1484_s15 = sphi %s1517_s15, %s1905_s15   ;;  %s1480_s14 = sphi %s1515_s14, %s1904_s14   ;;  %s1476_s13 = sphi %s1513_s13, %s1903_s13   ;;  %s1472_s12 = sphi %s1511_s12, %s1902_s12  }
   0x4   : > { %p27_p0 = scmp.ge.s32.totalorder %s25_s17, 2  ;;  %p67_p1 = scmp.ne.s32.totalorder %s1476_s13, %s1472_s12 }
   0x5   : > { %p68_p2 = scmp.eq.s32.totalorder %s1488_s16, 0  ;;  %p118_p4 = scmp.eq.s32.totalorder %s1060_s18, 1 }
   0x6   : > { %s1907_s17 = smov (%p27_p0, %s25_s17), 0  ;;  %s60_s20 = sadd.s32 1, %s1476_s13 }
   0x7   : > { %p69_p3 = por %p68_p2, %p67_p1  ;;  %s56_s19 = ssub.s32 %s1484_s15, %s1907_s17 }
   0x8   : > { %p58_p5 = scmp.eq.s32.totalorder %s56_s19, 0  ;;  %p1546_p6 = por %p118_p4, %p67_p1 }
   0x9   : > { %p1064_p7 = scmp.ge.s32.totalorder %s1488_s16, 2 }
   0xa   : > { %s1551_s22 = scalar_select %p58_p5, %s1476_s13, %s60_s20  }
   0xb   : > { %152 = sbr.rel (%p1064_p7) target bundleno = 84 (0x54), region = 24 }
  0x10   : > { %155 = sbr.rel (!%p69_p3) target bundleno = 84 (0x54), region = 28  ;;  %s157_s23 = sand.u32 (%p69_p3), 1, %s1476_s13  }
  0x11   : > { %s1340_s24 = sshll.u32 (%p69_p3), %s1484_s15, 4  ;;  %s1065_s25 = sshll.u32 (%p69_p3), %s157_s23, 9 }
  0x12   : > { %s1559_s28 = scalar_lea.vmem (%p69_p3), %s1898_s1, %s1340_s24  ;;  %s1564_s29 = scalar_lea.vmem (%p69_p3), [#allocation3], %s1065_s25 }
  0x13   : > { %v178_v0 = vld [vmem:[%s1559_s28] sm:$0xff] (%p69_p3)  ;;  %v180_v1 = vld [vmem:[%s1559_s28 + $0x8] sm:$0xff] (%p69_p3) }
  0x14   : > { %v182_v2 = vld [vmem:[%s1559_s28 + $0x20] sm:$0xff] (%p69_p3)  ;;  %179 = vst [vmem:[%s1564_s29] sm:$0xff] (%p69_p3), %v178_v0  ;;  %v184_v3 = vld [vmem:[%s1559_s28 + $0x28] sm:$0xff] (%p69_p3) }
  0x15   : > { %181 = vst [vmem:[%s1564_s29 + $0x8] sm:$0xff] %v180_v1  ;;  %v186_v4 = vld [vmem:[%s1559_s28 + $0x40] sm:$0xff]  ;;  %v188_v5 = vld [vmem:[%s1559_s28 + $0x48] sm:$0xff] }
  0x16   : > { %183 = vst [vmem:[%s1564_s29 + $0x10] sm:$0xff] %v182_v2  ;;  %v190_v6 = vld [vmem:[%s1559_s28 + $0x60] sm:$0xff]  ;;  %v192_v7 = vld [vmem:[%s1559_s28 + $0x68] sm:$0xff] }
  0x17   : > { %185 = vst [vmem:[%s1564_s29 + $0x18] sm:$0xff] %v184_v3  ;;  %v194_v8 = vld [vmem:[%s1559_s28 + $0x80] sm:$0xff]  ;;  %v196_v9 = vld [vmem:[%s1559_s28 + $0x88] sm:$0xff] }
  0x18   : > { %187 = vst [vmem:[%s1564_s29 + $0x20] sm:$0xff] %v186_v4  ;;  %v198_v10 = vld [vmem:[%s1559_s28 + $0xa0] sm:$0xff]  ;;  %v200_v11 = vld [vmem:[%s1559_s28 + $0xa8] sm:$0xff] }
  0x19   : > { %189 = vst [vmem:[%s1564_s29 + $0x28] sm:$0xff] %v188_v5  ;;  %v202_v12 = vld [vmem:[%s1559_s28 + $0xc0] sm:$0xff]  ;;  %v204_v13 = vld [vmem:[%s1559_s28 + $0xc8] sm:$0xff] }
  0x1a   : > { %191 = vst [vmem:[%s1564_s29 + $0x30] sm:$0xff] %v190_v6  ;;  %v206_v14 = vld [vmem:[%s1559_s28 + $0xe0] sm:$0xff]  ;;  %v208_v15 = vld [vmem:[%s1559_s28 + $0xe8] sm:$0xff] }
  0x1b   : > { %193 = vst [vmem:[%s1564_s29 + $0x38] sm:$0xff] %v192_v7  ;;  %v210_v16 = vld [vmem:[%s1559_s28 + $0x100] sm:$0xff]  ;;  %v212_v17 = vld [vmem:[%s1559_s28 + $0x108] sm:$0xff] }
  0x1c   : > { %195 = vst [vmem:[%s1564_s29 + $0x40] sm:$0xff] %v194_v8  ;;  %v214_v18 = vld [vmem:[%s1559_s28 + $0x120] sm:$0xff]  ;;  %v216_v19 = vld [vmem:[%s1559_s28 + $0x128] sm:$0xff] }
  0x1d   : > { %197 = vst [vmem:[%s1564_s29 + $0x48] sm:$0xff] %v196_v9  ;;  %v218_v20 = vld [vmem:[%s1559_s28 + $0x140] sm:$0xff]  ;;  %v220_v21 = vld [vmem:[%s1559_s28 + $0x148] sm:$0xff] }
  0x1e   : > { %199 = vst [vmem:[%s1564_s29 + $0x50] sm:$0xff] %v198_v10  ;;  %v222_v22 = vld [vmem:[%s1559_s28 + $0x160] sm:$0xff]  ;;  %v224_v23 = vld [vmem:[%s1559_s28 + $0x168] sm:$0xff] }
  0x1f   : > { %201 = vst [vmem:[%s1564_s29 + $0x58] sm:$0xff] %v200_v11  ;;  %v226_v24 = vld [vmem:[%s1559_s28 + $0x180] sm:$0xff]  ;;  %v228_v25 = vld [vmem:[%s1559_s28 + $0x188] sm:$0xff] }
  0x20   : > { %203 = vst [vmem:[%s1564_s29 + $0x60] sm:$0xff] %v202_v12  ;;  %v230_v26 = vld [vmem:[%s1559_s28 + $0x1a0] sm:$0xff]  ;;  %v232_v27 = vld [vmem:[%s1559_s28 + $0x1a8] sm:$0xff] }
  0x21   : > { %205 = vst [vmem:[%s1564_s29 + $0x68] sm:$0xff] %v204_v13  ;;  %v234_v28 = vld [vmem:[%s1559_s28 + $0x1c0] sm:$0xff]  ;;  %v236_v29 = vld [vmem:[%s1559_s28 + $0x1c8] sm:$0xff] }
  0x22   : > { %207 = vst [vmem:[%s1564_s29 + $0x70] sm:$0xff] %v206_v14  ;;  %v238_v30 = vld [vmem:[%s1559_s28 + $0x1e0] sm:$0xff]  ;;  %v240_v31 = vld [vmem:[%s1559_s28 + $0x1e8] sm:$0xff] }
  0x23   : > { %209 = vst [vmem:[%s1564_s29 + $0x78] sm:$0xff] %v208_v15  ;;  %v242_v32 = vld [vmem:[%s1559_s28 + $0x200] sm:$0xff]  ;;  %v244_v33 = vld [vmem:[%s1559_s28 + $0x208] sm:$0xff] }
  0x24   : > { %211 = vst [vmem:[%s1564_s29 + $0x80] sm:$0xff] %v210_v16  ;;  %v246_v34 = vld [vmem:[%s1559_s28 + $0x220] sm:$0xff]  ;;  %v248_v35 = vld [vmem:[%s1559_s28 + $0x228] sm:$0xff] }
  0x25   : > { %213 = vst [vmem:[%s1564_s29 + $0x88] sm:$0xff] %v212_v17  ;;  %v250_v36 = vld [vmem:[%s1559_s28 + $0x240] sm:$0xff]  ;;  %v252_v37 = vld [vmem:[%s1559_s28 + $0x248] sm:$0xff] }
  0x26   : > { %215 = vst [vmem:[%s1564_s29 + $0x90] sm:$0xff] %v214_v18  ;;  %v254_v38 = vld [vmem:[%s1559_s28 + $0x260] sm:$0xff]  ;;  %v256_v39 = vld [vmem:[%s1559_s28 + $0x268] sm:$0xff] }
  0x27   : > { %217 = vst [vmem:[%s1564_s29 + $0x98] sm:$0xff] %v216_v19  ;;  %v258_v40 = vld [vmem:[%s1559_s28 + $0x280] sm:$0xff]  ;;  %v260_v41 = vld [vmem:[%s1559_s28 + $0x288] sm:$0xff] }
  0x28   : > { %219 = vst [vmem:[%s1564_s29 + $0xa0] sm:$0xff] %v218_v20  ;;  %v262_v42 = vld [vmem:[%s1559_s28 + $0x2a0] sm:$0xff]  ;;  %v264_v43 = vld [vmem:[%s1559_s28 + $0x2a8] sm:$0xff] }
  0x29   : > { %221 = vst [vmem:[%s1564_s29 + $0xa8] sm:$0xff] %v220_v21  ;;  %v266_v44 = vld [vmem:[%s1559_s28 + $0x2c0] sm:$0xff]  ;;  %v268_v45 = vld [vmem:[%s1559_s28 + $0x2c8] sm:$0xff] }
  0x2a   : > { %223 = vst [vmem:[%s1564_s29 + $0xb0] sm:$0xff] %v222_v22  ;;  %v270_v46 = vld [vmem:[%s1559_s28 + $0x2e0] sm:$0xff]  ;;  %v272_v47 = vld [vmem:[%s1559_s28 + $0x2e8] sm:$0xff] }
  0x2b   : > { %225 = vst [vmem:[%s1564_s29 + $0xb8] sm:$0xff] %v224_v23  ;;  %v274_v48 = vld [vmem:[%s1559_s28 + $0x300] sm:$0xff]  ;;  %v276_v49 = vld [vmem:[%s1559_s28 + $0x308] sm:$0xff] }
  0x2c   : > { %227 = vst [vmem:[%s1564_s29 + $0xc0] sm:$0xff] %v226_v24  ;;  %v278_v50 = vld [vmem:[%s1559_s28 + $0x320] sm:$0xff]  ;;  %v280_v51 = vld [vmem:[%s1559_s28 + $0x328] sm:$0xff] }
  0x2d   : > { %229 = vst [vmem:[%s1564_s29 + $0xc8] sm:$0xff] %v228_v25  ;;  %v282_v52 = vld [vmem:[%s1559_s28 + $0x340] sm:$0xff]  ;;  %v284_v53 = vld [vmem:[%s1559_s28 + $0x348] sm:$0xff] }
  0x2e   : > { %231 = vst [vmem:[%s1564_s29 + $0xd0] sm:$0xff] %v230_v26  ;;  %v286_v54 = vld [vmem:[%s1559_s28 + $0x360] sm:$0xff]  ;;  %v288_v55 = vld [vmem:[%s1559_s28 + $0x368] sm:$0xff] }
  0x2f   : > { %233 = vst [vmem:[%s1564_s29 + $0xd8] sm:$0xff] %v232_v27  ;;  %v290_v56 = vld [vmem:[%s1559_s28 + $0x380] sm:$0xff]  ;;  %v292_v57 = vld [vmem:[%s1559_s28 + $0x388] sm:$0xff] }
  0x30   : > { %235 = vst [vmem:[%s1564_s29 + $0xe0] sm:$0xff] %v234_v28  ;;  %v294_v58 = vld [vmem:[%s1559_s28 + $0x3a0] sm:$0xff]  ;;  %v296_v59 = vld [vmem:[%s1559_s28 + $0x3a8] sm:$0xff] }
  0x31   : > { %237 = vst [vmem:[%s1564_s29 + $0xe8] sm:$0xff] %v236_v29  ;;  %v298_v60 = vld [vmem:[%s1559_s28 + $0x3c0] sm:$0xff]  ;;  %v300_v61 = vld [vmem:[%s1559_s28 + $0x3c8] sm:$0xff] }
  0x32   : > { %239 = vst [vmem:[%s1564_s29 + $0xf0] sm:$0xff] %v238_v30  ;;  %v302_v62 = vld [vmem:[%s1559_s28 + $0x3e0] sm:$0xff]  ;;  %v304_v63 = vld [vmem:[%s1559_s28 + $0x3e8] sm:$0xff] }
  0x33   : > { %241 = vst [vmem:[%s1564_s29 + $0xf8] sm:$0xff] %v240_v31 }
  0x34   : > { %243 = vst [vmem:[%s1564_s29 + $0x100] sm:$0xff] %v242_v32 }
  0x35   : > { %245 = vst [vmem:[%s1564_s29 + $0x108] sm:$0xff] %v244_v33 }
  0x36   : > { %247 = vst [vmem:[%s1564_s29 + $0x110] sm:$0xff] %v246_v34 }
  0x37   : > { %249 = vst [vmem:[%s1564_s29 + $0x118] sm:$0xff] %v248_v35 }
  0x38   : > { %251 = vst [vmem:[%s1564_s29 + $0x120] sm:$0xff] %v250_v36 }
  0x39   : > { %253 = vst [vmem:[%s1564_s29 + $0x128] sm:$0xff] %v252_v37 }
  0x3a   : > { %255 = vst [vmem:[%s1564_s29 + $0x130] sm:$0xff] %v254_v38 }
  0x3b   : > { %257 = vst [vmem:[%s1564_s29 + $0x138] sm:$0xff] %v256_v39 }
  0x3c   : > { %259 = vst [vmem:[%s1564_s29 + $0x140] sm:$0xff] %v258_v40 }
  0x3d   : > { %261 = vst [vmem:[%s1564_s29 + $0x148] sm:$0xff] %v260_v41 }
  0x3e   : > { %263 = vst [vmem:[%s1564_s29 + $0x150] sm:$0xff] %v262_v42 }
  0x3f   : > { %265 = vst [vmem:[%s1564_s29 + $0x158] sm:$0xff] %v264_v43 }
  0x40   : > { %267 = vst [vmem:[%s1564_s29 + $0x160] sm:$0xff] %v266_v44 }
  0x41   : > { %269 = vst [vmem:[%s1564_s29 + $0x168] sm:$0xff] %v268_v45 }
  0x42   : > { %271 = vst [vmem:[%s1564_s29 + $0x170] sm:$0xff] %v270_v46 }
  0x43   : > { %273 = vst [vmem:[%s1564_s29 + $0x178] sm:$0xff] %v272_v47 }
  0x44   : > { %275 = vst [vmem:[%s1564_s29 + $0x180] sm:$0xff] %v274_v48 }
  0x45   : > { %277 = vst [vmem:[%s1564_s29 + $0x188] sm:$0xff] %v276_v49 }
  0x46   : > { %279 = vst [vmem:[%s1564_s29 + $0x190] sm:$0xff] %v278_v50 }
  0x47   : > { %281 = vst [vmem:[%s1564_s29 + $0x198] sm:$0xff] %v280_v51 }
  0x48   : > { %283 = vst [vmem:[%s1564_s29 + $0x1a0] sm:$0xff] %v282_v52 }
  0x49   : > { %285 = vst [vmem:[%s1564_s29 + $0x1a8] sm:$0xff] %v284_v53 }
  0x4a   : > { %287 = vst [vmem:[%s1564_s29 + $0x1b0] sm:$0xff] %v286_v54 }
  0x4b   : > { %289 = vst [vmem:[%s1564_s29 + $0x1b8] sm:$0xff] %v288_v55 }
  0x4c   : > { %291 = vst [vmem:[%s1564_s29 + $0x1c0] sm:$0xff] %v290_v56 }
  0x4d   : > { %293 = vst [vmem:[%s1564_s29 + $0x1c8] sm:$0xff] %v292_v57 }
  0x4e   : > { %295 = vst [vmem:[%s1564_s29 + $0x1d0] sm:$0xff] %v294_v58 }
  0x4f   : > { %297 = vst [vmem:[%s1564_s29 + $0x1d8] sm:$0xff] %v296_v59 }
  0x50   : > { %299 = vst [vmem:[%s1564_s29 + $0x1e0] sm:$0xff] %v298_v60 }
  0x51   : > { %301 = vst [vmem:[%s1564_s29 + $0x1e8] sm:$0xff] %v300_v61 }
  0x52   : > { %303 = vst [vmem:[%s1564_s29 + $0x1f0] sm:$0xff] %v302_v62 }
  0x53   : > { %305 = vst [vmem:[%s1564_s29 + $0x1f8] sm:$0xff] %v304_v63 }
  0x54 PF: > { %p1068_p8 = scmp.ge.s32.totalorder %s1488_s16, 1  ;;  %p310_p9 = scmp.lt.s32.totalorder %s1488_s16, 3 }
  0x56   : > { %p311_p10 = pnand %p1068_p8, %p310_p9 }
  0x57   : > { %s317_s30 = sand.u32 (!%p311_p10), 1, %s1472_s12  }
  0x58   : > { %314 = sbr.rel (%p311_p10) target bundleno = 314 (0x13a), region = 51  ;;  %s1069_s4 = sshll.u32 (!%p311_p10), %s317_s30, 9 }
  0x59   : > { %s1696_s5 = scalar_lea.vmem (!%p311_p10), [#allocation3], %s1069_s4  ;;  %s1070_s26 = sshll.u32 (!%p311_p10), %s317_s30, 6 }
  0x5a   : > { %s1858_s27 = scalar_lea.vmem (!%p311_p10), [#allocation4], %s1070_s26 }
  0x5d   : > { %v1193_v0 = vld [vmem:[%s1696_s5 + $0xe0] sm:$0xf]  ;;  %v1373_v1 = vld [vmem:[%s1696_s5 + $0xec] sm:$0xf0]  ;;  %v1371_v5 = vld [vmem:[%s1696_s5 + $0xe4] sm:$0xf] }
  0x5e   : > { %v1321_v2 = vld [vmem:[%s1696_s5 + $0x1e0] sm:$0xf]  ;;  %v1194_v3 = vor.u32 %v1373_v1, %v1193_v0  ;;  %v1405_v4 = vld [vmem:[%s1696_s5 + $0x1ec] sm:$0xf0]  ;;  %v1195_v6 = vld [vmem:[%s1696_s5 + $0xf0] sm:$0xf0] }
  0x5f   : > { %v1322_v7 = vor.u32 %v1405_v4, %v1321_v2  ;;  %v1198_v8 = vor.u32 %v1371_v5, %v1195_v6  ;;  %v1403_v9 = vld [vmem:[%s1696_s5 + $0x1e4] sm:$0xf]  ;;  %v1323_v10 = vld [vmem:[%s1696_s5 + $0x1f0] sm:$0xf0]  ;;  %v1177_v11 = vld [vmem:[%s1696_s5 + $0xc0] sm:$0xf] }
  0x60   : > { %769 = vmatpush.bf16.msra.mxu0 %v1194_v3  ;;  %v1326_v12 = vor.u32 %v1403_v9, %v1323_v10  ;;  %v1369_v13 = vld [vmem:[%s1696_s5 + $0xcc] sm:$0xf0]  ;;  %v1305_v14 = vld [vmem:[%s1696_s5 + $0x1c0] sm:$0xf]  ;;  %v1367_v18 = vld [vmem:[%s1696_s5 + $0xc4] sm:$0xf] }
  0x61   : > { %v1401_v15 = vld [vmem:[%s1696_s5 + $0x1cc] sm:$0xf0]  ;;  %783 = vmatpush.bf16.msra.mxu1 %v1322_v7  ;;  %797 = vmatpush.bf16.msra.mxu2 %v1198_v8  ;;  %v1178_v16 = vor.u32 %v1369_v13, %v1177_v11  ;;  %v1179_v19 = vld [vmem:[%s1696_s5 + $0xd0] sm:$0xf0]  ;;  %v1399_v20 = vld [vmem:[%s1696_s5 + $0x1c4] sm:$0xf] }
  0x62   : > { %v1306_v17 = vor.u32 %v1401_v15, %v1305_v14  ;;  %811 = vmatpush.bf16.msra.mxu3 %v1326_v12  ;;  %v1182_v21 = vor.u32 %v1367_v18, %v1179_v19  ;;  %v1307_v22 = vld [vmem:[%s1696_s5 + $0x1d0] sm:$0xf0]  ;;  %v1161_v23 = vld [vmem:[%s1696_s5 + $0xa0] sm:$0xf]  ;;  %v1365_v24 = vld [vmem:[%s1696_s5 + $0xac] sm:$0xf0] }
  0x63   : > { %v1310_v25 = vor.u32 %v1399_v20, %v1307_v22  ;;  %v1289_v26 = vld [vmem:[%s1696_s5 + $0x1a0] sm:$0xf]  ;;  %v1397_v27 = vld [vmem:[%s1696_s5 + $0x1ac] sm:$0xf0]  ;;  %v1363_v28 = vld [vmem:[%s1696_s5 + $0xa4] sm:$0xf]  ;;  %v1162_v29 = vor.u32 %v1365_v24, %v1161_v23 }
  0x64   : > { %770 = vmatpush.bf16.msra.mxu0 %v1178_v16  ;;  %v1163_v30 = vld [vmem:[%s1696_s5 + $0xb0] sm:$0xf0]  ;;  %v1395_v31 = vld [vmem:[%s1696_s5 + $0x1a4] sm:$0xf]  ;;  %v1290_v33 = vor.u32 %v1397_v27, %v1289_v26  ;;  %v1145_v35 = vld [vmem:[%s1696_s5 + $0x80] sm:$0xf] }
  0x65   : > { %v1291_v32 = vld [vmem:[%s1696_s5 + $0x1b0] sm:$0xf0]  ;;  %784 = vmatpush.bf16.msra.mxu1 %v1306_v17  ;;  %798 = vmatpush.bf16.msra.mxu2 %v1182_v21  ;;  %v1166_v34 = vor.u32 %v1363_v28, %v1163_v30  ;;  %v1361_v36 = vld [vmem:[%s1696_s5 + $0x8c] sm:$0xf0]  ;;  %v1273_v37 = vld [vmem:[%s1696_s5 + $0x180] sm:$0xf] }
  0x66   : > { %812 = vmatpush.bf16.msra.mxu3 %v1310_v25  ;;  %v1294_v38 = vor.u32 %v1395_v31, %v1291_v32  ;;  %v1393_v39 = vld [vmem:[%s1696_s5 + $0x18c] sm:$0xf0]  ;;  %v1359_v40 = vld [vmem:[%s1696_s5 + $0x84] sm:$0xf]  ;;  %v1147_v41 = vld [vmem:[%s1696_s5 + $0x90] sm:$0xf0]  ;;  %v1146_v44 = vor.u32 %v1361_v36, %v1145_v35 }
  0x67   : > { %v1391_v42 = vld [vmem:[%s1696_s5 + $0x184] sm:$0xf]  ;;  %v1275_v43 = vld [vmem:[%s1696_s5 + $0x190] sm:$0xf0]  ;;  %v1274_v45 = vor.u32 %v1393_v39, %v1273_v37  ;;  %v1150_v46 = vor.u32 %v1359_v40, %v1147_v41  ;;  %v1129_v47 = vld [vmem:[%s1696_s5 + $0x60] sm:$0xf] }
  0x68   : > { %771 = vmatpush.bf16.msra.mxu0 %v1162_v29  ;;  %v1357_v48 = vld [vmem:[%s1696_s5 + $0x6c] sm:$0xf0]  ;;  %v1257_v49 = vld [vmem:[%s1696_s5 + $0x160] sm:$0xf]  ;;  %v1278_v50 = vor.u32 %v1391_v42, %v1275_v43  ;;  %v1355_v52 = vld [vmem:[%s1696_s5 + $0x64] sm:$0xf] }
  0x69   : > { %785 = vmatpush.bf16.msra.mxu1 %v1290_v33  ;;  %799 = vmatpush.bf16.msra.mxu2 %v1166_v34  ;;  %v1389_v51 = vld [vmem:[%s1696_s5 + $0x16c] sm:$0xf0]  ;;  %v1131_v53 = vld [vmem:[%s1696_s5 + $0x70] sm:$0xf0]  ;;  %v1387_v54 = vld [vmem:[%s1696_s5 + $0x164] sm:$0xf]  ;;  %v1130_v56 = vor.u32 %v1357_v48, %v1129_v47 }
  0x6a   : > { %813 = vmatpush.bf16.msra.mxu3 %v1294_v38  ;;  %v1259_v55 = vld [vmem:[%s1696_s5 + $0x170] sm:$0xf0]  ;;  %v1258_v57 = vor.u32 %v1389_v51, %v1257_v49  ;;  %v1134_v58 = vor.u32 %v1355_v52, %v1131_v53  ;;  %v1113_v59 = vld [vmem:[%s1696_s5 + $0x40] sm:$0xf]  ;;  %v1353_v60 = vld [vmem:[%s1696_s5 + $0x4c] sm:$0xf0] }
  0x6b   : > { %v1241_v61 = vld [vmem:[%s1696_s5 + $0x140] sm:$0xf]  ;;  %v1262_v62 = vor.u32 %v1387_v54, %v1259_v55  ;;  %v1385_v63 = vld [vmem:[%s1696_s5 + $0x14c] sm:$0xf0]  ;;  %v1351_v0 = vld [vmem:[%s1696_s5 + $0x44] sm:$0xf]  ;;  %v1114_v4 = vor.u32 %v1353_v60, %v1113_v59 }
  0x6c   : > { %772 = vmatpush.bf16.msra.mxu0 %v1146_v44  ;;  %v1115_v1 = vld [vmem:[%s1696_s5 + $0x50] sm:$0xf0]  ;;  %v1383_v2 = vld [vmem:[%s1696_s5 + $0x144] sm:$0xf]  ;;  %v1242_v5 = vor.u32 %v1385_v63, %v1241_v61  ;;  %v1097_v7 = vld [vmem:[%s1696_s5 + $0x20] sm:$0xf] }
  0x6d   : > { %786 = vmatpush.bf16.msra.mxu1 %v1274_v45  ;;  %800 = vmatpush.bf16.msra.mxu2 %v1150_v46  ;;  %v1243_v3 = vld [vmem:[%s1696_s5 + $0x150] sm:$0xf0]  ;;  %v1118_v6 = vor.u32 %v1351_v0, %v1115_v1  ;;  %v1349_v8 = vld [vmem:[%s1696_s5 + $0x2c] sm:$0xf0]  ;;  %v1225_v9 = vld [vmem:[%s1696_s5 + $0x120] sm:$0xf] }
  0x6e   : > { %814 = vmatpush.bf16.msra.mxu3 %v1278_v50  ;;  %v1246_v10 = vor.u32 %v1383_v2, %v1243_v3  ;;  %v1381_v11 = vld [vmem:[%s1696_s5 + $0x12c] sm:$0xf0]  ;;  %v1347_v12 = vld [vmem:[%s1696_s5 + $0x24] sm:$0xf]  ;;  %v1099_v13 = vld [vmem:[%s1696_s5 + $0x30] sm:$0xf0]  ;;  %v1098_v16 = vor.u32 %v1349_v8, %v1097_v7 }
  0x6f   : > { %v1379_v14 = vld [vmem:[%s1696_s5 + $0x124] sm:$0xf]  ;;  %v1227_v15 = vld [vmem:[%s1696_s5 + $0x130] sm:$0xf0]  ;;  %v1081_v17 = vld [vmem:[%s1696_s5] sm:$0xf]  ;;  %v1226_v20 = vor.u32 %v1381_v11, %v1225_v9  ;;  %v1102_v21 = vor.u32 %v1347_v12, %v1099_v13 }
  0x70   : > { %773 = vmatpush.bf16.msra.mxu0 %v1130_v56  ;;  %v1345_v18 = vld [vmem:[%s1696_s5 + $0xc] sm:$0xf0]  ;;  %v1209_v19 = vld [vmem:[%s1696_s5 + $0x100] sm:$0xf]  ;;  %v1343_v23 = vld [vmem:[%s1696_s5 + $0x4] sm:$0xf]  ;;  %v1230_v25 = vor.u32 %v1379_v14, %v1227_v15 }
  0x71   : > { %787 = vmatpush.bf16.msra.mxu1 %v1258_v57  ;;  %801 = vmatpush.bf16.msra.mxu2 %v1134_v58  ;;  %v1377_v22 = vld [vmem:[%s1696_s5 + $0x10c] sm:$0xf0]  ;;  %v1083_v24 = vld [vmem:[%s1696_s5 + $0x10] sm:$0xf0]  ;;  %v1375_v26 = vld [vmem:[%s1696_s5 + $0x104] sm:$0xf]  ;;  %v1082_v32 = vor.u32 %v1345_v18, %v1081_v17 }
  0x72   : > { %815 = vmatpush.bf16.msra.mxu3 %v1262_v62  ;;  %v1211_v27 = vld [vmem:[%s1696_s5 + $0x110] sm:$0xf0]  ;;  %v1201_v28 = vld [vmem:[%s1696_s5 + $0xe8] sm:$0xf]  ;;  %v1374_v29 = vld [vmem:[%s1696_s5 + $0xf4] sm:$0xf0]  ;;  %v1210_v36 = vor.u32 %v1377_v22, %v1209_v19  ;;  %v1086_v37 = vor.u32 %v1343_v23, %v1083_v24 }
  0x73   : > { %v1329_v30 = vld [vmem:[%s1696_s5 + $0x1e8] sm:$0xf]  ;;  %v1406_v31 = vld [vmem:[%s1696_s5 + $0x1f4] sm:$0xf0]  ;;  %v1372_v33 = vld [vmem:[%s1696_s5 + $0xec] sm:$0xf]  ;;  %v1214_v41 = vor.u32 %v1375_v26, %v1211_v27  ;;  %v1202_v42 = vor.u32 %v1374_v29, %v1201_v28 }
  0x74   : > { %774 = vmatpush.bf16.msra.mxu0 %v1114_v4  ;;  %v1203_v34 = vld [vmem:[%s1696_s5 + $0xf8] sm:$0xf0]  ;;  %v1404_v35 = vld [vmem:[%s1696_s5 + $0x1ec] sm:$0xf]  ;;  %v1073_v39 = vld [vmem:[%s1897_s0] sm:$0xf]  ;;  %v1330_v45 = vor.u32 %v1406_v31, %v1329_v30 }
  0x75   : > { %788 = vmatpush.bf16.msra.mxu1 %v1242_v5  ;;  %802 = vmatpush.bf16.msra.mxu2 %v1118_v6  ;;  %v1331_v38 = vld [vmem:[%s1696_s5 + $0x1f8] sm:$0xf0]  ;;  %v1342_v40 = vld [vmem:[%s1897_s0 + $0x4] sm:$0xf0]  ;;  %v1341_v43 = vld [vmem:[%s1897_s0 + $0x4] sm:$0xf]  ;;  %v1206_v46 = vor.u32 %v1372_v33, %v1203_v34 }
  0x76   : > { %816 = vmatpush.bf16.msra.mxu3 %v1246_v10  ;;  %v1075_v44 = vld [vmem:[%s1897_s0 + $0x8] sm:$0xf0]  ;;  %v1185_v47 = vld [vmem:[%s1696_s5 + $0xc8] sm:$0xf]  ;;  %v1370_v48 = vld [vmem:[%s1696_s5 + $0xd4] sm:$0xf0]  ;;  %v1334_v50 = vor.u32 %v1404_v35, %v1331_v38  ;;  %v1788_v54 = vor.u32 %v1342_v40, %v1073_v39 }
  0x77   : > { %v1313_v49 = vld [vmem:[%s1696_s5 + $0x1c8] sm:$0xf]  ;;  %v1402_v51 = vld [vmem:[%s1696_s5 + $0x1d4] sm:$0xf0]  ;;  %v1368_v52 = vld [vmem:[%s1696_s5 + $0xcc] sm:$0xf]  ;;  %v1792_v57 = vor.u32 %v1341_v43, %v1075_v44  ;;  %v1186_v58 = vor.u32 %v1370_v48, %v1185_v47 }
  0x78   : > { %775 = vmatpush.bf16.msra.mxu0 %v1098_v16  ;;  %v1187_v53 = vld [vmem:[%s1696_s5 + $0xd8] sm:$0xf0]  ;;  %v1400_v55 = vld [vmem:[%s1696_s5 + $0x1cc] sm:$0xf]  ;;  %v1314_v59 = vor.u32 %v1402_v51, %v1313_v49  ;;  %v1169_v61 = vld [vmem:[%s1696_s5 + $0xa8] sm:$0xf] }
  0x79   : > { %789 = vmatpush.bf16.msra.mxu1 %v1226_v20  ;;  %803 = vmatpush.bf16.msra.mxu2 %v1102_v21  ;;  %v1315_v56 = vld [vmem:[%s1696_s5 + $0x1d8] sm:$0xf0]  ;;  %v1190_v60 = vor.u32 %v1368_v52, %v1187_v53  ;;  %v1366_v62 = vld [vmem:[%s1696_s5 + $0xb4] sm:$0xf0]  ;;  %v1297_v63 = vld [vmem:[%s1696_s5 + $0x1a8] sm:$0xf] }
  0x7a   : > { %817 = vmatpush.bf16.msra.mxu3 %v1230_v25  ;;  %v1318_v0 = vor.u32 %v1400_v55, %v1315_v56  ;;  %v1398_v1 = vld [vmem:[%s1696_s5 + $0x1b4] sm:$0xf0]  ;;  %v1364_v2 = vld [vmem:[%s1696_s5 + $0xac] sm:$0xf]  ;;  %v1171_v3 = vld [vmem:[%s1696_s5 + $0xb8] sm:$0xf0]  ;;  %v1170_v6 = vor.u32 %v1366_v62, %v1169_v61 }
  0x7b   : > { %v1396_v4 = vld [vmem:[%s1696_s5 + $0x1ac] sm:$0xf]  ;;  %v1299_v5 = vld [vmem:[%s1696_s5 + $0x1b8] sm:$0xf0]  ;;  %v1298_v7 = vor.u32 %v1398_v1, %v1297_v63  ;;  %v1174_v8 = vor.u32 %v1364_v2, %v1171_v3  ;;  %v1153_v9 = vld [vmem:[%s1696_s5 + $0x88] sm:$0xf] }
  0x7c   : > { %776 = vmatpush.bf16.msra.mxu0 %v1082_v32  ;;  %v1362_v10 = vld [vmem:[%s1696_s5 + $0x94] sm:$0xf0]  ;;  %v1281_v11 = vld [vmem:[%s1696_s5 + $0x188] sm:$0xf]  ;;  %v1302_v12 = vor.u32 %v1396_v4, %v1299_v5  ;;  %v1360_v14 = vld [vmem:[%s1696_s5 + $0x8c] sm:$0xf] }
  0x7d   : > { %790 = vmatpush.bf16.msra.mxu1 %v1210_v36  ;;  %804 = vmatpush.bf16.msra.mxu2 %v1086_v37  ;;  %v1394_v13 = vld [vmem:[%s1696_s5 + $0x194] sm:$0xf0]  ;;  %v1155_v15 = vld [vmem:[%s1696_s5 + $0x98] sm:$0xf0]  ;;  %v1392_v16 = vld [vmem:[%s1696_s5 + $0x18c] sm:$0xf]  ;;  %v1154_v18 = vor.u32 %v1362_v10, %v1153_v9 }
  0x7e   : > { %818 = vmatpush.bf16.msra.mxu3 %v1214_v41  ;;  %v1283_v17 = vld [vmem:[%s1696_s5 + $0x198] sm:$0xf0]  ;;  %v908_v19 = vld [vmem:[%s1899_s2] sm:$0xff]  ;;  %v1282_v20 = vor.u32 %v1394_v13, %v1281_v11  ;;  %v1158_v21 = vor.u32 %v1360_v14, %v1155_v15  ;;  %v1137_v22 = vld [vmem:[%s1696_s5 + $0x68] sm:$0xf]  ;;  %v1490_v29 = vmov 0  }
  0x7f   : > { %777 = vmatmul.bf16.vlgmr.msra.gmra.mxu0 %v1788_v54  ;;  %v1358_v23 = vld [vmem:[%s1696_s5 + $0x74] sm:$0xf0]  ;;  %v1265_v24 = vld [vmem:[%s1696_s5 + $0x168] sm:$0xf]  ;;  %v1286_v25 = vor.u32 %v1392_v16, %v1283_v17  ;;  %v1356_v27 = vld [vmem:[%s1696_s5 + $0x6c] sm:$0xf]  ;;  %1449 = vset.pattern.permute.xlu0 %v1490_v29 }
  0x80   : > { %825 = vmatpush.bf16.msrb.mxu0 %v1202_v42  ;;  %805 = vmatmul.bf16.vlgmr.msra.gmra.mxu2 %v1788_v54  ;;  %v1390_v26 = vld [vmem:[%s1696_s5 + $0x174] sm:$0xf0]  ;;  %v1139_v28 = vld [vmem:[%s1696_s5 + $0x78] sm:$0xf0]  ;;  %v1388_v30 = vld [vmem:[%s1696_s5 + $0x16c] sm:$0xf]  ;;  %v1138_v32 = vor.u32 %v1358_v23, %v1137_v22 }
  0x81   : > { %839 = vmatpush.bf16.msrb.mxu1 %v1330_v45  ;;  %853 = vmatpush.bf16.msrb.mxu2 %v1206_v46  ;;  %v1267_v31 = vld [vmem:[%s1696_s5 + $0x178] sm:$0xf0]  ;;  %v1266_v33 = vor.u32 %v1390_v26, %v1265_v24  ;;  %v1142_v34 = vor.u32 %v1356_v27, %v1139_v28  ;;  %v1121_v35 = vld [vmem:[%s1696_s5 + $0x48] sm:$0xf]  ;;  %v1354_v36 = vld [vmem:[%s1696_s5 + $0x54] sm:$0xf0] }
  0x82   : > { %867 = vmatpush.bf16.msrb.mxu3 %v1334_v50  ;;  %791 = vmatmul.bf16.vlgmr.msra.gmra.mxu1 %v1792_v57  ;;  %v1249_v37 = vld [vmem:[%s1696_s5 + $0x148] sm:$0xf]  ;;  %v1270_v38 = vor.u32 %v1388_v30, %v1267_v31  ;;  %v1386_v39 = vld [vmem:[%s1696_s5 + $0x154] sm:$0xf0]  ;;  %v1352_v40 = vld [vmem:[%s1696_s5 + $0x4c] sm:$0xf]  ;;  %v1122_v44 = vor.u32 %v1354_v36, %v1121_v35 }
  0x83   : > { %819 = vmatmul.bf16.vlgmr.msra.gmra.mxu3 %v1792_v57  ;;  %912 = vperm.xlu0 %1449, %v908_v19   ;;  %v1123_v41 = vld [vmem:[%s1696_s5 + $0x58] sm:$0xf0]  ;;  %v1384_v42 = vld [vmem:[%s1696_s5 + $0x14c] sm:$0xf]  ;;  %v1250_v46 = vor.u32 %v1386_v39, %v1249_v37  ;;  %v1105_v48 = vld [vmem:[%s1696_s5 + $0x28] sm:$0xf] }
  0x84   : > { %826 = vmatpush.bf16.msrb.mxu0 %v1186_v58  ;;  %v1251_v43 = vld [vmem:[%s1696_s5 + $0x158] sm:$0xf0]  ;;  %v909_v45 = vld [vmem:[%s1899_s2 + $0x8] sm:$0xff]  ;;  %v1126_v47 = vor.u32 %v1352_v40, %v1123_v41  ;;  %v1350_v49 = vld [vmem:[%s1696_s5 + $0x34] sm:$0xf0]  ;;  %s1407_s12 = sshll.u32 (%p1546_p6), %s1480_s14, 5 }
  0x85   : > { %840 = vmatpush.bf16.msrb.mxu1 %v1314_v59  ;;  %854 = vmatpush.bf16.msrb.mxu2 %v1190_v60  ;;  %v1233_v50 = vld [vmem:[%s1696_s5 + $0x128] sm:$0xf]  ;;  %v1254_v51 = vor.u32 %v1384_v42, %v1251_v43  ;;  %v1382_v52 = vld [vmem:[%s1696_s5 + $0x134] sm:$0xf0]  ;;  %v1348_v53 = vld [vmem:[%s1696_s5 + $0x2c] sm:$0xf]  ;;  %v1106_v59 = vor.u32 %v1350_v49, %v1105_v48  ;;  %s945_s30 = scalar_lea.vmem (%p1546_p6), %s1900_s3, %s1407_s12 }
  0x86   : > { %868 = vmatpush.bf16.msrb.mxu3 %v1318_v0  ;;  %v1107_v55 = vld [vmem:[%s1696_s5 + $0x38] sm:$0xf0]  ;;  %v1380_v56 = vld [vmem:[%s1696_s5 + $0x12c] sm:$0xf]  ;;  %v1234_v60 = vor.u32 %v1382_v52, %v1233_v50  ;;  %v1089_v62 = vld [vmem:[%s1696_s5 + $0x8] sm:$0xf] }
  0x87   : > { %v1235_v58 = vld [vmem:[%s1696_s5 + $0x138] sm:$0xf0]  ;;  %v1110_v61 = vor.u32 %v1348_v53, %v1107_v55  ;;  %v1346_v63 = vld [vmem:[%s1696_s5 + $0x14] sm:$0xf0]  ;;  %v1217_v0 = vld [vmem:[%s1696_s5 + $0x108] sm:$0xf] }
  0x88   : > { %827 = vmatpush.bf16.msrb.mxu0 %v1170_v6  ;;  %v1238_v1 = vor.u32 %v1380_v56, %v1235_v58  ;;  %v1378_v2 = vld [vmem:[%s1696_s5 + $0x114] sm:$0xf0]  ;;  %v1344_v3 = vld [vmem:[%s1696_s5 + $0xc] sm:$0xf]  ;;  %v1091_v4 = vld [vmem:[%s1696_s5 + $0x18] sm:$0xf0] }
  0x89   : > { %841 = vmatpush.bf16.msrb.mxu1 %v1298_v7  ;;  %855 = vmatpush.bf16.msrb.mxu2 %v1174_v8  ;;  %v1376_v5 = vld [vmem:[%s1696_s5 + $0x10c] sm:$0xf]  ;;  %v1219_v6 = vld [vmem:[%s1696_s5 + $0x118] sm:$0xf0]  ;;  %v1090_v7 = vor.u32 %v1346_v63, %v1089_v62  ;;  %v1218_v8 = vor.u32 %v1378_v2, %v1217_v0  ;;  %v1094_v9 = vor.u32 %v1344_v3, %v1091_v4 }
  0x8a   : > { %869 = vmatpush.bf16.msrb.mxu3 %v1302_v12  ;;  %v1222_v10 = vor.u32 %v1376_v5, %v1219_v6 }
  0x8b   : > { %917 = vperm.xlu0 %1449, %v909_v45  }
  0x8c   : > { %828 = vmatpush.bf16.msrb.mxu0 %v1154_v18 }
  0x8d   : > { %842 = vmatpush.bf16.msrb.mxu1 %v1282_v20  ;;  %856 = vmatpush.bf16.msrb.mxu2 %v1158_v21 }
  0x8e   : > { %870 = vmatpush.bf16.msrb.mxu3 %v1286_v25 }
  0x90   : > { %829 = vmatpush.bf16.msrb.mxu0 %v1138_v32 }
  0x91   : > { %843 = vmatpush.bf16.msrb.mxu1 %v1266_v33  ;;  %857 = vmatpush.bf16.msrb.mxu2 %v1142_v34 }
  0x92   : > { %871 = vmatpush.bf16.msrb.mxu3 %v1270_v38 }
  0x94   : > { %830 = vmatpush.bf16.msrb.mxu0 %v1122_v44 }
  0x95   : > { %844 = vmatpush.bf16.msrb.mxu1 %v1250_v46  ;;  %858 = vmatpush.bf16.msrb.mxu2 %v1126_v47 }
  0x96   : > { %872 = vmatpush.bf16.msrb.mxu3 %v1254_v51 }
  0x98   : > { %831 = vmatpush.bf16.msrb.mxu0 %v1106_v59 }
  0x99   : > { %845 = vmatpush.bf16.msrb.mxu1 %v1234_v60  ;;  %859 = vmatpush.bf16.msrb.mxu2 %v1110_v61 }
  0x9a   : > { %873 = vmatpush.bf16.msrb.mxu3 %v1238_v1 }
  0x9c   : > { %832 = vmatpush.bf16.msrb.mxu0 %v1090_v7 }
  0x9d   : > { %846 = vmatpush.bf16.msrb.mxu1 %v1218_v8  ;;  %860 = vmatpush.bf16.msrb.mxu2 %v1094_v9 }
  0x9e   : > { %874 = vmatpush.bf16.msrb.mxu3 %v1222_v10 }
  0x9f   : > { %833 = vmatmul.bf16.vlgmr.msrb.gmra.mxu0 %v1788_v54 }
  0xa0   : > { %847 = vmatmul.bf16.vlgmr.msrb.gmra.mxu1 %v1792_v57  ;;  %861 = vmatmul.bf16.vlgmr.msrb.gmra.mxu2 %v1788_v54 }
  0xa1   : > { %875 = vmatmul.bf16.vlgmr.msrb.gmra.mxu3 %v1792_v57 }
  0xf5   : > { %v913_v11 = vpop.permute.xlu0 %912 }
  0xfc   : > { %v778_v12 = vpop.f32.mrf.mxu0 }
  0xfd   : > { %v918_v20 = vpop.permute.xlu0 %917 }
  0xff   : > { %v792_v13 = vpop.f32.mrf.mxu1 }
 0x100   : > { %v793_v14 = vadd.f32 %v792_v13, %v778_v12 }
 0x102   : > { %v920_v15 = vadd.f32 %v913_v11, %v793_v14 }
 0x103   : > { %v806_v16 = vpop.f32.mrf.mxu2 }
 0x104   : > { %928 = vst [vmem:[%s1858_s27] sm:$0xff] %v920_v15  ;;  %v780_v54 = vpop.f32.mrf.mxu0 }
 0x106   : > { %v820_v17 = vpop.f32.mrf.mxu3 }
 0x107   : > { %v821_v18 = vadd.f32 %v820_v17, %v806_v16  ;;  %v794_v57 = vpop.f32.mrf.mxu1 }
 0x108   : > { %v795_v21 = vadd.f32 %v794_v57, %v780_v54 }
 0x109   : > { %v921_v19 = vadd.f32 %v913_v11, %v821_v18 }
 0x10a   : > { %v924_v22 = vadd.f32 %v918_v20, %v795_v21 }
 0x10b   : > { %929 = vst [vmem:[%s1858_s27 + $0x8] sm:$0xff] %v921_v19  ;;  %v808_v23 = vpop.f32.mrf.mxu2  ;;  %v958_v43 = vld [vmem:[%s1858_s27] sm:$0xff] (%p1546_p6) }
 0x10c   : > { %932 = vst [vmem:[%s1858_s27 + $0x20] sm:$0xff] %v924_v22 }
 0x10d   : > { %959 = vst [vmem:[%s945_s30] sm:$0xff] (%p1546_p6), %v958_v43 }
 0x10e   : > { %v822_v24 = vpop.f32.mrf.mxu3 }
 0x10f   : > { %v823_v25 = vadd.f32 %v822_v24, %v808_v23 }
 0x111   : > { %v925_v26 = vadd.f32 %v918_v20, %v823_v25 }
 0x112   : > { %v960_v44 = vld [vmem:[%s1858_s27 + $0x8] sm:$0xff] (%p1546_p6) }
 0x113   : > { %933 = vst [vmem:[%s1858_s27 + $0x28] sm:$0xff] %v925_v26  ;;  %v966_v47 = vld [vmem:[%s1858_s27 + $0x20] sm:$0xff] (%p1546_p6) }
 0x114   : > { %961 = vst [vmem:[%s945_s30 + $0x8] sm:$0xff] (%p1546_p6), %v960_v44 }
 0x115   : > { %967 = vst [vmem:[%s945_s30 + $0x40] sm:$0xff] (%p1546_p6), %v966_v47 }
 0x11a   : > { %v968_v48 = vld [vmem:[%s1858_s27 + $0x28] sm:$0xff] (%p1546_p6) }
 0x11b   : > { %969 = vst [vmem:[%s945_s30 + $0x48] sm:$0xff] (%p1546_p6), %v968_v48 }
 0x11c   : > { %v834_v27 = vpop.f32.mrf.mxu0 }
 0x11d   : > { %v848_v28 = vpop.f32.mrf.mxu1 }
 0x11e   : > { %v849_v29 = vadd.f32 %v848_v28, %v834_v27 }
 0x120   : > { %v922_v30 = vadd.f32 %v913_v11, %v849_v29 }
 0x122   : > { %930 = vst [vmem:[%s1858_s27 + $0x10] sm:$0xff] %v922_v30 }
 0x123   : > { %v862_v31 = vpop.f32.mrf.mxu2 }
 0x124   : > { %v876_v32 = vpop.f32.mrf.mxu3  ;;  %v836_v33 = vpop.f32.mrf.mxu0 }
 0x125   : > { %v877_v34 = vadd.f32 %v876_v32, %v862_v31  ;;  %v850_v35 = vpop.f32.mrf.mxu1 }
 0x126   : > { %v851_v36 = vadd.f32 %v850_v35, %v836_v33 }
 0x127   : > { %v923_v37 = vadd.f32 %v913_v11, %v877_v34 }
 0x128   : > { %v926_v38 = vadd.f32 %v918_v20, %v851_v36 }
 0x129   : > { %931 = vst [vmem:[%s1858_s27 + $0x18] sm:$0xff] %v923_v37  ;;  %v962_v45 = vld [vmem:[%s1858_s27 + $0x10] sm:$0xff] (%p1546_p6) }
 0x12a   : > { %934 = vst [vmem:[%s1858_s27 + $0x30] sm:$0xff] %v926_v38 }
 0x12b   : > { %v864_v39 = vpop.f32.mrf.mxu2  ;;  %963 = vst [vmem:[%s945_s30 + $0x10] sm:$0xff] (%p1546_p6), %v962_v45 }
 0x12c   : > { %v878_v40 = vpop.f32.mrf.mxu3 }
 0x12d   : > { %v879_v41 = vadd.f32 %v878_v40, %v864_v39  ;;  %942 = sbr.rel (!%p1546_p6) target bundleno = 314 (0x13a), region = 67 }
 0x12f   : > { %v927_v42 = vadd.f32 %v918_v20, %v879_v41 }
 0x130   : > { %v964_v46 = vld [vmem:[%s1858_s27 + $0x18] sm:$0xff] (%p1546_p6) }
 0x131   : > { %935 = vst [vmem:[%s1858_s27 + $0x38] sm:$0xff] %v927_v42  ;;  %v970_v49 = vld [vmem:[%s1858_s27 + $0x30] sm:$0xff] (%p1546_p6) }
 0x132   : > { %965 = vst [vmem:[%s945_s30 + $0x18] sm:$0xff] %v964_v46 }
 0x133   : > { %971 = vst [vmem:[%s945_s30 + $0x50] sm:$0xff] %v970_v49 }
 0x138   : > { %v972_v50 = vld [vmem:[%s1858_s27 + $0x38] sm:$0xff] }
 0x139   : > { %973 = vst [vmem:[%s945_s30 + $0x58] sm:$0xff] %v972_v50 }
 0x13a PF: > { %s13_s16 = sadd.s32 1, %s1488_s16   ;;  %s1902_s12 = smov %s1476_s13 }
 0x13b   : > { %p10_p11 = scmp.ge.s32.totalorder %s13_s16, 4   ;;  %s1903_s13 = smov %s1551_s22 }
 0x13c   : > { %s1904_s14 = smov %s1484_s15  ;;  %s1905_s15 = smov %s1907_s17 }
 0x13d   :  { %12 = sbr.rel (!%p10_p11) target bundleno = 3 (0x3), region = 124 }

// kernel: forward.34
= control target key start
LH: loop header
LB: loop body
LE: loop exit
PB: predicated region body
PF: predicated region fallthrough
CT: control target
= control target key end

     0   :  { %v294_v0 = vmov 0   ;;  %s522_s1 = inlined_call_operand.vmem [shape: f32[128,1], index: 1, kind: input, shape index: {}]   ;;  %s523_s2 = inlined_call_operand.vmem [shape: f32[128,1], index: 2, kind: input, shape index: {}]   ;;  %s524_s0 = inlined_call_operand.vmem [shape: f32[128,128], index: 0, kind: input, shape index: {}]   ;;  %s525_s3 = inlined_call_operand.vmem [shape: f32[128,128], index: 3, kind: output, shape index: {}]  }
   0x1   :  { %293 = vset.pattern.permute.xlu2 %v294_v0  ;;  %292 = vset.pattern.permute.xlu1 %v294_v0  ;;  %v34_v1 = vld [vmem:[%s522_s1 + $0x20] sm:$0xff]  ;;  %v32_v2 = vld [vmem:[%s522_s1 + $0x10] sm:$0xff]  ;;  %v35_v4 = vld [vmem:[%s522_s1 + $0x28] sm:$0xff] }
   0x2   :  { %v30_v3 = vld [vmem:[%s522_s1] sm:$0xff]  ;;  %291 = vset.pattern.permute.xlu0 %v294_v0  ;;  %68 = vperm.xlu2 %293, %v34_v1   ;;  %v33_v5 = vld [vmem:[%s522_s1 + $0x18] sm:$0xff]  ;;  %v31_v6 = vld [vmem:[%s522_s1 + $0x8] sm:$0xff] }
   0x3   :  { %58 = vperm.xlu1 %292, %v32_v2   ;;  %48 = vperm.xlu0 %291, %v30_v3   ;;  %v38_v7 = vld [vmem:[%s522_s1 + $0x40] sm:$0xff]  ;;  %v37_v8 = vld [vmem:[%s522_s1 + $0x38] sm:$0xff]  ;;  %v36_v9 = vld [vmem:[%s522_s1 + $0x30] sm:$0xff] }
   0x4   :  { %v41_v10 = vld [vmem:[%s522_s1 + $0x58] sm:$0xff]  ;;  %v40_v11 = vld [vmem:[%s522_s1 + $0x50] sm:$0xff]  ;;  %v39_v12 = vld [vmem:[%s522_s1 + $0x48] sm:$0xff] }
   0x5   :  { %v44_v13 = vld [vmem:[%s522_s1 + $0x70] sm:$0xff]  ;;  %v43_v14 = vld [vmem:[%s522_s1 + $0x68] sm:$0xff]  ;;  %v42_v15 = vld [vmem:[%s522_s1 + $0x60] sm:$0xff] }
   0x6   :  { %v143_v16 = vld [vmem:[%s523_s2 + $0x8] sm:$0xff]  ;;  %v142_v17 = vld [vmem:[%s523_s2] sm:$0xff]  ;;  %v45_v18 = vld [vmem:[%s522_s1 + $0x78] sm:$0xff] }
   0x7   :  { %v146_v19 = vld [vmem:[%s523_s2 + $0x20] sm:$0xff]  ;;  %v145_v20 = vld [vmem:[%s523_s2 + $0x18] sm:$0xff]  ;;  %v144_v21 = vld [vmem:[%s523_s2 + $0x10] sm:$0xff] }
   0x8   :  { %v149_v22 = vld [vmem:[%s523_s2 + $0x38] sm:$0xff]  ;;  %v148_v23 = vld [vmem:[%s523_s2 + $0x30] sm:$0xff]  ;;  %v147_v24 = vld [vmem:[%s523_s2 + $0x28] sm:$0xff] }
   0x9   :  { %v152_v25 = vld [vmem:[%s523_s2 + $0x50] sm:$0xff]  ;;  %v151_v26 = vld [vmem:[%s523_s2 + $0x48] sm:$0xff]  ;;  %v150_v27 = vld [vmem:[%s523_s2 + $0x40] sm:$0xff] }
   0xa   :  { %73 = vperm.xlu2 %293, %v35_v4   ;;  %v155_v28 = vld [vmem:[%s523_s2 + $0x68] sm:$0xff]  ;;  %v154_v29 = vld [vmem:[%s523_s2 + $0x60] sm:$0xff]  ;;  %v153_v30 = vld [vmem:[%s523_s2 + $0x58] sm:$0xff] }
   0xb   :  { %63 = vperm.xlu1 %292, %v33_v5   ;;  %53 = vperm.xlu0 %291, %v31_v6   ;;  %v157_v31 = vld [vmem:[%s523_s2 + $0x78] sm:$0xff]  ;;  %v156_v32 = vld [vmem:[%s523_s2 + $0x70] sm:$0xff]  ;;  %v15_v42 = vld [vmem:[%s524_s0 + $0x8] sm:$0xff] }
   0xc   :  { %v18_v49 = vld [vmem:[%s524_s0 + $0x20] sm:$0xff]  ;;  %v21_v56 = vld [vmem:[%s524_s0 + $0x38] sm:$0xff]  ;;  %v24_v63 = vld [vmem:[%s524_s0 + $0x50] sm:$0xff] }
   0xd   :  { %v14_v0 = vld [vmem:[%s524_s0] sm:$0xff] }
  0x12   :  { %88 = vperm.xlu2 %293, %v38_v7  }
  0x13   :  { %83 = vperm.xlu1 %292, %v37_v8   ;;  %78 = vperm.xlu0 %291, %v36_v9   ;;  %v27_v9 = vld [vmem:[%s524_s0 + $0x68] sm:$0xff] }
  0x1a   :  { %103 = vperm.xlu2 %293, %v41_v10  }
  0x1b   :  { %98 = vperm.xlu1 %292, %v40_v11   ;;  %93 = vperm.xlu0 %291, %v39_v12   ;;  %v16_v11 = vld [vmem:[%s524_s0 + $0x10] sm:$0xff]  ;;  %v17_v12 = vld [vmem:[%s524_s0 + $0x18] sm:$0xff] }
  0x22   :  { %118 = vperm.xlu2 %293, %v44_v13  }
  0x23   :  { %113 = vperm.xlu1 %292, %v43_v14   ;;  %108 = vperm.xlu0 %291, %v42_v15  }
  0x2a   :  { %165 = vperm.xlu2 %293, %v143_v16  }
  0x2b   :  { %160 = vperm.xlu1 %292, %v142_v17   ;;  %123 = vperm.xlu0 %291, %v45_v18  }
  0x32   :  { %180 = vperm.xlu2 %293, %v146_v19  }
  0x33   :  { %175 = vperm.xlu1 %292, %v145_v20   ;;  %170 = vperm.xlu0 %291, %v144_v21  }
  0x3a   :  { %195 = vperm.xlu2 %293, %v149_v22  }
  0x3b   :  { %190 = vperm.xlu1 %292, %v148_v23   ;;  %185 = vperm.xlu0 %291, %v147_v24  }
  0x42   :  { %210 = vperm.xlu2 %293, %v152_v25   ;;  %v19_v25 = vld [vmem:[%s524_s0 + $0x28] sm:$0xff] }
  0x43   :  { %205 = vperm.xlu1 %292, %v151_v26   ;;  %200 = vperm.xlu0 %291, %v150_v27   ;;  %v20_v26 = vld [vmem:[%s524_s0 + $0x30] sm:$0xff] }
  0x4a   :  { %225 = vperm.xlu2 %293, %v155_v28  }
  0x4b   :  { %220 = vperm.xlu1 %292, %v154_v29   ;;  %215 = vperm.xlu0 %291, %v153_v30  }
  0x53   :  { %235 = vperm.xlu1 %292, %v157_v31   ;;  %230 = vperm.xlu0 %291, %v156_v32  }
  0x5c   :  { %v69_v33 = vpop.permute.xlu2 %68 }
  0x5d   :  { %v130_v50 = vmul.f32 %v69_v33, %v18_v49  ;;  %v26_v49 = vld [vmem:[%s524_s0 + $0x60] sm:$0xff] }
  0x64   :  { %v411_v34 = vpop.permute.xlu2 %73 }
  0x65   :  { %v131_v27 = vmul.f32 %v411_v34, %v19_v25 }
  0x6c   :  { %v413_v35 = vpop.permute.xlu2 %88 }
  0x74   :  { %v415_v36 = vpop.permute.xlu2 %103 }
  0x75   :  { %v59_v37 = vpop.permute.xlu1 %58  ;;  %v49_v38 = vpop.permute.xlu0 %48 }
  0x76   :  { %v126_v2 = vmul.f32 %v49_v38, %v14_v0  ;;  %v128_v14 = vmul.f32 %v59_v37, %v16_v11  ;;  %v22_v38 = vld [vmem:[%s524_s0 + $0x40] sm:$0xff] }
  0x77   :  { %v134_v34 = vmul.f32 %v413_v35, %v22_v38 }
  0x7c   :  { %v417_v39 = vpop.permute.xlu2 %118 }
  0x7d   :  { %v64_v40 = vpop.permute.xlu1 %63  ;;  %v54_v41 = vpop.permute.xlu0 %53 }
  0x7e   :  { %v127_v43 = vmul.f32 %v54_v41, %v15_v42  ;;  %v129_v15 = vmul.f32 %v64_v40, %v17_v12  ;;  %v23_v40 = vld [vmem:[%s524_s0 + $0x48] sm:$0xff] }
  0x84   :  { %v166_v44 = vpop.permute.xlu2 %165 }
  0x85   :  { %v239_v45 = vadd.f32 %v166_v44, %v127_v43  ;;  %v84_v46 = vpop.permute.xlu1 %83  ;;  %v79_v47 = vpop.permute.xlu0 %78 }
  0x86   :  { %v133_v57 = vmul.f32 %v84_v46, %v21_v56  ;;  %v132_v28 = vmul.f32 %v79_v47, %v20_v26 }
  0x87   :  { %v255_v48 = vmax.f32 %v239_v45, 0.0 }
  0x89   :  { %271 = vst [vmem:[%s525_s3 + $0x8] sm:$0xff] %v255_v48  ;;  %v25_v48 = vld [vmem:[%s524_s0 + $0x58] sm:$0xff] }
  0x8a   :  { %v137_v35 = vmul.f32 %v415_v36, %v25_v48 }
  0x8c   :  { %v181_v51 = vpop.permute.xlu2 %180 }
  0x8d   :  { %v242_v52 = vadd.f32 %v181_v51, %v130_v50  ;;  %v99_v53 = vpop.permute.xlu1 %98  ;;  %v94_v54 = vpop.permute.xlu0 %93 }
  0x8e   :  { %v136_v1 = vmul.f32 %v99_v53, %v24_v63  ;;  %v135_v41 = vmul.f32 %v94_v54, %v23_v40 }
  0x8f   :  { %v258_v55 = vmax.f32 %v242_v52, 0.0 }
  0x91   :  { %274 = vst [vmem:[%s525_s3 + $0x20] sm:$0xff] %v258_v55 }
  0x94   :  { %v196_v58 = vpop.permute.xlu2 %195 }
  0x95   :  { %v245_v59 = vadd.f32 %v196_v58, %v133_v57  ;;  %v114_v60 = vpop.permute.xlu1 %113  ;;  %v109_v61 = vpop.permute.xlu0 %108  ;;  %v28_v57 = vld [vmem:[%s524_s0 + $0x70] sm:$0xff]  ;;  %v29_v58 = vld [vmem:[%s524_s0 + $0x78] sm:$0xff] }
  0x96   :  { %v139_v13 = vmul.f32 %v114_v60, %v27_v9  ;;  %v138_v50 = vmul.f32 %v109_v61, %v26_v49  ;;  %v140_v36 = vmul.f32 %v417_v39, %v28_v57 }
  0x97   :  { %v261_v62 = vmax.f32 %v245_v59, 0.0 }
  0x99   :  { %277 = vst [vmem:[%s525_s3 + $0x38] sm:$0xff] %v261_v62 }
  0x9c   :  { %v211_v3 = vpop.permute.xlu2 %210 }
  0x9d   :  { %v248_v4 = vadd.f32 %v211_v3, %v136_v1  ;;  %v161_v5 = vpop.permute.xlu1 %160  ;;  %v443_v6 = vpop.permute.xlu0 %123 }
  0x9e   :  { %v238_v7 = vadd.f32 %v161_v5, %v126_v2  ;;  %v141_v59 = vmul.f32 %v443_v6, %v29_v58 }
  0x9f   :  { %v264_v8 = vmax.f32 %v248_v4, 0.0 }
  0xa0   :  { %v254_v10 = vmax.f32 %v238_v7, 0.0 }
  0xa1   :  { %280 = vst [vmem:[%s525_s3 + $0x50] sm:$0xff] %v264_v8 }
  0xa2   :  { %270 = vst [vmem:[%s525_s3] sm:$0xff] %v254_v10 }
  0xa4   :  { %v226_v16 = vpop.permute.xlu2 %225 }
  0xa5   :  { %v251_v17 = vadd.f32 %v226_v16, %v139_v13  ;;  %v176_v18 = vpop.permute.xlu1 %175  ;;  %v171_v19 = vpop.permute.xlu0 %170 }
  0xa6   :  { %v241_v20 = vadd.f32 %v176_v18, %v129_v15  ;;  %v240_v21 = vadd.f32 %v171_v19, %v128_v14 }
  0xa7   :  { %v267_v22 = vmax.f32 %v251_v17, 0.0 }
  0xa8   :  { %v257_v23 = vmax.f32 %v241_v20, 0.0  ;;  %v256_v24 = vmax.f32 %v240_v21, 0.0 }
  0xa9   :  { %283 = vst [vmem:[%s525_s3 + $0x68] sm:$0xff] %v267_v22 }
  0xaa   :  { %273 = vst [vmem:[%s525_s3 + $0x18] sm:$0xff] %v257_v23 }
  0xab   :  { %272 = vst [vmem:[%s525_s3 + $0x10] sm:$0xff] %v256_v24 }
  0xad   :  { %v191_v29 = vpop.permute.xlu1 %190  ;;  %v186_v30 = vpop.permute.xlu0 %185 }
  0xae   :  { %v244_v31 = vadd.f32 %v191_v29, %v132_v28  ;;  %v243_v32 = vadd.f32 %v186_v30, %v131_v27 }
  0xb0   :  { %v260_v33 = vmax.f32 %v244_v31, 0.0  ;;  %v259_v37 = vmax.f32 %v243_v32, 0.0 }
  0xb2   :  { %276 = vst [vmem:[%s525_s3 + $0x30] sm:$0xff] %v260_v33 }
  0xb3   :  { %275 = vst [vmem:[%s525_s3 + $0x28] sm:$0xff] %v259_v37 }
  0xb5   :  { %v206_v42 = vpop.permute.xlu1 %205  ;;  %v201_v43 = vpop.permute.xlu0 %200 }
  0xb6   :  { %v247_v44 = vadd.f32 %v206_v42, %v135_v41  ;;  %v246_v45 = vadd.f32 %v201_v43, %v134_v34 }
  0xb8   :  { %v263_v46 = vmax.f32 %v247_v44, 0.0  ;;  %v262_v47 = vmax.f32 %v246_v45, 0.0 }
  0xba   :  { %279 = vst [vmem:[%s525_s3 + $0x48] sm:$0xff] %v263_v46 }
  0xbb   :  { %278 = vst [vmem:[%s525_s3 + $0x40] sm:$0xff] %v262_v47 }
  0xbd   :  { %v221_v51 = vpop.permute.xlu1 %220  ;;  %v216_v52 = vpop.permute.xlu0 %215 }
  0xbe   :  { %v250_v53 = vadd.f32 %v221_v51, %v138_v50  ;;  %v249_v54 = vadd.f32 %v216_v52, %v137_v35 }
  0xc0   :  { %v266_v55 = vmax.f32 %v250_v53, 0.0  ;;  %v265_v56 = vmax.f32 %v249_v54, 0.0 }
  0xc2   :  { %282 = vst [vmem:[%s525_s3 + $0x60] sm:$0xff] %v266_v55 }
  0xc3   :  { %281 = vst [vmem:[%s525_s3 + $0x58] sm:$0xff] %v265_v56 }
  0xc5   :  { %v236_v60 = vpop.permute.xlu1 %235  ;;  %v231_v61 = vpop.permute.xlu0 %230 }
  0xc6   :  { %v253_v62 = vadd.f32 %v236_v60, %v141_v59  ;;  %v252_v63 = vadd.f32 %v231_v61, %v140_v36 }
  0xc8   :  { %v269_v0 = vmax.f32 %v253_v62, 0.0  ;;  %v268_v1 = vmax.f32 %v252_v63, 0.0 }
  0xca   :  { %285 = vst [vmem:[%s525_s3 + $0x78] sm:$0xff] %v269_v0 }
  0xcb   :  { %284 = vst [vmem:[%s525_s3 + $0x70] sm:$0xff] %v268_v1 }

// kernel: forward.35
= control target key start
LH: loop header
LB: loop body
LE: loop exit
PB: predicated region body
PF: predicated region fallthrough
CT: control target
= control target key end

     0   :  { %s992_s12 = smov 0   ;;  %s994_s13 = smov 0   ;;  %s1115_s0 = inlined_call_operand.vmem [shape: bf16[16,3584], index: 0, kind: input, shape index: {}]   ;;  %s1116_s1 = inlined_call_operand.vmem [shape: bf16[3584,128], index: 1, kind: input, shape index: {}]   ;;  %s1117_s2 = inlined_call_operand.vmem [shape: f32[16,1], index: 2, kind: input, shape index: {}]   ;;  %s1118_s3 = inlined_call_operand.vmem [shape: f32[16,128], index: 3, kind: output, shape index: {}]  }
   0x1   :  { %s996_s14 = smov 0   ;;  %s998_s15 = smov 0  }
   0x2   :  { %s1000_s16 = smov 0  }
   0x3 LB: > { %s22_s17 = sadd.s32 1, %s964_s15  ;;  %p39_p1 = scmp.ne.s32.totalorder %s956_s13, %s952_s12  ;;  %s968_s16 = sphi %s1000_s16, %s13_s16   ;;  %s964_s15 = sphi %s998_s15, %s1122_s15   ;;  %s960_s14 = sphi %s996_s14, %s1121_s14   ;;  %s956_s13 = sphi %s994_s13, %s1120_s13   ;;  %s952_s12 = sphi %s992_s12, %s1119_s12  }
   0x4   : > { %p23_p0 = scmp.ge.s32.totalorder %s22_s17, 7  ;;  %p40_p2 = scmp.eq.s32.totalorder %s968_s16, 0 }
   0x5   : > { %s32_s19 = sadd.s32 1, %s956_s13  ;;  %p693_p5 = scmp.ge.s32.totalorder %s968_s16, 7 }
   0x6   : > { %s1124_s17 = smov (%p23_p0, %s22_s17), 0  ;;  %p41_p3 = por %p40_p2, %p39_p1 }
   0x7   : > { %s29_s18 = ssub.s32 %s964_s15, %s1124_s17  ;;  %143 = sbr.rel (%p693_p5) target bundleno = 20 (0x14), region = 20 }
   0x8   : > { %p30_p4 = scmp.eq.s32.totalorder %s29_s18, 0 }
   0xa   : > { %s1027_s20 = scalar_select %p30_p4, %s956_s13, %s32_s19  }
   0xc   : > { %146 = sbr.rel (!%p41_p3) target bundleno = 20 (0x14), region = 24  ;;  %s148_s21 = sand.u32 (%p41_p3), 1, %s956_s13  }
   0xd   : > { %s850_s22 = sshll.u32 (%p41_p3), %s964_s15, 4  ;;  %s694_s23 = sshll.u32 (%p41_p3), %s148_s21, 5 }
   0xe   : > { %s153_s26 = scalar_lea.vmem (%p41_p3), %s1115_s0, %s850_s22  ;;  %s150_s27 = scalar_lea.vmem (%p41_p3), [#allocation3], %s694_s23 }
   0xf   : > { %v166_v0 = vld [vmem:[%s153_s26] sm:$0xff] (%p41_p3)  ;;  %v168_v1 = vld [vmem:[%s153_s26 + $0x8] sm:$0xff] (%p41_p3)  ;;  %v170_v2 = vld [vmem:[%s153_s26 + $0x70] sm:$0xff] (%p41_p3) }
  0x10   : > { %167 = vst [vmem:[%s150_s27] sm:$0xff] (%p41_p3), %v166_v0  ;;  %v172_v3 = vld [vmem:[%s153_s26 + $0x78] sm:$0xff] (%p41_p3) }
  0x11   : > { %169 = vst [vmem:[%s150_s27 + $0x8] sm:$0xff] %v168_v1 }
  0x12   : > { %171 = vst [vmem:[%s150_s27 + $0x10] sm:$0xff] %v170_v2 }
  0x13   : > { %173 = vst [vmem:[%s150_s27 + $0x18] sm:$0xff] %v172_v3 }
  0x14 PF: > { %p697_p6 = scmp.ge.s32.totalorder %s968_s16, 1  ;;  %p190_p7 = scmp.lt.s32.totalorder %s968_s16, 8 }
  0x16   : > { %p191_p8 = pnand %p697_p6, %p190_p7 }
  0x17   : > { %s197_s28 = sand.u32 (!%p191_p8), 1, %s952_s12   ;;  %s699_s29 = sshll.u32 (!%p191_p8), %s960_s14, 6 }
  0x18   : > { %194 = sbr.rel (%p191_p8) target bundleno = 346 (0x15a), region = 51  ;;  %s698_s30 = sshll.u32 (!%p191_p8), %s197_s28, 5 }
  0x19   : > { %p229_p9 = scmp.lt.s32.totalorder (!%p191_p8), %s699_s29, 447  ;;  %s1044_s8 = scalar_lea.vmem (!%p191_p8), [#allocation3], %s698_s30 }
  0x1a   : > { %p701_p10 = scmp.ne.s32.totalorder (!%p191_p8), %s960_s14, 0 }
  0x1d   : > { %s1126_s29 = smov (!%p229_p9, %s699_s29), 447  ;;  %244 = sbr.rel (%p701_p10) target bundleno = 37 (0x25), region = 59 }
  0x1e   : > { %s700_s4 = sshll.u32 %s1126_s29, 2 }
  0x1f   : > { %s1042_s7 = scalar_lea.vmem %s1116_s1, %s700_s4 }
  0x22   : > { %v970_v4 = vmov 0.0  }
  0x23   : > { %245 = vst [vmem:[#allocation2] sm:$0xff] %v970_v4 }
  0x24   : > { %246 = vst [vmem:[#allocation2 + $0x8] sm:$0xff] %v970_v4 }
  0x25 PF: > { %v862_v5 = vld [vmem:[%s1042_s7 + $0x38] sm:$0xff]  ;;  %v861_v9 = vld [vmem:[%s1042_s7 + $0x30] sm:$0xff]  ;;  %v860_v13 = vld [vmem:[%s1042_s7 + $0x28] sm:$0xff]  ;;  %p846_p11 = scmp.ne.s32.totalorder %s960_s14, 6 }
  0x26   : > { %v870_v6 = vld [vmem:[%s1042_s7 + $0x78] sm:$0xff]  ;;  %529 = vmatpush.bf16.msra.mxu0 %v862_v5  ;;  %v869_v10 = vld [vmem:[%s1042_s7 + $0x70] sm:$0xff]  ;;  %v868_v14 = vld [vmem:[%s1042_s7 + $0x68] sm:$0xff] }
  0x27   : > { %v878_v7 = vld [vmem:[%s1042_s7 + $0xb8] sm:$0xff]  ;;  %543 = vmatpush.bf16.msra.mxu1 %v870_v6  ;;  %v877_v11 = vld [vmem:[%s1042_s7 + $0xb0] sm:$0xff]  ;;  %v876_v15 = vld [vmem:[%s1042_s7 + $0xa8] sm:$0xff] }
  0x28   : > { %v886_v8 = vld [vmem:[%s1042_s7 + $0xf8] sm:$0xff]  ;;  %557 = vmatpush.bf16.msra.mxu2 %v878_v7  ;;  %v885_v12 = vld [vmem:[%s1042_s7 + $0xf0] sm:$0xff]  ;;  %v884_v16 = vld [vmem:[%s1042_s7 + $0xe8] sm:$0xff] }
  0x29   : > { %571 = vmatpush.bf16.msra.mxu3 %v886_v8  ;;  %v859_v17 = vld [vmem:[%s1042_s7 + $0x20] sm:$0xff]  ;;  %v858_v21 = vld [vmem:[%s1042_s7 + $0x18] sm:$0xff]  ;;  %v857_v25 = vld [vmem:[%s1042_s7 + $0x10] sm:$0xff] }
  0x2a   : > { %530 = vmatpush.bf16.msra.mxu0 %v861_v9  ;;  %v867_v18 = vld [vmem:[%s1042_s7 + $0x60] sm:$0xff]  ;;  %v866_v22 = vld [vmem:[%s1042_s7 + $0x58] sm:$0xff]  ;;  %v865_v26 = vld [vmem:[%s1042_s7 + $0x50] sm:$0xff] }
  0x2b   : > { %544 = vmatpush.bf16.msra.mxu1 %v869_v10  ;;  %v875_v19 = vld [vmem:[%s1042_s7 + $0xa0] sm:$0xff]  ;;  %v874_v23 = vld [vmem:[%s1042_s7 + $0x98] sm:$0xff]  ;;  %v873_v27 = vld [vmem:[%s1042_s7 + $0x90] sm:$0xff] }
  0x2c   : > { %558 = vmatpush.bf16.msra.mxu2 %v877_v11  ;;  %v883_v20 = vld [vmem:[%s1042_s7 + $0xe0] sm:$0xff]  ;;  %v882_v24 = vld [vmem:[%s1042_s7 + $0xd8] sm:$0xff]  ;;  %v881_v28 = vld [vmem:[%s1042_s7 + $0xd0] sm:$0xff] }
  0x2d   : > { %572 = vmatpush.bf16.msra.mxu3 %v885_v12  ;;  %v856_v29 = vld [vmem:[%s1042_s7 + $0x8] sm:$0xff]  ;;  %v855_v33 = vld [vmem:[%s1042_s7] sm:$0xff]  ;;  %v704_v37 = vld [vmem:[%s1044_s8] sm:$0xf] }
  0x2e   : > { %531 = vmatpush.bf16.msra.mxu0 %v860_v13  ;;  %v864_v30 = vld [vmem:[%s1042_s7 + $0x48] sm:$0xff]  ;;  %v863_v34 = vld [vmem:[%s1042_s7 + $0x40] sm:$0xff]  ;;  %v851_v39 = vld [vmem:[%s1044_s8 + $0x4] sm:$0xf] }
  0x2f   : > { %545 = vmatpush.bf16.msra.mxu1 %v868_v14  ;;  %v872_v31 = vld [vmem:[%s1042_s7 + $0x88] sm:$0xff]  ;;  %v871_v35 = vld [vmem:[%s1042_s7 + $0x80] sm:$0xff]  ;;  %v712_v41 = vld [vmem:[%s1044_s8 + $0x8] sm:$0xf] }
  0x30   : > { %559 = vmatpush.bf16.msra.mxu2 %v876_v15  ;;  %v880_v32 = vld [vmem:[%s1042_s7 + $0xc8] sm:$0xff]  ;;  %v879_v36 = vld [vmem:[%s1042_s7 + $0xc0] sm:$0xff]  ;;  %v852_v43 = vld [vmem:[%s1044_s8 + $0xc] sm:$0xf] }
  0x31   : > { %573 = vmatpush.bf16.msra.mxu3 %v884_v16  ;;  %v853_v38 = vld [vmem:[%s1044_s8 + $0xc] sm:$0xf0]  ;;  %v706_v40 = vld [vmem:[%s1044_s8 + $0x10] sm:$0xf0]  ;;  %v854_v42 = vld [vmem:[%s1044_s8 + $0x14] sm:$0xf0] }
  0x32   : > { %532 = vmatpush.bf16.msra.mxu0 %v859_v17  ;;  %v714_v44 = vld [vmem:[%s1044_s8 + $0x18] sm:$0xf0]  ;;  %v705_v45 = vor.u32 %v853_v38, %v704_v37  ;;  %v709_v46 = vor.u32 %v851_v39, %v706_v40  ;;  %v713_v47 = vor.u32 %v854_v42, %v712_v41  ;;  %v247_v55 = vld [vmem:[#allocation2] sm:$0xff] }
  0x33   : > { %546 = vmatpush.bf16.msra.mxu1 %v867_v18  ;;  %v717_v48 = vor.u32 %v852_v43, %v714_v44  ;;  %v248_v63 = vld [vmem:[#allocation2 + $0x8] sm:$0xff] }
  0x34   : > { %560 = vmatpush.bf16.msra.mxu2 %v875_v19 }
  0x35   : > { %574 = vmatpush.bf16.msra.mxu3 %v883_v20 }
  0x36   : > { %533 = vmatpush.bf16.msra.mxu0 %v858_v21 }
  0x37   : > { %547 = vmatpush.bf16.msra.mxu1 %v866_v22 }
  0x38   : > { %561 = vmatpush.bf16.msra.mxu2 %v874_v23 }
  0x39   : > { %575 = vmatpush.bf16.msra.mxu3 %v882_v24 }
  0x3a   : > { %534 = vmatpush.bf16.msra.mxu0 %v857_v25 }
  0x3b   : > { %548 = vmatpush.bf16.msra.mxu1 %v865_v26 }
  0x3c   : > { %562 = vmatpush.bf16.msra.mxu2 %v873_v27 }
  0x3d   : > { %576 = vmatpush.bf16.msra.mxu3 %v881_v28 }
  0x3e   : > { %535 = vmatpush.bf16.msra.mxu0 %v856_v29 }
  0x3f   : > { %549 = vmatpush.bf16.msra.mxu1 %v864_v30 }
  0x40   : > { %563 = vmatpush.bf16.msra.mxu2 %v872_v31 }
  0x41   : > { %577 = vmatpush.bf16.msra.mxu3 %v880_v32 }
  0x42   : > { %536 = vmatpush.bf16.msra.mxu0 %v855_v33 }
  0x43   : > { %550 = vmatpush.bf16.msra.mxu1 %v863_v34 }
  0x44   : > { %564 = vmatpush.bf16.msra.mxu2 %v871_v35 }
  0x45   : > { %578 = vmatpush.bf16.msra.mxu3 %v879_v36  ;;  %537 = vmatmul.bf16.vlgmr.msra.gmra.mxu0 %v705_v45 }
  0x46   : > { %551 = vmatmul.bf16.vlgmr.msra.gmra.mxu1 %v709_v46 }
  0x47   : > { %565 = vmatmul.bf16.vlgmr.msra.gmra.mxu2 %v713_v47 }
  0x48   : > { %579 = vmatmul.bf16.vlgmr.msra.gmra.mxu3 %v717_v48 }
  0xc2   : > { %v538_v49 = vpop.f32.mrf.mxu0 }
  0xc3   : > { %v552_v50 = vpop.f32.mrf.mxu1 }
  0xc4   : > { %v553_v51 = vadd.f32 %v552_v50, %v538_v49 }
  0xca   : > { %v566_v52 = vpop.f32.mrf.mxu2  ;;  %v540_v57 = vpop.f32.mrf.mxu0 }
  0xcb   : > { %v580_v53 = vpop.f32.mrf.mxu3  ;;  %v567_v54 = vadd.f32 %v566_v52, %v553_v51  ;;  %v554_v58 = vpop.f32.mrf.mxu1 }
  0xcc   : > { %v555_v60 = vadd.f32 %v554_v58, %v540_v57 }
  0xcd   : > { %v581_v56 = vadd.f32 %v580_v53, %v567_v54 }
  0xcf   : > { %v585_v59 = vadd.f32 %v581_v56, %v247_v55 }
  0xd1   : > { %587 = vst [vmem:[#allocation2] sm:$0xff] %v585_v59 }
  0xd2   : > { %v568_v61 = vpop.f32.mrf.mxu2 }
  0xd3   : > { %v569_v62 = vadd.f32 %v568_v61, %v555_v60  ;;  %v582_v0 = vpop.f32.mrf.mxu3 }
  0xd5   : > { %v583_v1 = vadd.f32 %v582_v0, %v569_v62  ;;  %592 = sbr.rel (%p846_p11) target bundleno = 346 (0x15a), region = 63 }
  0xd7   : > { %v586_v2 = vadd.f32 %v583_v1, %v248_v63 }
  0xd9   : > { %588 = vst [vmem:[#allocation2 + $0x8] sm:$0xff] %v586_v2 }
  0xda   : > { %v595_v3 = vld [vmem:[%s1117_s2] sm:$0xff]  ;;  %v971_v4 = vmov 0   ;;  %v596_v5 = vld [vmem:[%s1117_s2 + $0x8] sm:$0xff] }
  0xdb   : > { %929 = vset.pattern.permute.xlu0 %v971_v4  ;;  %v593_v6 = vld [vmem:[#allocation2] sm:$0xff] }
  0xdc   : > { %599 = vperm.xlu0 %929, %v595_v3  }
  0xe0   : > { %v594_v9 = vld [vmem:[#allocation2 + $0x8] sm:$0xff] }
  0xe4   : > { %604 = vperm.xlu0 %929, %v596_v5  }
 0x14e   : > { %v600_v7 = vpop.permute.xlu0 %599 }
 0x14f   : > { %v607_v8 = vadd.f32 %v600_v7, %v593_v6 }
 0x151   : > { %609 = vst [vmem:[%s1118_s3] sm:$0xff] %v607_v8 }
 0x156   : > { %v605_v10 = vpop.permute.xlu0 %604 }
 0x157   : > { %v608_v11 = vadd.f32 %v605_v10, %v594_v9 }
 0x159   : > { %610 = vst [vmem:[%s1118_s3 + $0x8] sm:$0xff] %v608_v11 }
 0x15a PF: > { %s13_s16 = sadd.s32 1, %s968_s16   ;;  %s1119_s12 = smov %s956_s13 }
 0x15b   : > { %p10_p12 = scmp.ge.s32.totalorder %s13_s16, 9   ;;  %s1120_s13 = smov %s1027_s20 }
 0x15c   : > { %s1121_s14 = smov %s964_s15  ;;  %s1122_s15 = smov %s1124_s17 }
 0x15d   :  { %12 = sbr.rel (!%p10_p12) target bundleno = 3 (0x3), region = 101 }

// kernel: forward.37
= control target key start
LH: loop header
LB: loop body
LE: loop exit
PB: predicated region body
PF: predicated region fallthrough
CT: control target
= control target key end

     0   :  { %v53_v0 = vmov 0   ;;  %s98_s2 = inlined_call_operand.vmem [shape: f32[16,1], index: 2, kind: input, shape index: {}]   ;;  %s99_s1 = inlined_call_operand.vmem [shape: f32[16,1], index: 1, kind: input, shape index: {}]   ;;  %s100_s0 = inlined_call_operand.vmem [shape: f32[16,128], index: 0, kind: input, shape index: {}]   ;;  %s101_s3 = inlined_call_operand.vmem [shape: f32[16,128], index: 3, kind: output, shape index: {}]  }
   0x1   :  { %52 = vset.pattern.permute.xlu1 %v53_v0  ;;  %51 = vset.pattern.permute.xlu0 %v53_v0  ;;  %v30_v1 = vld [vmem:[%s98_s2] sm:$0xff]  ;;  %v31_v3 = vld [vmem:[%s98_s2 + $0x8] sm:$0xff] }
   0x2   :  { %v16_v2 = vld [vmem:[%s99_s1] sm:$0xff]  ;;  %34 = vperm.xlu1 %52, %v30_v1   ;;  %v17_v4 = vld [vmem:[%s99_s1 + $0x8] sm:$0xff] }
   0x3   :  { %20 = vperm.xlu0 %51, %v16_v2   ;;  %v14_v5 = vld [vmem:[%s100_s0] sm:$0xff]  ;;  %v15_v10 = vld [vmem:[%s100_s0 + $0x8] sm:$0xff] }
   0xa   :  { %39 = vperm.xlu1 %52, %v31_v3  }
   0xb   :  { %25 = vperm.xlu0 %51, %v17_v4  }
  0x74   :  { %v35_v6 = vpop.permute.xlu1 %34 }
  0x75   :  { %v21_v7 = vpop.permute.xlu0 %20 }
  0x76   :  { %v28_v8 = vmul.f32 %v21_v7, %v14_v5 }
  0x78   :  { %v42_v9 = vadd.f32 %v35_v6, %v28_v8 }
  0x7a   :  { %44 = vst [vmem:[%s101_s3] sm:$0xff] %v42_v9 }
  0x7c   :  { %v40_v13 = vpop.permute.xlu1 %39 }
  0x7d   :  { %v26_v11 = vpop.permute.xlu0 %25 }
  0x7e   :  { %v29_v12 = vmul.f32 %v26_v11, %v15_v10 }
  0x80   :  { %v43_v14 = vadd.f32 %v40_v13, %v29_v12 }
  0x82   :  { %45 = vst [vmem:[%s101_s3 + $0x8] sm:$0xff] %v43_v14 }

// kernel: forward.36
= control target key start
LH: loop header
LB: loop body
LE: loop exit
PB: predicated region body
PF: predicated region fallthrough
CT: control target
= control target key end

     0   :  { %v184_v2 = vmov 0   ;;  %s244_s1 = inlined_call_operand.vmem [shape: bf16[128,128], index: 1, kind: input, shape index: {}]   ;;  %s245_s2 = inlined_call_operand.vmem [shape: f32[16,1], index: 2, kind: input, shape index: {}]   ;;  %s246_s0 = inlined_call_operand.vmem [shape: bf16[16,128], index: 0, kind: input, shape index: {}]   ;;  %s247_s3 = inlined_call_operand.vmem [shape: f32[16,128], index: 3, kind: output, shape index: {}]  }
   0x1   :  { %v181_v0 = vld [vmem:[%s244_s1 + $0x38] sm:$0xff]  ;;  %v180_v1 = vld [vmem:[%s244_s1 + $0x30] sm:$0xff]  ;;  %183 = vset.pattern.permute.xlu0 %v184_v2  ;;  %v117_v3 = vld [vmem:[%s245_s2] sm:$0xff] }
   0x2   :  { %94 = vmatpush.bf16.msra.mxu0 %v181_v0  ;;  %121 = vperm.xlu0 %183, %v117_v3   ;;  %v179_v4 = vld [vmem:[%s244_s1 + $0x28] sm:$0xff]  ;;  %v178_v6 = vld [vmem:[%s244_s1 + $0x20] sm:$0xff]  ;;  %v177_v7 = vld [vmem:[%s244_s1 + $0x18] sm:$0xff] }
   0x3   :  { %v118_v5 = vld [vmem:[%s245_s2 + $0x8] sm:$0xff]  ;;  %v176_v8 = vld [vmem:[%s244_s1 + $0x10] sm:$0xff]  ;;  %v174_v10 = vld [vmem:[%s244_s1] sm:$0xff] }
   0x4   :  { %v175_v9 = vld [vmem:[%s244_s1 + $0x8] sm:$0xff]  ;;  %v173_v11 = vld [vmem:[%s246_s0] sm:$0xff] }
   0x6   :  { %95 = vmatpush.bf16.msra.mxu0 %v180_v1 }
   0xa   :  { %96 = vmatpush.bf16.msra.mxu0 %v179_v4  ;;  %126 = vperm.xlu0 %183, %v118_v5  }
   0xe   :  { %97 = vmatpush.bf16.msra.mxu0 %v178_v6 }
  0x12   :  { %98 = vmatpush.bf16.msra.mxu0 %v177_v7 }
  0x16   :  { %99 = vmatpush.bf16.msra.mxu0 %v176_v8 }
  0x1a   :  { %100 = vmatpush.bf16.msra.mxu0 %v175_v9 }
  0x1e   :  { %101 = vmatpush.bf16.msra.mxu0 %v174_v10 }
  0x21   :  { %102 = vmatmul.bf16.vlgmr.msra.gmra.mxu0 %v173_v11 }
  0x74   :  { %v122_v12 = vpop.permute.xlu0 %121 }
  0x7c   :  { %v127_v15 = vpop.permute.xlu0 %126 }
  0x9e   :  { %v103_v13 = vpop.f32.mrf.mxu0 }
  0x9f   :  { %v129_v14 = vadd.f32 %v122_v12, %v103_v13 }
  0xa1   :  { %131 = vst [vmem:[%s247_s3] sm:$0xff] %v129_v14 }
  0xa6   :  { %v105_v16 = vpop.f32.mrf.mxu0 }
  0xa7   :  { %v130_v17 = vadd.f32 %v127_v15, %v105_v16 }
  0xa9   :  { %132 = vst [vmem:[%s247_s3 + $0x8] sm:$0xff] %v130_v17 }

// kernel: forward.38
= control target key start
LH: loop header
LB: loop body
LE: loop exit
PB: predicated region body
PF: predicated region fallthrough
CT: control target
= control target key end

     0   :  { %v62_v0 = vmov 0   ;;  %s118_s2 = inlined_call_operand.vmem [shape: f32[16,1], index: 2, kind: input, shape index: {}]   ;;  %s119_s1 = inlined_call_operand.vmem [shape: f32[16,1], index: 1, kind: input, shape index: {}]   ;;  %s120_s0 = inlined_call_operand.vmem [shape: f32[16,128], index: 0, kind: input, shape index: {}]   ;;  %s121_s3 = inlined_call_operand.vmem [shape: f32[16,128], index: 3, kind: input, shape index: {}]   ;;  %s122_s4 = inlined_call_operand.vmem [shape: f32[16,128], index: 4, kind: output, shape index: {}]  }
   0x1   :  { %61 = vset.pattern.permute.xlu1 %v62_v0  ;;  %60 = vset.pattern.permute.xlu0 %v62_v0  ;;  %v33_v1 = vld [vmem:[%s118_s2] sm:$0xff]  ;;  %v34_v3 = vld [vmem:[%s118_s2 + $0x8] sm:$0xff] }
   0x2   :  { %v19_v2 = vld [vmem:[%s119_s1] sm:$0xff]  ;;  %37 = vperm.xlu1 %61, %v33_v1   ;;  %v20_v4 = vld [vmem:[%s119_s1 + $0x8] sm:$0xff] }
   0x3   :  { %23 = vperm.xlu0 %60, %v19_v2   ;;  %v17_v5 = vld [vmem:[%s120_s0] sm:$0xff]  ;;  %v18_v12 = vld [vmem:[%s120_s0 + $0x8] sm:$0xff] }
   0x4   :  { %v47_v9 = vld [vmem:[%s121_s3] sm:$0xff]  ;;  %v48_v17 = vld [vmem:[%s121_s3 + $0x8] sm:$0xff] }
   0xa   :  { %42 = vperm.xlu1 %61, %v34_v3  }
   0xb   :  { %28 = vperm.xlu0 %60, %v20_v4  }
  0x74   :  { %v38_v6 = vpop.permute.xlu1 %37 }
  0x75   :  { %v24_v7 = vpop.permute.xlu0 %23 }
  0x76   :  { %v31_v8 = vmul.f32 %v24_v7, %v17_v5 }
  0x78   :  { %v45_v10 = vadd.f32 %v38_v6, %v31_v8 }
  0x7a   :  { %v49_v11 = vadd.f32 %v47_v9, %v45_v10 }
  0x7c   :  { %v51_v13 = vmax.f32 %v49_v11, 0.0  ;;  %v43_v16 = vpop.permute.xlu1 %42 }
  0x7d   :  { %v29_v14 = vpop.permute.xlu0 %28 }
  0x7e   :  { %53 = vst [vmem:[%s122_s4] sm:$0xff] %v51_v13  ;;  %v32_v15 = vmul.f32 %v29_v14, %v18_v12 }
  0x80   :  { %v46_v18 = vadd.f32 %v43_v16, %v32_v15 }
  0x82   :  { %v50_v19 = vadd.f32 %v48_v17, %v46_v18 }
  0x84   :  { %v52_v20 = vmax.f32 %v50_v19, 0.0 }
  0x86   :  { %54 = vst [vmem:[%s122_s4 + $0x8] sm:$0xff] %v52_v20 }

// kernel: forward.39
= control target key start
LH: loop header
LB: loop body
LE: loop exit
PB: predicated region body
PF: predicated region fallthrough
CT: control target
= control target key end

     0   :  { %v569_v8 = vmov 0   ;;  %s722_s1 = inlined_call_operand.vmem [shape: bf16[512,128], index: 1, kind: input, shape index: {}]   ;;  %s723_s2 = inlined_call_operand.vmem [shape: f32[16,1], index: 2, kind: input, shape index: {}]   ;;  %s724_s0 = inlined_call_operand.vmem [shape: bf16[16,512], index: 0, kind: input, shape index: {}]   ;;  %s725_s3 = inlined_call_operand.vmem [shape: f32[16,128], index: 3, kind: output, shape index: {}]  }
   0x1   :  { %v542_v0 = vld [vmem:[%s722_s1 + $0x38] sm:$0xff]  ;;  %v541_v4 = vld [vmem:[%s722_s1 + $0x30] sm:$0xff]  ;;  %568 = vset.pattern.permute.xlu0 %v569_v8  ;;  %v540_v9 = vld [vmem:[%s722_s1 + $0x28] sm:$0xff] }
   0x2   :  { %v550_v1 = vld [vmem:[%s722_s1 + $0x78] sm:$0xff]  ;;  %302 = vmatpush.bf16.msra.mxu0 %v542_v0  ;;  %v549_v5 = vld [vmem:[%s722_s1 + $0x70] sm:$0xff]  ;;  %v548_v10 = vld [vmem:[%s722_s1 + $0x68] sm:$0xff] }
   0x3   :  { %v558_v2 = vld [vmem:[%s722_s1 + $0xb8] sm:$0xff]  ;;  %316 = vmatpush.bf16.msra.mxu1 %v550_v1  ;;  %v557_v6 = vld [vmem:[%s722_s1 + $0xb0] sm:$0xff]  ;;  %v556_v11 = vld [vmem:[%s722_s1 + $0xa8] sm:$0xff] }
   0x4   :  { %v566_v3 = vld [vmem:[%s722_s1 + $0xf8] sm:$0xff]  ;;  %330 = vmatpush.bf16.msra.mxu2 %v558_v2  ;;  %v565_v7 = vld [vmem:[%s722_s1 + $0xf0] sm:$0xff]  ;;  %v564_v12 = vld [vmem:[%s722_s1 + $0xe8] sm:$0xff] }
   0x5   :  { %344 = vmatpush.bf16.msra.mxu3 %v566_v3  ;;  %v539_v13 = vld [vmem:[%s722_s1 + $0x20] sm:$0xff]  ;;  %v538_v18 = vld [vmem:[%s722_s1 + $0x18] sm:$0xff]  ;;  %v537_v22 = vld [vmem:[%s722_s1 + $0x10] sm:$0xff] }
   0x6   :  { %303 = vmatpush.bf16.msra.mxu0 %v541_v4  ;;  %v547_v14 = vld [vmem:[%s722_s1 + $0x60] sm:$0xff]  ;;  %v546_v19 = vld [vmem:[%s722_s1 + $0x58] sm:$0xff]  ;;  %v545_v23 = vld [vmem:[%s722_s1 + $0x50] sm:$0xff] }
   0x7   :  { %317 = vmatpush.bf16.msra.mxu1 %v549_v5  ;;  %v555_v15 = vld [vmem:[%s722_s1 + $0xa0] sm:$0xff]  ;;  %v554_v20 = vld [vmem:[%s722_s1 + $0x98] sm:$0xff]  ;;  %v553_v24 = vld [vmem:[%s722_s1 + $0x90] sm:$0xff] }
   0x8   :  { %331 = vmatpush.bf16.msra.mxu2 %v557_v6  ;;  %v563_v16 = vld [vmem:[%s722_s1 + $0xe0] sm:$0xff]  ;;  %v562_v21 = vld [vmem:[%s722_s1 + $0xd8] sm:$0xff]  ;;  %v561_v25 = vld [vmem:[%s722_s1 + $0xd0] sm:$0xff] }
   0x9   :  { %345 = vmatpush.bf16.msra.mxu3 %v565_v7  ;;  %v367_v17 = vld [vmem:[%s723_s2] sm:$0xff]  ;;  %v368_v26 = vld [vmem:[%s723_s2 + $0x8] sm:$0xff]  ;;  %v533_v36 = vld [vmem:[%s724_s0 + $0xc] sm:$0xf0] }
   0xa   :  { %304 = vmatpush.bf16.msra.mxu0 %v540_v9  ;;  %371 = vperm.xlu0 %568, %v367_v17   ;;  %v536_v27 = vld [vmem:[%s722_s1 + $0x8] sm:$0xff]  ;;  %v535_v31 = vld [vmem:[%s722_s1] sm:$0xff]  ;;  %v391_v38 = vld [vmem:[%s724_s0 + $0x10] sm:$0xf0] }
   0xb   :  { %318 = vmatpush.bf16.msra.mxu1 %v548_v10  ;;  %v544_v28 = vld [vmem:[%s722_s1 + $0x48] sm:$0xff]  ;;  %v543_v32 = vld [vmem:[%s722_s1 + $0x40] sm:$0xff]  ;;  %v534_v40 = vld [vmem:[%s724_s0 + $0x14] sm:$0xf0] }
   0xc   :  { %332 = vmatpush.bf16.msra.mxu2 %v556_v11  ;;  %v552_v29 = vld [vmem:[%s722_s1 + $0x88] sm:$0xff]  ;;  %v551_v33 = vld [vmem:[%s722_s1 + $0x80] sm:$0xff]  ;;  %v399_v42 = vld [vmem:[%s724_s0 + $0x18] sm:$0xf0] }
   0xd   :  { %346 = vmatpush.bf16.msra.mxu3 %v564_v12  ;;  %v560_v30 = vld [vmem:[%s722_s1 + $0xc8] sm:$0xff]  ;;  %v559_v34 = vld [vmem:[%s722_s1 + $0xc0] sm:$0xff] }
   0xe   :  { %305 = vmatpush.bf16.msra.mxu0 %v539_v13  ;;  %v389_v35 = vld [vmem:[%s724_s0] sm:$0xf]  ;;  %v531_v37 = vld [vmem:[%s724_s0 + $0x4] sm:$0xf]  ;;  %v397_v39 = vld [vmem:[%s724_s0 + $0x8] sm:$0xf] }
   0xf   :  { %319 = vmatpush.bf16.msra.mxu1 %v547_v14  ;;  %v532_v41 = vld [vmem:[%s724_s0 + $0xc] sm:$0xf]  ;;  %v390_v43 = vor.u32 %v533_v36, %v389_v35  ;;  %v394_v44 = vor.u32 %v531_v37, %v391_v38  ;;  %v398_v45 = vor.u32 %v534_v40, %v397_v39 }
  0x10   :  { %333 = vmatpush.bf16.msra.mxu2 %v555_v15  ;;  %v402_v46 = vor.u32 %v532_v41, %v399_v42 }
  0x11   :  { %347 = vmatpush.bf16.msra.mxu3 %v563_v16 }
  0x12   :  { %306 = vmatpush.bf16.msra.mxu0 %v538_v18  ;;  %376 = vperm.xlu0 %568, %v368_v26  }
  0x13   :  { %320 = vmatpush.bf16.msra.mxu1 %v546_v19 }
  0x14   :  { %334 = vmatpush.bf16.msra.mxu2 %v554_v20 }
  0x15   :  { %348 = vmatpush.bf16.msra.mxu3 %v562_v21 }
  0x16   :  { %307 = vmatpush.bf16.msra.mxu0 %v537_v22 }
  0x17   :  { %321 = vmatpush.bf16.msra.mxu1 %v545_v23 }
  0x18   :  { %335 = vmatpush.bf16.msra.mxu2 %v553_v24 }
  0x19   :  { %349 = vmatpush.bf16.msra.mxu3 %v561_v25 }
  0x1a   :  { %308 = vmatpush.bf16.msra.mxu0 %v536_v27 }
  0x1b   :  { %322 = vmatpush.bf16.msra.mxu1 %v544_v28 }
  0x1c   :  { %336 = vmatpush.bf16.msra.mxu2 %v552_v29 }
  0x1d   :  { %350 = vmatpush.bf16.msra.mxu3 %v560_v30 }
  0x1e   :  { %309 = vmatpush.bf16.msra.mxu0 %v535_v31 }
  0x1f   :  { %323 = vmatpush.bf16.msra.mxu1 %v543_v32 }
  0x20   :  { %337 = vmatpush.bf16.msra.mxu2 %v551_v33 }
  0x21   :  { %351 = vmatpush.bf16.msra.mxu3 %v559_v34  ;;  %310 = vmatmul.bf16.vlgmr.msra.gmra.mxu0 %v390_v43 }
  0x22   :  { %324 = vmatmul.bf16.vlgmr.msra.gmra.mxu1 %v394_v44 }
  0x23   :  { %338 = vmatmul.bf16.vlgmr.msra.gmra.mxu2 %v398_v45 }
  0x24   :  { %352 = vmatmul.bf16.vlgmr.msra.gmra.mxu3 %v402_v46 }
  0x7c   :  { %v372_v53 = vpop.permute.xlu0 %371 }
  0x84   :  { %v377_v63 = vpop.permute.xlu0 %376 }
  0x9e   :  { %v311_v47 = vpop.f32.mrf.mxu0 }
  0x9f   :  { %v325_v48 = vpop.f32.mrf.mxu1 }
  0xa0   :  { %v326_v49 = vadd.f32 %v325_v48, %v311_v47 }
  0xa6   :  { %v339_v50 = vpop.f32.mrf.mxu2  ;;  %v313_v55 = vpop.f32.mrf.mxu0 }
  0xa7   :  { %v353_v51 = vpop.f32.mrf.mxu3  ;;  %v340_v52 = vadd.f32 %v339_v50, %v326_v49  ;;  %v327_v56 = vpop.f32.mrf.mxu1 }
  0xa8   :  { %v328_v58 = vadd.f32 %v327_v56, %v313_v55 }
  0xa9   :  { %v354_v54 = vadd.f32 %v353_v51, %v340_v52 }
  0xab   :  { %v379_v57 = vadd.f32 %v372_v53, %v354_v54 }
  0xad   :  { %381 = vst [vmem:[%s725_s3] sm:$0xff] %v379_v57 }
  0xae   :  { %v341_v59 = vpop.f32.mrf.mxu2 }
  0xaf   :  { %v342_v60 = vadd.f32 %v341_v59, %v328_v58  ;;  %v355_v61 = vpop.f32.mrf.mxu3 }
  0xb1   :  { %v356_v62 = vadd.f32 %v355_v61, %v342_v60 }
  0xb3   :  { %v380_v0 = vadd.f32 %v377_v63, %v356_v62 }
  0xb5   :  { %382 = vst [vmem:[%s725_s3 + $0x8] sm:$0xff] %v380_v0 }

// kernel: forward.40
= control target key start
LH: loop header
LB: loop body
LE: loop exit
PB: predicated region body
PF: predicated region fallthrough
CT: control target
= control target key end

     0   :  { %v55_v0 = vmov 0   ;;  %s100_s2 = inlined_call_operand.vmem [shape: f32[16,1], index: 2, kind: input, shape index: {}]   ;;  %s101_s1 = inlined_call_operand.vmem [shape: f32[16,1], index: 1, kind: input, shape index: {}]   ;;  %s102_s0 = inlined_call_operand.vmem [shape: f32[16,128], index: 0, kind: input, shape index: {}]   ;;  %s103_s3 = inlined_call_operand.vmem [shape: f32[16,128], index: 3, kind: output, shape index: {}]  }
   0x1   :  { %54 = vset.pattern.permute.xlu1 %v55_v0  ;;  %53 = vset.pattern.permute.xlu0 %v55_v0  ;;  %v30_v1 = vld [vmem:[%s100_s2] sm:$0xff]  ;;  %v31_v3 = vld [vmem:[%s100_s2 + $0x8] sm:$0xff] }
   0x2   :  { %v16_v2 = vld [vmem:[%s101_s1] sm:$0xff]  ;;  %34 = vperm.xlu1 %54, %v30_v1   ;;  %v17_v4 = vld [vmem:[%s101_s1 + $0x8] sm:$0xff] }
   0x3   :  { %20 = vperm.xlu0 %53, %v16_v2   ;;  %v14_v5 = vld [vmem:[%s102_s0] sm:$0xff]  ;;  %v15_v11 = vld [vmem:[%s102_s0 + $0x8] sm:$0xff] }
   0xa   :  { %39 = vperm.xlu1 %54, %v31_v3  }
   0xb   :  { %25 = vperm.xlu0 %53, %v17_v4  }
  0x74   :  { %v35_v6 = vpop.permute.xlu1 %34 }
  0x75   :  { %v21_v7 = vpop.permute.xlu0 %20 }
  0x76   :  { %v28_v8 = vmul.f32 %v21_v7, %v14_v5 }
  0x78   :  { %v42_v9 = vadd.f32 %v35_v6, %v28_v8 }
  0x7a   :  { %v44_v10 = vmax.f32 %v42_v9, 0.0 }
  0x7c   :  { %46 = vst [vmem:[%s103_s3] sm:$0xff] %v44_v10  ;;  %v40_v14 = vpop.permute.xlu1 %39 }
  0x7d   :  { %v26_v12 = vpop.permute.xlu0 %25 }
  0x7e   :  { %v29_v13 = vmul.f32 %v26_v12, %v15_v11 }
  0x80   :  { %v43_v15 = vadd.f32 %v40_v14, %v29_v13 }
  0x82   :  { %v45_v16 = vmax.f32 %v43_v15, 0.0 }
  0x84   :  { %47 = vst [vmem:[%s103_s3 + $0x8] sm:$0xff] %v45_v16 }

// kernel: forward.50
= control target key start
LH: loop header
LB: loop body
LE: loop exit
PB: predicated region body
PF: predicated region fallthrough
CT: control target
= control target key end

     0   :  { %v311_v4 = vmov 0   ;;  %s404_s1 = inlined_call_operand.vmem [shape: bf16[256,128], index: 1, kind: input, shape index: {}]   ;;  %s405_s2 = inlined_call_operand.vmem [shape: f32[16,1], index: 2, kind: input, shape index: {}]   ;;  %s406_s0 = inlined_call_operand.vmem [shape: bf16[16,256], index: 0, kind: input, shape index: {}]   ;;  %s407_s3 = inlined_call_operand.vmem [shape: f32[16,128], index: 3, kind: output, shape index: {}]  }
   0x1   :  { %v300_v0 = vld [vmem:[%s404_s1 + $0x38] sm:$0xff]  ;;  %v299_v2 = vld [vmem:[%s404_s1 + $0x30] sm:$0xff]  ;;  %310 = vset.pattern.permute.xlu0 %v311_v4  ;;  %v298_v5 = vld [vmem:[%s404_s1 + $0x28] sm:$0xff] }
   0x2   :  { %v308_v1 = vld [vmem:[%s404_s1 + $0x78] sm:$0xff]  ;;  %162 = vmatpush.bf16.msra.mxu0 %v300_v0  ;;  %v307_v3 = vld [vmem:[%s404_s1 + $0x70] sm:$0xff]  ;;  %v306_v6 = vld [vmem:[%s404_s1 + $0x68] sm:$0xff] }
   0x3   :  { %176 = vmatpush.bf16.msra.mxu1 %v308_v1  ;;  %v199_v7 = vld [vmem:[%s405_s2] sm:$0xff]  ;;  %v200_v10 = vld [vmem:[%s405_s2 + $0x8] sm:$0xff]  ;;  %v296_v11 = vld [vmem:[%s404_s1 + $0x18] sm:$0xff] }
   0x4   :  { %203 = vperm.xlu0 %310, %v199_v7   ;;  %v297_v8 = vld [vmem:[%s404_s1 + $0x20] sm:$0xff]  ;;  %v304_v12 = vld [vmem:[%s404_s1 + $0x58] sm:$0xff]  ;;  %v295_v13 = vld [vmem:[%s404_s1 + $0x10] sm:$0xff] }
   0x5   :  { %v305_v9 = vld [vmem:[%s404_s1 + $0x60] sm:$0xff]  ;;  %v303_v14 = vld [vmem:[%s404_s1 + $0x50] sm:$0xff]  ;;  %v294_v15 = vld [vmem:[%s404_s1 + $0x8] sm:$0xff] }
   0x6   :  { %163 = vmatpush.bf16.msra.mxu0 %v299_v2  ;;  %v302_v16 = vld [vmem:[%s404_s1 + $0x48] sm:$0xff]  ;;  %v293_v17 = vld [vmem:[%s404_s1] sm:$0xff] }
   0x7   :  { %177 = vmatpush.bf16.msra.mxu1 %v307_v3  ;;  %v301_v18 = vld [vmem:[%s404_s1 + $0x40] sm:$0xff]  ;;  %v292_v20 = vld [vmem:[%s406_s0 + $0x4] sm:$0xf0]  ;;  %v223_v22 = vld [vmem:[%s406_s0 + $0x8] sm:$0xf0] }
   0x8   :  { %v221_v19 = vld [vmem:[%s406_s0] sm:$0xf]  ;;  %v291_v21 = vld [vmem:[%s406_s0 + $0x4] sm:$0xf] }
   0x9   :  { %v222_v23 = vor.u32 %v292_v20, %v221_v19  ;;  %v226_v24 = vor.u32 %v291_v21, %v223_v22 }
   0xa   :  { %164 = vmatpush.bf16.msra.mxu0 %v298_v5 }
   0xb   :  { %178 = vmatpush.bf16.msra.mxu1 %v306_v6 }
   0xc   :  { %208 = vperm.xlu0 %310, %v200_v10  }
   0xe   :  { %165 = vmatpush.bf16.msra.mxu0 %v297_v8 }
   0xf   :  { %179 = vmatpush.bf16.msra.mxu1 %v305_v9 }
  0x12   :  { %166 = vmatpush.bf16.msra.mxu0 %v296_v11 }
  0x13   :  { %180 = vmatpush.bf16.msra.mxu1 %v304_v12 }
  0x16   :  { %167 = vmatpush.bf16.msra.mxu0 %v295_v13 }
  0x17   :  { %181 = vmatpush.bf16.msra.mxu1 %v303_v14 }
  0x1a   :  { %168 = vmatpush.bf16.msra.mxu0 %v294_v15 }
  0x1b   :  { %182 = vmatpush.bf16.msra.mxu1 %v302_v16 }
  0x1e   :  { %169 = vmatpush.bf16.msra.mxu0 %v293_v17 }
  0x1f   :  { %183 = vmatpush.bf16.msra.mxu1 %v301_v18 }
  0x21   :  { %170 = vmatmul.bf16.vlgmr.msra.gmra.mxu0 %v222_v23 }
  0x22   :  { %184 = vmatmul.bf16.vlgmr.msra.gmra.mxu1 %v226_v24 }
  0x76   :  { %v204_v25 = vpop.permute.xlu0 %203 }
  0x7e   :  { %v209_v33 = vpop.permute.xlu0 %208 }
  0x9e   :  { %v171_v26 = vpop.f32.mrf.mxu0 }
  0x9f   :  { %v185_v27 = vpop.f32.mrf.mxu1 }
  0xa0   :  { %v186_v28 = vadd.f32 %v185_v27, %v171_v26 }
  0xa2   :  { %v211_v29 = vadd.f32 %v204_v25, %v186_v28 }
  0xa4   :  { %213 = vst [vmem:[%s407_s3] sm:$0xff] %v211_v29 }
  0xa6   :  { %v173_v30 = vpop.f32.mrf.mxu0 }
  0xa7   :  { %v187_v31 = vpop.f32.mrf.mxu1 }
  0xa8   :  { %v188_v32 = vadd.f32 %v187_v31, %v173_v30 }
  0xaa   :  { %v212_v34 = vadd.f32 %v209_v33, %v188_v32 }
  0xac   :  { %214 = vst [vmem:[%s407_s3 + $0x8] sm:$0xff] %v212_v34 }

// kernel: forward.51
= control target key start
LH: loop header
LB: loop body
LE: loop exit
PB: predicated region body
PF: predicated region fallthrough
CT: control target
= control target key end

     0   :  { %v52_v0 = vmov 0   ;;  %s103_s1 = inlined_call_operand.vmem [shape: f32[8,1], index: 1, kind: input, shape index: {}]   ;;  %s104_s2 = inlined_call_operand.vmem [shape: f32[8,1], index: 2, kind: input, shape index: {}]   ;;  %s105_s0 = inlined_call_operand.vmem [shape: f32[8,512], index: 0, kind: input, shape index: {}]   ;;  %s106_s3 = inlined_call_operand.vmem [shape: f32[8,512], index: 3, kind: output, shape index: {}]  }
   0x1   :  { %51 = vset.pattern.permute.xlu0 %v52_v0  ;;  %v18_v1 = vld [vmem:[%s103_s1] sm:$0xff]  ;;  %v15_v5 = vld [vmem:[%s105_s0 + $0x8] sm:$0xff]  ;;  %v16_v6 = vld [vmem:[%s105_s0 + $0x10] sm:$0xff] }
   0x2   :  { %21 = vperm.xlu0 %51, %v18_v1   ;;  %v28_v2 = vld [vmem:[%s104_s2] sm:$0xff]  ;;  %v17_v7 = vld [vmem:[%s105_s0 + $0x18] sm:$0xff] }
   0x3   :  { %v14_v4 = vld [vmem:[%s105_s0] sm:$0xff] }
   0xa   :  { %31 = vperm.xlu0 %51, %v28_v2  }
  0x74   :  { %v22_v3 = vpop.permute.xlu0 %21 }
  0x75   :  { %v24_v8 = vmul.f32 %v22_v3, %v14_v4  ;;  %v25_v9 = vmul.f32 %v22_v3, %v15_v5  ;;  %v26_v10 = vmul.f32 %v22_v3, %v16_v6  ;;  %v27_v11 = vmul.f32 %v22_v3, %v17_v7 }
  0x7c   :  { %v32_v12 = vpop.permute.xlu0 %31 }
  0x7d   :  { %v34_v13 = vadd.f32 %v32_v12, %v24_v8  ;;  %v35_v14 = vadd.f32 %v32_v12, %v25_v9  ;;  %v36_v15 = vadd.f32 %v32_v12, %v26_v10  ;;  %v37_v16 = vadd.f32 %v32_v12, %v27_v11 }
  0x7f   :  { %v38_v17 = vmax.f32 %v34_v13, 0.0  ;;  %v39_v18 = vmax.f32 %v35_v14, 0.0  ;;  %v40_v19 = vmax.f32 %v36_v15, 0.0  ;;  %v41_v20 = vmax.f32 %v37_v16, 0.0 }
  0x81   :  { %42 = vst [vmem:[%s106_s3] sm:$0xff] %v38_v17 }
  0x82   :  { %43 = vst [vmem:[%s106_s3 + $0x8] sm:$0xff] %v39_v18 }
  0x83   :  { %44 = vst [vmem:[%s106_s3 + $0x10] sm:$0xff] %v40_v19 }
  0x84   :  { %45 = vst [vmem:[%s106_s3 + $0x18] sm:$0xff] %v41_v20 }

// kernel: forward.55
= control target key start
LH: loop header
LB: loop body
LE: loop exit
PB: predicated region body
PF: predicated region fallthrough
CT: control target
= control target key end

     0   :  { %s762_s1 = inlined_call_operand.vmem [shape: bf16[128,512], index: 1, kind: input, shape index: {}]   ;;  %s763_s2 = inlined_call_operand.vmem [shape: f32[16,1], index: 2, kind: input, shape index: {}]   ;;  %s764_s0 = inlined_call_operand.vmem [shape: bf16[16,128], index: 0, kind: input, shape index: {}]   ;;  %s765_s3 = inlined_call_operand.vmem [shape: f32[16,512], index: 3, kind: output, shape index: {}]  }
   0x1   :  { %v467_v0 = vld [vmem:[%s762_s1 + $0xe0] sm:$0xf]  ;;  %v512_v1 = vld [vmem:[%s762_s1 + $0xec] sm:$0xf0]  ;;  %v510_v2 = vld [vmem:[%s762_s1 + $0xe4] sm:$0xf] }
   0x2   :  { %v468_v3 = vor.u32 %v512_v1, %v467_v0  ;;  %v469_v4 = vld [vmem:[%s762_s1 + $0xf0] sm:$0xf0]  ;;  %v475_v5 = vld [vmem:[%s762_s1 + $0xe8] sm:$0xf]  ;;  %v513_v6 = vld [vmem:[%s762_s1 + $0xf4] sm:$0xf0] }
   0x3   :  { %v472_v7 = vor.u32 %v510_v2, %v469_v4  ;;  %v476_v8 = vor.u32 %v513_v6, %v475_v5  ;;  %v511_v9 = vld [vmem:[%s762_s1 + $0xec] sm:$0xf]  ;;  %v477_v10 = vld [vmem:[%s762_s1 + $0xf8] sm:$0xf0]  ;;  %v451_v11 = vld [vmem:[%s762_s1 + $0xc0] sm:$0xf] }
   0x4   :  { %234 = vmatpush.bf16.msra.mxu0 %v468_v3  ;;  %v480_v12 = vor.u32 %v511_v9, %v477_v10  ;;  %v508_v13 = vld [vmem:[%s762_s1 + $0xcc] sm:$0xf0]  ;;  %v506_v14 = vld [vmem:[%s762_s1 + $0xc4] sm:$0xf]  ;;  %v453_v15 = vld [vmem:[%s762_s1 + $0xd0] sm:$0xf0] }
   0x5   :  { %248 = vmatpush.bf16.msra.mxu1 %v472_v7  ;;  %262 = vmatpush.bf16.msra.mxu2 %v476_v8  ;;  %v452_v16 = vor.u32 %v508_v13, %v451_v11  ;;  %v456_v17 = vor.u32 %v506_v14, %v453_v15  ;;  %v459_v18 = vld [vmem:[%s762_s1 + $0xc8] sm:$0xf]  ;;  %v509_v19 = vld [vmem:[%s762_s1 + $0xd4] sm:$0xf0]  ;;  %v507_v20 = vld [vmem:[%s762_s1 + $0xcc] sm:$0xf] }
   0x6   :  { %276 = vmatpush.bf16.msra.mxu3 %v480_v12  ;;  %v460_v21 = vor.u32 %v509_v19, %v459_v18  ;;  %v461_v22 = vld [vmem:[%s762_s1 + $0xd8] sm:$0xf0]  ;;  %v435_v23 = vld [vmem:[%s762_s1 + $0xa0] sm:$0xf]  ;;  %v504_v24 = vld [vmem:[%s762_s1 + $0xac] sm:$0xf0] }
   0x7   :  { %v464_v25 = vor.u32 %v507_v20, %v461_v22  ;;  %v502_v26 = vld [vmem:[%s762_s1 + $0xa4] sm:$0xf]  ;;  %v437_v27 = vld [vmem:[%s762_s1 + $0xb0] sm:$0xf0]  ;;  %v443_v28 = vld [vmem:[%s762_s1 + $0xa8] sm:$0xf]  ;;  %v436_v29 = vor.u32 %v504_v24, %v435_v23 }
   0x8   :  { %235 = vmatpush.bf16.msra.mxu0 %v452_v16  ;;  %v505_v30 = vld [vmem:[%s762_s1 + $0xb4] sm:$0xf0]  ;;  %v503_v31 = vld [vmem:[%s762_s1 + $0xac] sm:$0xf]  ;;  %v445_v32 = vld [vmem:[%s762_s1 + $0xb8] sm:$0xf0]  ;;  %v440_v33 = vor.u32 %v502_v26, %v437_v27 }
   0x9   :  { %249 = vmatpush.bf16.msra.mxu1 %v456_v17  ;;  %263 = vmatpush.bf16.msra.mxu2 %v460_v21  ;;  %v444_v34 = vor.u32 %v505_v30, %v443_v28  ;;  %v419_v35 = vld [vmem:[%s762_s1 + $0x80] sm:$0xf]  ;;  %v500_v36 = vld [vmem:[%s762_s1 + $0x8c] sm:$0xf0]  ;;  %v498_v37 = vld [vmem:[%s762_s1 + $0x84] sm:$0xf]  ;;  %v448_v38 = vor.u32 %v503_v31, %v445_v32 }
   0xa   :  { %277 = vmatpush.bf16.msra.mxu3 %v464_v25  ;;  %v421_v39 = vld [vmem:[%s762_s1 + $0x90] sm:$0xf0]  ;;  %v427_v40 = vld [vmem:[%s762_s1 + $0x88] sm:$0xf]  ;;  %v501_v41 = vld [vmem:[%s762_s1 + $0x94] sm:$0xf0]  ;;  %v420_v44 = vor.u32 %v500_v36, %v419_v35 }
   0xb   :  { %v499_v42 = vld [vmem:[%s762_s1 + $0x8c] sm:$0xf]  ;;  %v429_v43 = vld [vmem:[%s762_s1 + $0x98] sm:$0xf0]  ;;  %v424_v45 = vor.u32 %v498_v37, %v421_v39  ;;  %v428_v46 = vor.u32 %v501_v41, %v427_v40  ;;  %v403_v47 = vld [vmem:[%s762_s1 + $0x60] sm:$0xf] }
   0xc   :  { %236 = vmatpush.bf16.msra.mxu0 %v436_v29  ;;  %v496_v48 = vld [vmem:[%s762_s1 + $0x6c] sm:$0xf0]  ;;  %v494_v49 = vld [vmem:[%s762_s1 + $0x64] sm:$0xf]  ;;  %v432_v50 = vor.u32 %v499_v42, %v429_v43  ;;  %v405_v51 = vld [vmem:[%s762_s1 + $0x70] sm:$0xf0] }
   0xd   :  { %250 = vmatpush.bf16.msra.mxu1 %v440_v33  ;;  %264 = vmatpush.bf16.msra.mxu2 %v444_v34  ;;  %v411_v52 = vld [vmem:[%s762_s1 + $0x68] sm:$0xf]  ;;  %v497_v53 = vld [vmem:[%s762_s1 + $0x74] sm:$0xf0]  ;;  %v495_v54 = vld [vmem:[%s762_s1 + $0x6c] sm:$0xf]  ;;  %v404_v56 = vor.u32 %v496_v48, %v403_v47  ;;  %v408_v57 = vor.u32 %v494_v49, %v405_v51 }
   0xe   :  { %278 = vmatpush.bf16.msra.mxu3 %v448_v38  ;;  %v413_v55 = vld [vmem:[%s762_s1 + $0x78] sm:$0xf0]  ;;  %v412_v58 = vor.u32 %v497_v53, %v411_v52  ;;  %v387_v59 = vld [vmem:[%s762_s1 + $0x40] sm:$0xf]  ;;  %v492_v60 = vld [vmem:[%s762_s1 + $0x4c] sm:$0xf0] }
   0xf   :  { %v490_v61 = vld [vmem:[%s762_s1 + $0x44] sm:$0xf]  ;;  %v416_v62 = vor.u32 %v495_v54, %v413_v55  ;;  %v389_v63 = vld [vmem:[%s762_s1 + $0x50] sm:$0xf0]  ;;  %v395_v0 = vld [vmem:[%s762_s1 + $0x48] sm:$0xf]  ;;  %v388_v4 = vor.u32 %v492_v60, %v387_v59 }
  0x10   :  { %237 = vmatpush.bf16.msra.mxu0 %v420_v44  ;;  %v493_v1 = vld [vmem:[%s762_s1 + $0x54] sm:$0xf0]  ;;  %v491_v2 = vld [vmem:[%s762_s1 + $0x4c] sm:$0xf]  ;;  %v397_v3 = vld [vmem:[%s762_s1 + $0x58] sm:$0xf0]  ;;  %v392_v6 = vor.u32 %v490_v61, %v389_v63 }
  0x11   :  { %251 = vmatpush.bf16.msra.mxu1 %v424_v45  ;;  %265 = vmatpush.bf16.msra.mxu2 %v428_v46  ;;  %v371_v5 = vld [vmem:[%s762_s1 + $0x20] sm:$0xf]  ;;  %v396_v7 = vor.u32 %v493_v1, %v395_v0  ;;  %v488_v8 = vld [vmem:[%s762_s1 + $0x2c] sm:$0xf0]  ;;  %v486_v9 = vld [vmem:[%s762_s1 + $0x24] sm:$0xf]  ;;  %v400_v11 = vor.u32 %v491_v2, %v397_v3 }
  0x12   :  { %279 = vmatpush.bf16.msra.mxu3 %v432_v50  ;;  %v373_v10 = vld [vmem:[%s762_s1 + $0x30] sm:$0xf0]  ;;  %v379_v12 = vld [vmem:[%s762_s1 + $0x28] sm:$0xf]  ;;  %v489_v13 = vld [vmem:[%s762_s1 + $0x34] sm:$0xf0]  ;;  %v372_v18 = vor.u32 %v488_v8, %v371_v5 }
  0x13   :  { %v317_v14 = vld [vmem:[%s763_s2] sm:$0xff]  ;;  %v487_v15 = vld [vmem:[%s762_s1 + $0x2c] sm:$0xf]  ;;  %v381_v16 = vld [vmem:[%s762_s1 + $0x38] sm:$0xf0]  ;;  %v516_v17 = vmov 0   ;;  %v376_v19 = vor.u32 %v486_v9, %v373_v10  ;;  %v380_v20 = vor.u32 %v489_v13, %v379_v12 }
  0x14   :  { %238 = vmatpush.bf16.msra.mxu0 %v404_v56  ;;  %515 = vset.pattern.permute.xlu0 %v516_v17  ;;  %v355_v21 = vld [vmem:[%s762_s1] sm:$0xf]  ;;  %v484_v22 = vld [vmem:[%s762_s1 + $0xc] sm:$0xf0]  ;;  %v482_v23 = vld [vmem:[%s762_s1 + $0x4] sm:$0xf]  ;;  %v384_v24 = vor.u32 %v487_v15, %v381_v16 }
  0x15   :  { %252 = vmatpush.bf16.msra.mxu1 %v408_v57  ;;  %266 = vmatpush.bf16.msra.mxu2 %v412_v58  ;;  %v357_v25 = vld [vmem:[%s762_s1 + $0x10] sm:$0xf0]  ;;  %v363_v26 = vld [vmem:[%s762_s1 + $0x8] sm:$0xf]  ;;  %v485_v27 = vld [vmem:[%s762_s1 + $0x14] sm:$0xf0]  ;;  %v356_v30 = vor.u32 %v484_v22, %v355_v21 }
  0x16   :  { %280 = vmatpush.bf16.msra.mxu3 %v416_v62  ;;  %321 = vperm.xlu0 %515, %v317_v14   ;;  %v483_v28 = vld [vmem:[%s762_s1 + $0xc] sm:$0xf]  ;;  %v365_v29 = vld [vmem:[%s762_s1 + $0x18] sm:$0xf0]  ;;  %v360_v31 = vor.u32 %v482_v23, %v357_v25  ;;  %v364_v32 = vor.u32 %v485_v27, %v363_v26  ;;  %v481_v35 = vld [vmem:[%s764_s0] sm:$0xff] }
  0x17   :  { %v318_v33 = vld [vmem:[%s763_s2 + $0x8] sm:$0xff]  ;;  %v368_v34 = vor.u32 %v483_v28, %v365_v29 }
  0x18   :  { %239 = vmatpush.bf16.msra.mxu0 %v388_v4 }
  0x19   :  { %253 = vmatpush.bf16.msra.mxu1 %v392_v6  ;;  %267 = vmatpush.bf16.msra.mxu2 %v396_v7 }
  0x1a   :  { %281 = vmatpush.bf16.msra.mxu3 %v400_v11 }
  0x1c   :  { %240 = vmatpush.bf16.msra.mxu0 %v372_v18 }
  0x1d   :  { %254 = vmatpush.bf16.msra.mxu1 %v376_v19  ;;  %268 = vmatpush.bf16.msra.mxu2 %v380_v20 }
  0x1e   :  { %282 = vmatpush.bf16.msra.mxu3 %v384_v24  ;;  %326 = vperm.xlu0 %515, %v318_v33  }
  0x20   :  { %241 = vmatpush.bf16.msra.mxu0 %v356_v30 }
  0x21   :  { %255 = vmatpush.bf16.msra.mxu1 %v360_v31  ;;  %269 = vmatpush.bf16.msra.mxu2 %v364_v32 }
  0x22   :  { %283 = vmatpush.bf16.msra.mxu3 %v368_v34 }
  0x23   :  { %242 = vmatmul.bf16.vlgmr.msra.gmra.mxu0 %v481_v35 }
  0x24   :  { %256 = vmatmul.bf16.vlgmr.msra.gmra.mxu1 %v481_v35  ;;  %270 = vmatmul.bf16.vlgmr.msra.gmra.mxu2 %v481_v35 }
  0x25   :  { %284 = vmatmul.bf16.vlgmr.msra.gmra.mxu3 %v481_v35 }
  0x88   :  { %v322_v36 = vpop.permute.xlu0 %321 }
  0x90   :  { %v327_v41 = vpop.permute.xlu0 %326 }
  0xa0   :  { %v243_v37 = vpop.f32.mrf.mxu0 }
  0xa1   :  { %v329_v38 = vadd.f32 %v322_v36, %v243_v37  ;;  %v257_v39 = vpop.f32.mrf.mxu1 }
  0xa2   :  { %v330_v40 = vadd.f32 %v322_v36, %v257_v39 }
  0xa3   :  { %337 = vst [vmem:[%s765_s3] sm:$0xff] %v329_v38 }
  0xa4   :  { %338 = vst [vmem:[%s765_s3 + $0x8] sm:$0xff] %v330_v40 }
  0xa7   :  { %v271_v42 = vpop.f32.mrf.mxu2 }
  0xa8   :  { %v331_v43 = vadd.f32 %v322_v36, %v271_v42  ;;  %v285_v44 = vpop.f32.mrf.mxu3  ;;  %v245_v45 = vpop.f32.mrf.mxu0 }
  0xa9   :  { %v332_v46 = vadd.f32 %v322_v36, %v285_v44  ;;  %v333_v47 = vadd.f32 %v327_v41, %v245_v45  ;;  %v259_v48 = vpop.f32.mrf.mxu1 }
  0xaa   :  { %339 = vst [vmem:[%s765_s3 + $0x10] sm:$0xff] %v331_v43  ;;  %v334_v49 = vadd.f32 %v327_v41, %v259_v48 }
  0xab   :  { %340 = vst [vmem:[%s765_s3 + $0x18] sm:$0xff] %v332_v46 }
  0xac   :  { %341 = vst [vmem:[%s765_s3 + $0x20] sm:$0xff] %v333_v47 }
  0xad   :  { %342 = vst [vmem:[%s765_s3 + $0x28] sm:$0xff] %v334_v49 }
  0xaf   :  { %v273_v50 = vpop.f32.mrf.mxu2 }
  0xb0   :  { %v335_v51 = vadd.f32 %v327_v41, %v273_v50  ;;  %v287_v52 = vpop.f32.mrf.mxu3 }
  0xb1   :  { %v336_v53 = vadd.f32 %v327_v41, %v287_v52 }
  0xb2   :  { %343 = vst [vmem:[%s765_s3 + $0x30] sm:$0xff] %v335_v51 }
  0xb3   :  { %344 = vst [vmem:[%s765_s3 + $0x38] sm:$0xff] %v336_v53 }

// kernel: forward.56
= control target key start
LH: loop header
LB: loop body
LE: loop exit
PB: predicated region body
PF: predicated region fallthrough
CT: control target
= control target key end

     0   :  { %s312_s12 = smov 0   ;;  %s335_s0 = inlined_call_operand.vmem [shape: f32[8,2048], index: 0, kind: input, shape index: {}]   ;;  %s336_s1 = inlined_call_operand.vmem [shape: f32[8,1], index: 1, kind: input, shape index: {}]   ;;  %s337_s2 = inlined_call_operand.vmem [shape: f32[8,1], index: 2, kind: input, shape index: {}]   ;;  %s338_s3 = inlined_call_operand.vmem [shape: f32[8,2048], index: 3, kind: output, shape index: {}]  }
   0x1 LB: > { %s262_s13 = sadd.s32 4294967295, %s289_s12   ;;  %p266_p0 = scmp.ge.s32.totalorder %s289_s12, 1  ;;  %s289_s12 = sphi %s312_s12, %s13_s12  }
   0x2   : > { %p138_p1 = scmp.lt.s32.totalorder %s289_s12, 5 }
   0x4   : > { %p139_p2 = pnand %p266_p0, %p138_p1 }
   0x5   : > { %s267_s18 = sshll.u32 (!%p139_p2), %s262_s13, 2 }
   0x6   : > { %142 = sbr.rel (%p139_p2) target bundleno = 144 (0x90), region = 32  ;;  %p163_p3 = scmp.lt.s32.totalorder (!%p139_p2), %s267_s18, 15 }
   0xb   : > { %v178_v0 = vld [vmem:[%s336_s1] sm:$0xff]  ;;  %v291_v1 = vmov 0   ;;  %s340_s18 = smov (!%p163_p3, %s267_s18), 15 }
   0xc   : > { %282 = vset.pattern.permute.xlu0 %v291_v1  ;;  %v188_v2 = vld [vmem:[%s337_s2] sm:$0xff]  ;;  %s268_s19 = sshll.u32 %s340_s18, 3 }
   0xd   : > { %181 = vperm.xlu0 %282, %v178_v0   ;;  %s166_s22 = scalar_lea.vmem %s335_s0, %s268_s19  ;;  %s172_s25 = scalar_lea.vmem %s338_s3, %s268_s19 }
   0xe   : > { %v174_v4 = vld [vmem:[%s166_s22] sm:$0xff]  ;;  %v175_v5 = vld [vmem:[%s166_s22 + $0x8] sm:$0xff]  ;;  %v176_v6 = vld [vmem:[%s166_s22 + $0x10] sm:$0xff] }
   0xf   : > { %v177_v7 = vld [vmem:[%s166_s22 + $0x18] sm:$0xff] }
  0x15   : > { %191 = vperm.xlu0 %282, %v188_v2  }
  0x7f   : > { %v182_v3 = vpop.permute.xlu0 %181 }
  0x80   : > { %v184_v8 = vmul.f32 %v182_v3, %v174_v4  ;;  %v185_v9 = vmul.f32 %v182_v3, %v175_v5  ;;  %v186_v10 = vmul.f32 %v182_v3, %v176_v6  ;;  %v187_v11 = vmul.f32 %v182_v3, %v177_v7 }
  0x87   : > { %v192_v12 = vpop.permute.xlu0 %191 }
  0x88   : > { %v194_v13 = vadd.f32 %v192_v12, %v184_v8  ;;  %v195_v14 = vadd.f32 %v192_v12, %v185_v9  ;;  %v196_v15 = vadd.f32 %v192_v12, %v186_v10  ;;  %v197_v16 = vadd.f32 %v192_v12, %v187_v11 }
  0x8a   : > { %v198_v17 = vmax.f32 %v194_v13, 0.0  ;;  %v199_v18 = vmax.f32 %v195_v14, 0.0  ;;  %v200_v19 = vmax.f32 %v196_v15, 0.0  ;;  %v201_v20 = vmax.f32 %v197_v16, 0.0 }
  0x8c   : > { %202 = vst [vmem:[%s172_s25] sm:$0xff] %v198_v17 }
  0x8d   : > { %203 = vst [vmem:[%s172_s25 + $0x8] sm:$0xff] %v199_v18 }
  0x8e   : > { %204 = vst [vmem:[%s172_s25 + $0x10] sm:$0xff] %v200_v19 }
  0x8f   : > { %205 = vst [vmem:[%s172_s25 + $0x18] sm:$0xff] %v201_v20 }
  0x90 PF: > { %s13_s12 = sadd.s32 1, %s289_s12  }
  0x91   : > { %p10_p4 = scmp.ge.s32.totalorder %s13_s12, 6  }
  0x93   :  { %12 = sbr.rel (!%p10_p4) target bundleno = 1 (0x1), region = 62 }

// kernel: forward.57
= control target key start
LH: loop header
LB: loop body
LE: loop exit
PB: predicated region body
PF: predicated region fallthrough
CT: control target
= control target key end

     0   :  { %s992_s12 = smov 0   ;;  %s994_s13 = smov 0   ;;  %s1115_s0 = inlined_call_operand.vmem [shape: bf16[16,5120], index: 0, kind: input, shape index: {}]   ;;  %s1116_s1 = inlined_call_operand.vmem [shape: bf16[5120,128], index: 1, kind: input, shape index: {}]   ;;  %s1117_s2 = inlined_call_operand.vmem [shape: f32[16,1], index: 2, kind: input, shape index: {}]   ;;  %s1118_s3 = inlined_call_operand.vmem [shape: f32[16,128], index: 3, kind: output, shape index: {}]  }
   0x1   :  { %s996_s14 = smov 0   ;;  %s998_s15 = smov 0  }
   0x2   :  { %s1000_s16 = smov 0  }
   0x3 LB: > { %s22_s17 = sadd.s32 1, %s964_s15  ;;  %p39_p1 = scmp.ne.s32.totalorder %s956_s13, %s952_s12  ;;  %s968_s16 = sphi %s1000_s16, %s13_s16   ;;  %s964_s15 = sphi %s998_s15, %s1122_s15   ;;  %s960_s14 = sphi %s996_s14, %s1121_s14   ;;  %s956_s13 = sphi %s994_s13, %s1120_s13   ;;  %s952_s12 = sphi %s992_s12, %s1119_s12  }
   0x4   : > { %p23_p0 = scmp.ge.s32.totalorder %s22_s17, 10  ;;  %p40_p2 = scmp.eq.s32.totalorder %s968_s16, 0 }
   0x5   : > { %s32_s19 = sadd.s32 1, %s956_s13  ;;  %p693_p5 = scmp.ge.s32.totalorder %s968_s16, 10 }
   0x6   : > { %s1124_s17 = smov (%p23_p0, %s22_s17), 0  ;;  %p41_p3 = por %p40_p2, %p39_p1 }
   0x7   : > { %s29_s18 = ssub.s32 %s964_s15, %s1124_s17  ;;  %143 = sbr.rel (%p693_p5) target bundleno = 20 (0x14), region = 20 }
   0x8   : > { %p30_p4 = scmp.eq.s32.totalorder %s29_s18, 0 }
   0xa   : > { %s1027_s20 = scalar_select %p30_p4, %s956_s13, %s32_s19  }
   0xc   : > { %146 = sbr.rel (!%p41_p3) target bundleno = 20 (0x14), region = 24  ;;  %s148_s21 = sand.u32 (%p41_p3), 1, %s956_s13  }
   0xd   : > { %s850_s22 = sshll.u32 (%p41_p3), %s964_s15, 4  ;;  %s694_s23 = sshll.u32 (%p41_p3), %s148_s21, 5 }
   0xe   : > { %s153_s26 = scalar_lea.vmem (%p41_p3), %s1115_s0, %s850_s22  ;;  %s150_s27 = scalar_lea.vmem (%p41_p3), [#allocation3], %s694_s23 }
   0xf   : > { %v166_v0 = vld [vmem:[%s153_s26] sm:$0xff] (%p41_p3)  ;;  %v168_v1 = vld [vmem:[%s153_s26 + $0x8] sm:$0xff] (%p41_p3) }
  0x10   : > { %v170_v2 = vld [vmem:[%s153_s26 + $0xa0] sm:$0xff] (%p41_p3)  ;;  %167 = vst [vmem:[%s150_s27] sm:$0xff] (%p41_p3), %v166_v0  ;;  %v172_v3 = vld [vmem:[%s153_s26 + $0xa8] sm:$0xff] (%p41_p3) }
  0x11   : > { %169 = vst [vmem:[%s150_s27 + $0x8] sm:$0xff] %v168_v1 }
  0x12   : > { %171 = vst [vmem:[%s150_s27 + $0x10] sm:$0xff] %v170_v2 }
  0x13   : > { %173 = vst [vmem:[%s150_s27 + $0x18] sm:$0xff] %v172_v3 }
  0x14 PF: > { %p697_p6 = scmp.ge.s32.totalorder %s968_s16, 1  ;;  %p190_p7 = scmp.lt.s32.totalorder %s968_s16, 11 }
  0x16   : > { %p191_p8 = pnand %p697_p6, %p190_p7 }
  0x17   : > { %s197_s28 = sand.u32 (!%p191_p8), 1, %s952_s12   ;;  %s699_s29 = sshll.u32 (!%p191_p8), %s960_s14, 6 }
  0x18   : > { %194 = sbr.rel (%p191_p8) target bundleno = 346 (0x15a), region = 51  ;;  %s698_s30 = sshll.u32 (!%p191_p8), %s197_s28, 5 }
  0x19   : > { %p229_p9 = scmp.lt.s32.totalorder (!%p191_p8), %s699_s29, 639  ;;  %s1044_s8 = scalar_lea.vmem (!%p191_p8), [#allocation3], %s698_s30 }
  0x1a   : > { %p701_p10 = scmp.ne.s32.totalorder (!%p191_p8), %s960_s14, 0 }
  0x1d   : > { %s1126_s29 = smov (!%p229_p9, %s699_s29), 639  ;;  %244 = sbr.rel (%p701_p10) target bundleno = 37 (0x25), region = 59 }
  0x1e   : > { %s700_s4 = sshll.u32 %s1126_s29, 2 }
  0x1f   : > { %s1042_s7 = scalar_lea.vmem %s1116_s1, %s700_s4 }
  0x22   : > { %v970_v4 = vmov 0.0  }
  0x23   : > { %245 = vst [vmem:[#allocation2] sm:$0xff] %v970_v4 }
  0x24   : > { %246 = vst [vmem:[#allocation2 + $0x8] sm:$0xff] %v970_v4 }
  0x25 PF: > { %v862_v5 = vld [vmem:[%s1042_s7 + $0x38] sm:$0xff]  ;;  %v861_v9 = vld [vmem:[%s1042_s7 + $0x30] sm:$0xff]  ;;  %v860_v13 = vld [vmem:[%s1042_s7 + $0x28] sm:$0xff]  ;;  %p846_p11 = scmp.ne.s32.totalorder %s960_s14, 9 }
  0x26   : > { %v870_v6 = vld [vmem:[%s1042_s7 + $0x78] sm:$0xff]  ;;  %529 = vmatpush.bf16.msra.mxu0 %v862_v5  ;;  %v869_v10 = vld [vmem:[%s1042_s7 + $0x70] sm:$0xff]  ;;  %v868_v14 = vld [vmem:[%s1042_s7 + $0x68] sm:$0xff] }
  0x27   : > { %v878_v7 = vld [vmem:[%s1042_s7 + $0xb8] sm:$0xff]  ;;  %543 = vmatpush.bf16.msra.mxu1 %v870_v6  ;;  %v877_v11 = vld [vmem:[%s1042_s7 + $0xb0] sm:$0xff]  ;;  %v876_v15 = vld [vmem:[%s1042_s7 + $0xa8] sm:$0xff] }
  0x28   : > { %v886_v8 = vld [vmem:[%s1042_s7 + $0xf8] sm:$0xff]  ;;  %557 = vmatpush.bf16.msra.mxu2 %v878_v7  ;;  %v885_v12 = vld [vmem:[%s1042_s7 + $0xf0] sm:$0xff]  ;;  %v884_v16 = vld [vmem:[%s1042_s7 + $0xe8] sm:$0xff] }
  0x29   : > { %571 = vmatpush.bf16.msra.mxu3 %v886_v8  ;;  %v859_v17 = vld [vmem:[%s1042_s7 + $0x20] sm:$0xff]  ;;  %v858_v21 = vld [vmem:[%s1042_s7 + $0x18] sm:$0xff]  ;;  %v857_v25 = vld [vmem:[%s1042_s7 + $0x10] sm:$0xff] }
  0x2a   : > { %530 = vmatpush.bf16.msra.mxu0 %v861_v9  ;;  %v867_v18 = vld [vmem:[%s1042_s7 + $0x60] sm:$0xff]  ;;  %v866_v22 = vld [vmem:[%s1042_s7 + $0x58] sm:$0xff]  ;;  %v865_v26 = vld [vmem:[%s1042_s7 + $0x50] sm:$0xff] }
  0x2b   : > { %544 = vmatpush.bf16.msra.mxu1 %v869_v10  ;;  %v875_v19 = vld [vmem:[%s1042_s7 + $0xa0] sm:$0xff]  ;;  %v874_v23 = vld [vmem:[%s1042_s7 + $0x98] sm:$0xff]  ;;  %v873_v27 = vld [vmem:[%s1042_s7 + $0x90] sm:$0xff] }
  0x2c   : > { %558 = vmatpush.bf16.msra.mxu2 %v877_v11  ;;  %v883_v20 = vld [vmem:[%s1042_s7 + $0xe0] sm:$0xff]  ;;  %v882_v24 = vld [vmem:[%s1042_s7 + $0xd8] sm:$0xff]  ;;  %v881_v28 = vld [vmem:[%s1042_s7 + $0xd0] sm:$0xff] }
  0x2d   : > { %572 = vmatpush.bf16.msra.mxu3 %v885_v12  ;;  %v856_v29 = vld [vmem:[%s1042_s7 + $0x8] sm:$0xff]  ;;  %v855_v33 = vld [vmem:[%s1042_s7] sm:$0xff]  ;;  %v704_v37 = vld [vmem:[%s1044_s8] sm:$0xf] }
  0x2e   : > { %531 = vmatpush.bf16.msra.mxu0 %v860_v13  ;;  %v864_v30 = vld [vmem:[%s1042_s7 + $0x48] sm:$0xff]  ;;  %v863_v34 = vld [vmem:[%s1042_s7 + $0x40] sm:$0xff]  ;;  %v851_v39 = vld [vmem:[%s1044_s8 + $0x4] sm:$0xf] }
  0x2f   : > { %545 = vmatpush.bf16.msra.mxu1 %v868_v14  ;;  %v872_v31 = vld [vmem:[%s1042_s7 + $0x88] sm:$0xff]  ;;  %v871_v35 = vld [vmem:[%s1042_s7 + $0x80] sm:$0xff]  ;;  %v712_v41 = vld [vmem:[%s1044_s8 + $0x8] sm:$0xf] }
  0x30   : > { %559 = vmatpush.bf16.msra.mxu2 %v876_v15  ;;  %v880_v32 = vld [vmem:[%s1042_s7 + $0xc8] sm:$0xff]  ;;  %v879_v36 = vld [vmem:[%s1042_s7 + $0xc0] sm:$0xff]  ;;  %v852_v43 = vld [vmem:[%s1044_s8 + $0xc] sm:$0xf] }
  0x31   : > { %573 = vmatpush.bf16.msra.mxu3 %v884_v16  ;;  %v853_v38 = vld [vmem:[%s1044_s8 + $0xc] sm:$0xf0]  ;;  %v706_v40 = vld [vmem:[%s1044_s8 + $0x10] sm:$0xf0]  ;;  %v854_v42 = vld [vmem:[%s1044_s8 + $0x14] sm:$0xf0] }
  0x32   : > { %532 = vmatpush.bf16.msra.mxu0 %v859_v17  ;;  %v714_v44 = vld [vmem:[%s1044_s8 + $0x18] sm:$0xf0]  ;;  %v705_v45 = vor.u32 %v853_v38, %v704_v37  ;;  %v709_v46 = vor.u32 %v851_v39, %v706_v40  ;;  %v713_v47 = vor.u32 %v854_v42, %v712_v41  ;;  %v247_v55 = vld [vmem:[#allocation2] sm:$0xff] }
  0x33   : > { %546 = vmatpush.bf16.msra.mxu1 %v867_v18  ;;  %v717_v48 = vor.u32 %v852_v43, %v714_v44  ;;  %v248_v63 = vld [vmem:[#allocation2 + $0x8] sm:$0xff] }
  0x34   : > { %560 = vmatpush.bf16.msra.mxu2 %v875_v19 }
  0x35   : > { %574 = vmatpush.bf16.msra.mxu3 %v883_v20 }
  0x36   : > { %533 = vmatpush.bf16.msra.mxu0 %v858_v21 }
  0x37   : > { %547 = vmatpush.bf16.msra.mxu1 %v866_v22 }
  0x38   : > { %561 = vmatpush.bf16.msra.mxu2 %v874_v23 }
  0x39   : > { %575 = vmatpush.bf16.msra.mxu3 %v882_v24 }
  0x3a   : > { %534 = vmatpush.bf16.msra.mxu0 %v857_v25 }
  0x3b   : > { %548 = vmatpush.bf16.msra.mxu1 %v865_v26 }
  0x3c   : > { %562 = vmatpush.bf16.msra.mxu2 %v873_v27 }
  0x3d   : > { %576 = vmatpush.bf16.msra.mxu3 %v881_v28 }
  0x3e   : > { %535 = vmatpush.bf16.msra.mxu0 %v856_v29 }
  0x3f   : > { %549 = vmatpush.bf16.msra.mxu1 %v864_v30 }
  0x40   : > { %563 = vmatpush.bf16.msra.mxu2 %v872_v31 }
  0x41   : > { %577 = vmatpush.bf16.msra.mxu3 %v880_v32 }
  0x42   : > { %536 = vmatpush.bf16.msra.mxu0 %v855_v33 }
  0x43   : > { %550 = vmatpush.bf16.msra.mxu1 %v863_v34 }
  0x44   : > { %564 = vmatpush.bf16.msra.mxu2 %v871_v35 }
  0x45   : > { %578 = vmatpush.bf16.msra.mxu3 %v879_v36  ;;  %537 = vmatmul.bf16.vlgmr.msra.gmra.mxu0 %v705_v45 }
  0x46   : > { %551 = vmatmul.bf16.vlgmr.msra.gmra.mxu1 %v709_v46 }
  0x47   : > { %565 = vmatmul.bf16.vlgmr.msra.gmra.mxu2 %v713_v47 }
  0x48   : > { %579 = vmatmul.bf16.vlgmr.msra.gmra.mxu3 %v717_v48 }
  0xc2   : > { %v538_v49 = vpop.f32.mrf.mxu0 }
  0xc3   : > { %v552_v50 = vpop.f32.mrf.mxu1 }
  0xc4   : > { %v553_v51 = vadd.f32 %v552_v50, %v538_v49 }
  0xca   : > { %v566_v52 = vpop.f32.mrf.mxu2  ;;  %v540_v57 = vpop.f32.mrf.mxu0 }
  0xcb   : > { %v580_v53 = vpop.f32.mrf.mxu3  ;;  %v567_v54 = vadd.f32 %v566_v52, %v553_v51  ;;  %v554_v58 = vpop.f32.mrf.mxu1 }
  0xcc   : > { %v555_v60 = vadd.f32 %v554_v58, %v540_v57 }
  0xcd   : > { %v581_v56 = vadd.f32 %v580_v53, %v567_v54 }
  0xcf   : > { %v585_v59 = vadd.f32 %v581_v56, %v247_v55 }
  0xd1   : > { %587 = vst [vmem:[#allocation2] sm:$0xff] %v585_v59 }
  0xd2   : > { %v568_v61 = vpop.f32.mrf.mxu2 }
  0xd3   : > { %v569_v62 = vadd.f32 %v568_v61, %v555_v60  ;;  %v582_v0 = vpop.f32.mrf.mxu3 }
  0xd5   : > { %v583_v1 = vadd.f32 %v582_v0, %v569_v62  ;;  %592 = sbr.rel (%p846_p11) target bundleno = 346 (0x15a), region = 63 }
  0xd7   : > { %v586_v2 = vadd.f32 %v583_v1, %v248_v63 }
  0xd9   : > { %588 = vst [vmem:[#allocation2 + $0x8] sm:$0xff] %v586_v2 }
  0xda   : > { %v595_v3 = vld [vmem:[%s1117_s2] sm:$0xff]  ;;  %v971_v4 = vmov 0   ;;  %v596_v5 = vld [vmem:[%s1117_s2 + $0x8] sm:$0xff] }
  0xdb   : > { %929 = vset.pattern.permute.xlu0 %v971_v4  ;;  %v593_v6 = vld [vmem:[#allocation2] sm:$0xff] }
  0xdc   : > { %599 = vperm.xlu0 %929, %v595_v3  }
  0xe0   : > { %v594_v9 = vld [vmem:[#allocation2 + $0x8] sm:$0xff] }
  0xe4   : > { %604 = vperm.xlu0 %929, %v596_v5  }
 0x14e   : > { %v600_v7 = vpop.permute.xlu0 %599 }
 0x14f   : > { %v607_v8 = vadd.f32 %v600_v7, %v593_v6 }
 0x151   : > { %609 = vst [vmem:[%s1118_s3] sm:$0xff] %v607_v8 }
 0x156   : > { %v605_v10 = vpop.permute.xlu0 %604 }
 0x157   : > { %v608_v11 = vadd.f32 %v605_v10, %v594_v9 }
 0x159   : > { %610 = vst [vmem:[%s1118_s3 + $0x8] sm:$0xff] %v608_v11 }
 0x15a PF: > { %s13_s16 = sadd.s32 1, %s968_s16   ;;  %s1119_s12 = smov %s956_s13 }
 0x15b   : > { %p10_p12 = scmp.ge.s32.totalorder %s13_s16, 12   ;;  %s1120_s13 = smov %s1027_s20 }
 0x15c   : > { %s1121_s14 = smov %s964_s15  ;;  %s1122_s15 = smov %s1124_s17 }
 0x15d   :  { %12 = sbr.rel (!%p10_p12) target bundleno = 3 (0x3), region = 101 }

</bundles_post_ra>
